<compile_context>
chip_gen: v7x
topology: tpu7x:2x2x1
jax: 0.10.0
libtpu: 0.0.40
codegen_flags: <defaults>
</compile_context>

<pallas_src>
import functools

import numpy as np

import jax
import jax.numpy as jnp
from jax.experimental import pallas as pl
from jax.experimental.pallas import tpu as pltpu

EPS = 1e-5                    # nn.BatchNorm2d default eps
MATMUL_DTYPE = jnp.bfloat16   # MXU operand dtype (f32 accumulation).
K = 5                         # conv kernel size (fixed by the module)
STRIDE = 2                    # conv stride (fixed by the module)


# ---------------------------------------------------------------------------
# Host-side helpers (shape-only constants + weight rearrangement)
# ---------------------------------------------------------------------------
def _zero_index(nd, i):
    return (0,) * nd


def _full_specs(*arrays):
    # Whole-array blocks (exempt from the (8,128) divisibility rule).
    return [pl.BlockSpec(a.shape, functools.partial(_zero_index, a.ndim))
            for a in arrays]


def _pad_axis(a, axis, mult):
    pad = (-a.shape[axis]) % mult
    if pad == 0:
        return a
    cfg = [(0, 0)] * a.ndim
    cfg[axis] = (0, pad)
    return jnp.pad(a, cfg)


def _row_select_stack(oh, n, h):
    """S[ki, oh*N+b, hh*N+b] = 1 with hh = STRIDE*oh + ki (stride-2 row taps)."""
    s = np.zeros((K, oh * n, h * n), np.float32)
    for ki in range(K):
        for r in range(oh):
            hh = STRIDE * r + ki
            for b in range(n):
                s[ki, r * n + b, hh * n + b] = 1.0
    return s


def _toeplitz_weight(wt, w_in, ow):
    """Expand conv weight (OC,C,K,K) into K matrices T_ki of shape (W*C, OW*OC):
    T_ki[w*C+c, ow*OC+oc] = wt[oc, c, ki, w - STRIDE*ow] (0 outside the tap)."""
    oc, c, k, _ = wt.shape
    p = np.zeros((k, w_in, ow), np.float32)
    for kj in range(k):
        for o in range(ow):
            p[kj, STRIDE * o + kj, o] = 1.0
    big = jnp.einsum("jwv,ocij->iwcvo", jnp.asarray(p), wt.astype(jnp.float32))
    return big.reshape(k, w_in * c, ow * oc)


# ---------------------------------------------------------------------------
# Fused Pallas kernel
# ---------------------------------------------------------------------------
def _make_fused_kernel(n, layer_out_dims, out_features):
    """layer_out_dims: [(OH, OW, OC)] for the three conv layers."""

    def kernel(x0_ref,
               s1_ref, w1_ref, bn1_ref, g1_ref, gt1_ref,
               s2_ref, w2_ref, bn2_ref, g2_ref, gt2_ref,
               s3_ref, w3_ref, bn3_ref, g3_ref, gt3_ref,
               hw_ref, hb_ref, o_ref):

        def conv_bn_relu(a_mm, s_ref, w_ref, bn_ref, g_ref, gt_ref, oh, ow, oc):
            rows = s_ref.shape[1]          # OH * N
            cols = w_ref.shape[2]          # OW * OC  (lane-dense)
            acc = jnp.zeros((rows, cols), jnp.float32)
            for ki in range(K):
                # stride-2 row subsample as an exact 0/1 matmul (MXU, no gathers)
                r = jnp.dot(s_ref[ki], a_mm, preferred_element_type=jnp.float32)
                # kj taps + channel contraction via the Toeplitz-expanded weight
                acc = acc + jnp.dot(r.astype(MATMUL_DTYPE), w_ref[ki],
                                    preferred_element_type=jnp.float32)
            # (conv bias skipped: exactly cancelled by training-mode BatchNorm)
            # BatchNorm2d training-mode batch stats, one-pass over (N, OH, OW).
            cnt = float(n * oh * ow)
            csum = jnp.sum(acc, axis=0, keepdims=True)          # (1, OW*OC)
            csq = jnp.sum(acc * acc, axis=0, keepdims=True)     # (1, OW*OC)
            mean = jnp.dot(csum, g_ref[...],
                           preferred_element_type=jnp.float32) / cnt   # (1, OC)
            ex2 = jnp.dot(csq, g_ref[...],
                          preferred_element_type=jnp.float32) / cnt    # (1, OC)
            var = jnp.maximum(ex2 - mean * mean, 0.0)           # one-pass variance
            gamma = bn_ref[0:1, :]
            beta = bn_ref[1:2, :]
            scale = gamma * jax.lax.rsqrt(var + EPS)            # (1, OC)
            shift = beta - mean * scale                         # (1, OC)
            # broadcast per-channel scale/shift back to the (ow, oc) columns
            scale_t = jnp.dot(scale, gt_ref[...], preferred_element_type=jnp.float32)
            shift_t = jnp.dot(shift, gt_ref[...], preferred_element_type=jnp.float32)
            return jnp.maximum(acc * scale_t + shift_t, 0.0)    # (OH*N, OW*OC) f32

        y = conv_bn_relu(x0_ref[...],
                         s1_ref, w1_ref, bn1_ref, g1_ref, gt1_ref, *layer_out_dims[0])
        y = conv_bn_relu(y.astype(MATMUL_DTYPE),
                         s2_ref, w2_ref, bn2_ref, g2_ref, gt2_ref, *layer_out_dims[1])
        y = conv_bn_relu(y.astype(MATMUL_DTYPE),
                         s3_ref, w3_ref, bn3_ref, g3_ref, gt3_ref, *layer_out_dims[2])

        # Linear head (f32), folded into the same kernel.  Layer-3 output rows
        # come in (h, n) blocks of size N; hw_ref[h] holds the matching
        # rearranged head weights, so the PyTorch NCHW flatten order is honored.
        oh3 = layer_out_dims[2][0]
        acc = jnp.broadcast_to(hb_ref[...], (n, out_features)).astype(jnp.float32)
        for h in range(oh3):
            acc = acc + jnp.dot(y[h * n:(h + 1) * n, :], hw_ref[h],
                                preferred_element_type=jnp.float32)
        o_ref[...] = acc

    return kernel


# ---------------------------------------------------------------------------
# Forward wrapper
# ---------------------------------------------------------------------------
def cnn_forward(x_nchw, params):
    """Forward pass; x_nchw is PyTorch-style NCHW float input."""
    x = x_nchw.astype(jnp.float32)
    n, c0, h0, w0 = x.shape

    def conv_size(s):
        return (s - (K - 1) - 1) // STRIDE + 1

    conv_ws = [params["conv1_w"], params["conv2_w"], params["conv3_w"]]
    gammas = [params["bn1_g"], params["bn2_g"], params["bn3_g"]]
    betas = [params["bn1_b"], params["bn2_b"], params["bn3_b"]]
    # params["conv{i}_b"] are accepted but unused: a per-channel bias before a
    # training-mode BatchNorm has exactly zero effect on the forward output.

    dims = []
    h, w, c = h0, w0, c0
    for cw in conv_ws:
        oc = cw.shape[0]
        oh, ow = conv_size(h), conv_size(w)
        dims.append((h, w, c, oh, ow, oc))
        h, w, c = oh, ow, oc
    oh3, ow3, oc3 = dims[-1][3], dims[-1][4], dims[-1][5]
    out_features = params["head_b"].shape[0]

    # --- host-side operand prep (input + weights only; activations never leave
    # VMEM once the kernel starts) ---
    ins = []
    # Input activation in lane-dense (H*N, W*C) layout: [h*N+n, w*C+c] = x[n,c,h,w]
    x0 = jnp.transpose(x, (2, 0, 3, 1)).reshape(h0 * n, w0 * c0)
    x0 = _pad_axis(x0, 1, 128).astype(MATMUL_DTYPE)      # pad contraction dim to 128
    ins.append(x0)

    for li, (h, w, c, oh, ow, oc) in enumerate(dims):
        s_stk = jnp.asarray(_row_select_stack(oh, n, h)).astype(MATMUL_DTYPE)
        w_stk = _toeplitz_weight(conv_ws[li], w, ow)
        if li == 0:
            w_stk = _pad_axis(w_stk, 1, 128)             # match padded x0 columns
        w_stk = w_stk.astype(MATMUL_DTYPE)
        bn = jnp.stack([gammas[li], betas[li]], axis=0).astype(jnp.float32)  # (2, OC)
        g = jnp.asarray(np.tile(np.eye(oc, dtype=np.float32), (ow, 1)))      # (OW*OC, OC)
        gt = jnp.asarray(np.tile(np.eye(oc, dtype=np.float32), (1, ow)))     # (OC, OW*OC)
        ins += [s_stk, w_stk, bn, g, gt]

    # Head weight rearranged so that row-block h of the layer-3 output
    # (columns ow*OC3 + oc) contracts directly:
    #   hw[h][ow*OC3 + oc, o] = head_w[o, oc*OH3*OW3 + h*OW3 + ow]
    hw = params["head_w"].reshape(out_features, oc3, oh3, ow3)
    hw = jnp.transpose(hw, (2, 3, 1, 0)).reshape(oh3, ow3 * oc3, out_features)
    hw = hw.astype(jnp.float32)
    hb = params["head_b"].reshape(1, out_features).astype(jnp.float32)
    ins += [hw, hb]

    kernel = _make_fused_kernel(n, [(d[3], d[4], d[5]) for d in dims], out_features)

    return pl.pallas_call(
        kernel,
        grid=(1,),
        in_specs=_full_specs(*ins),
        out_specs=pl.BlockSpec((n, out_features), lambda i: (0, 0)),
        out_shape=jax.ShapeDtypeStruct((n, out_features), jnp.float32),
        compiler_params=pltpu.CompilerParams(
            dimension_semantics=("arbitrary",),
            vmem_limit_bytes=32 * 1024 * 1024,
        ),
    )(*ins)


# ---------------------------------------------------------------------------
# Deterministic parameter construction (synthetic init, shapes from __init__)
# ---------------------------------------------------------------------------
def init_params(key, h, w, outputs):
    def conv_size(s, k=5, st=2):
        return (s - (k - 1) - 1) // st + 1

    convw = conv_size(conv_size(conv_size(w)))
    convh = conv_size(conv_size(conv_size(h)))
    lin_in = convw * convh * 32

    ks = jax.random.split(key, 8)
    params = {
        "conv1_w": 0.05 * jax.random.normal(ks[0], (16, 3, 5, 5), jnp.float32),
        "conv1_b": 0.01 * jax.random.normal(ks[1], (16,), jnp.float32),
        "bn1_g": jnp.ones((16,), jnp.float32),
        "bn1_b": jnp.zeros((16,), jnp.float32),
        "conv2_w": 0.05 * jax.random.normal(ks[2], (32, 16, 5, 5), jnp.float32),
        "conv2_b": 0.01 * jax.random.normal(ks[3], (32,), jnp.float32),
        "bn2_g": jnp.ones((32,), jnp.float32),
        "bn2_b": jnp.zeros((32,), jnp.float32),
        "conv3_w": 0.05 * jax.random.normal(ks[4], (32, 32, 5, 5), jnp.float32),
        "conv3_b": 0.01 * jax.random.normal(ks[5], (32,), jnp.float32),
        "bn3_g": jnp.ones((32,), jnp.float32),
        "bn3_b": jnp.zeros((32,), jnp.float32),
        "head_w": 0.05 * jax.random.normal(ks[6], (outputs, lin_in), jnp.float32),
        "head_b": 0.01 * jax.random.normal(ks[7], (outputs,), jnp.float32),
    }
    return params


if __name__ == "__main__":
    key = jax.random.PRNGKey(0)
    k_x, k_p = jax.random.split(key)

    B, H, W, OUTPUTS = 2, 36, 36, 4  # 36 -> 16 -> 6 -> 1 spatial after 3 convs
    x = jax.random.normal(k_x, (B, 3, H, W), jnp.float32)  # NCHW like PyTorch
    params = init_params(k_p, H, W, OUTPUTS)

    fwd = jax.jit(cnn_forward)
    out = fwd(x, params)
    jax.block_until_ready(out)

    assert out.shape == (B, OUTPUTS), out.shape
    assert out.dtype == jnp.float32
    print("KERNEL_OK")
</pallas_src>

<mosaic_0001>
module attributes {stable_mosaic.version = 11 : i64} {
  func.func @kernel(%arg0: i32, %arg1: memref<72x128xbf16, #tpu.memory_space<vmem>>, %arg2: memref<5x32x72xbf16, #tpu.memory_space<vmem>>, %arg3: memref<5x128x256xbf16, #tpu.memory_space<vmem>>, %arg4: memref<2x16xf32, #tpu.memory_space<vmem>>, %arg5: memref<256x16xf32, #tpu.memory_space<vmem>>, %arg6: memref<16x256xf32, #tpu.memory_space<vmem>>, %arg7: memref<5x12x32xbf16, #tpu.memory_space<vmem>>, %arg8: memref<5x256x192xbf16, #tpu.memory_space<vmem>>, %arg9: memref<2x32xf32, #tpu.memory_space<vmem>>, %arg10: memref<192x32xf32, #tpu.memory_space<vmem>>, %arg11: memref<32x192xf32, #tpu.memory_space<vmem>>, %arg12: memref<5x2x12xbf16, #tpu.memory_space<vmem>>, %arg13: memref<5x192x32xbf16, #tpu.memory_space<vmem>>, %arg14: memref<2x32xf32, #tpu.memory_space<vmem>>, %arg15: memref<32x32xf32, #tpu.memory_space<vmem>>, %arg16: memref<32x32xf32, #tpu.memory_space<vmem>>, %arg17: memref<1x32x4xf32, #tpu.memory_space<vmem>>, %arg18: memref<1x4xf32, #tpu.memory_space<vmem>>, %arg19: memref<2x4xf32, #tpu.memory_space<vmem>>) attributes {dimension_semantics = [#tpu.dimension_semantics<arbitrary>], iteration_bounds = array<i64: 1>, scalar_prefetch = 0 : i64, scratch_operands = 0 : i64, tpu.core_type = #tpu.core_type<tc>, window_params = [{pipeline_mode = #tpu.pipeline_mode<synchronous>, transform_indices = @transform_0, window_bounds = array<i64: 72, 128>}, {pipeline_mode = #tpu.pipeline_mode<synchronous>, transform_indices = @transform_1, window_bounds = array<i64: 5, 32, 72>}, {pipeline_mode = #tpu.pipeline_mode<synchronous>, transform_indices = @transform_2, window_bounds = array<i64: 5, 128, 256>}, {pipeline_mode = #tpu.pipeline_mode<synchronous>, transform_indices = @transform_3, window_bounds = array<i64: 2, 16>}, {pipeline_mode = #tpu.pipeline_mode<synchronous>, transform_indices = @transform_4, window_bounds = array<i64: 256, 16>}, {pipeline_mode = #tpu.pipeline_mode<synchronous>, transform_indices = @transform_5, window_bounds = array<i64: 16, 256>}, {pipeline_mode = #tpu.pipeline_mode<synchronous>, transform_indices = @transform_6, window_bounds = array<i64: 5, 12, 32>}, {pipeline_mode = #tpu.pipeline_mode<synchronous>, transform_indices = @transform_7, window_bounds = array<i64: 5, 256, 192>}, {pipeline_mode = #tpu.pipeline_mode<synchronous>, transform_indices = @transform_8, window_bounds = array<i64: 2, 32>}, {pipeline_mode = #tpu.pipeline_mode<synchronous>, transform_indices = @transform_9, window_bounds = array<i64: 192, 32>}, {pipeline_mode = #tpu.pipeline_mode<synchronous>, transform_indices = @transform_10, window_bounds = array<i64: 32, 192>}, {pipeline_mode = #tpu.pipeline_mode<synchronous>, transform_indices = @transform_11, window_bounds = array<i64: 5, 2, 12>}, {pipeline_mode = #tpu.pipeline_mode<synchronous>, transform_indices = @transform_12, window_bounds = array<i64: 5, 192, 32>}, {pipeline_mode = #tpu.pipeline_mode<synchronous>, transform_indices = @transform_13, window_bounds = array<i64: 2, 32>}, {pipeline_mode = #tpu.pipeline_mode<synchronous>, transform_indices = @transform_14, window_bounds = array<i64: 32, 32>}, {pipeline_mode = #tpu.pipeline_mode<synchronous>, transform_indices = @transform_15, window_bounds = array<i64: 32, 32>}, {pipeline_mode = #tpu.pipeline_mode<synchronous>, transform_indices = @transform_16, window_bounds = array<i64: 1, 32, 4>}, {pipeline_mode = #tpu.pipeline_mode<synchronous>, transform_indices = @transform_17, window_bounds = array<i64: 1, 4>}, {pipeline_mode = #tpu.pipeline_mode<synchronous>, transform_indices = @transform_18, window_bounds = array<i64: 2, 4>}]} {
    %c0 = arith.constant 0 : index
    %c0_0 = arith.constant 0 : index
    %0 = vector.load %arg1[%c0, %c0_0] : memref<72x128xbf16, #tpu.memory_space<vmem>>, vector<72x128xbf16>
    %cst = arith.constant 0.000000e+00 : f32
    %1 = vector.broadcast %cst : f32 to vector<32x256xf32>
    %c0_1 = arith.constant 0 : index
    %c0_2 = arith.constant 0 : index
    %c0_3 = arith.constant 0 : index
    %2 = vector.load %arg2[%c0_1, %c0_2, %c0_3] : memref<5x32x72xbf16, #tpu.memory_space<vmem>>, vector<1x32x72xbf16>
    %3 = vector.shape_cast %2 : vector<1x32x72xbf16> to vector<32x72xbf16>
    %cst_4 = arith.constant dense<0.000000e+00> : vector<32x128xf32>
    %4 = tpu.matmul %3, %0, %cst_4 {dimension_numbers = #tpu.dot_dimension_numbers<[1], [0], [0], [1], [0, 0, 1, 1], [], []>} : vector<32x72xbf16>, vector<72x128xbf16>, vector<32x128xf32> -> vector<32x128xf32>
    %5 = arith.truncf %4 : vector<32x128xf32> to vector<32x128xbf16>
    %c0_5 = arith.constant 0 : index
    %c0_6 = arith.constant 0 : index
    %c0_7 = arith.constant 0 : index
    %6 = vector.load %arg3[%c0_5, %c0_6, %c0_7] : memref<5x128x256xbf16, #tpu.memory_space<vmem>>, vector<1x128x256xbf16>
    %7 = vector.shape_cast %6 : vector<1x128x256xbf16> to vector<128x256xbf16>
    %cst_8 = arith.constant dense<0.000000e+00> : vector<32x256xf32>
    %8 = tpu.matmul %5, %7, %cst_8 {dimension_numbers = #tpu.dot_dimension_numbers<[1], [0], [0], [1], [0, 0, 1, 1], [], []>} : vector<32x128xbf16>, vector<128x256xbf16>, vector<32x256xf32> -> vector<32x256xf32>
    %9 = arith.addf %1, %8 : vector<32x256xf32>
    %c1 = arith.constant 1 : index
    %c0_9 = arith.constant 0 : index
    %c0_10 = arith.constant 0 : index
    %10 = vector.load %arg2[%c1, %c0_9, %c0_10] : memref<5x32x72xbf16, #tpu.memory_space<vmem>>, vector<1x32x72xbf16>
    %11 = vector.shape_cast %10 : vector<1x32x72xbf16> to vector<32x72xbf16>
    %cst_11 = arith.constant dense<0.000000e+00> : vector<32x128xf32>
    %12 = tpu.matmul %11, %0, %cst_11 {dimension_numbers = #tpu.dot_dimension_numbers<[1], [0], [0], [1], [0, 0, 1, 1], [], []>} : vector<32x72xbf16>, vector<72x128xbf16>, vector<32x128xf32> -> vector<32x128xf32>
    %13 = arith.truncf %12 : vector<32x128xf32> to vector<32x128xbf16>
    %c1_12 = arith.constant 1 : index
    %c0_13 = arith.constant 0 : index
    %c0_14 = arith.constant 0 : index
    %14 = vector.load %arg3[%c1_12, %c0_13, %c0_14] : memref<5x128x256xbf16, #tpu.memory_space<vmem>>, vector<1x128x256xbf16>
    %15 = vector.shape_cast %14 : vector<1x128x256xbf16> to vector<128x256xbf16>
    %cst_15 = arith.constant dense<0.000000e+00> : vector<32x256xf32>
    %16 = tpu.matmul %13, %15, %cst_15 {dimension_numbers = #tpu.dot_dimension_numbers<[1], [0], [0], [1], [0, 0, 1, 1], [], []>} : vector<32x128xbf16>, vector<128x256xbf16>, vector<32x256xf32> -> vector<32x256xf32>
    %17 = arith.addf %9, %16 : vector<32x256xf32>
    %c2 = arith.constant 2 : index
    %c0_16 = arith.constant 0 : index
    %c0_17 = arith.constant 0 : index
    %18 = vector.load %arg2[%c2, %c0_16, %c0_17] : memref<5x32x72xbf16, #tpu.memory_space<vmem>>, vector<1x32x72xbf16>
    %19 = vector.shape_cast %18 : vector<1x32x72xbf16> to vector<32x72xbf16>
    %cst_18 = arith.constant dense<0.000000e+00> : vector<32x128xf32>
    %20 = tpu.matmul %19, %0, %cst_18 {dimension_numbers = #tpu.dot_dimension_numbers<[1], [0], [0], [1], [0, 0, 1, 1], [], []>} : vector<32x72xbf16>, vector<72x128xbf16>, vector<32x128xf32> -> vector<32x128xf32>
    %21 = arith.truncf %20 : vector<32x128xf32> to vector<32x128xbf16>
    %c2_19 = arith.constant 2 : index
    %c0_20 = arith.constant 0 : index
    %c0_21 = arith.constant 0 : index
    %22 = vector.load %arg3[%c2_19, %c0_20, %c0_21] : memref<5x128x256xbf16, #tpu.memory_space<vmem>>, vector<1x128x256xbf16>
    %23 = vector.shape_cast %22 : vector<1x128x256xbf16> to vector<128x256xbf16>
    %cst_22 = arith.constant dense<0.000000e+00> : vector<32x256xf32>
    %24 = tpu.matmul %21, %23, %cst_22 {dimension_numbers = #tpu.dot_dimension_numbers<[1], [0], [0], [1], [0, 0, 1, 1], [], []>} : vector<32x128xbf16>, vector<128x256xbf16>, vector<32x256xf32> -> vector<32x256xf32>
    %25 = arith.addf %17, %24 : vector<32x256xf32>
    %c3 = arith.constant 3 : index
    %c0_23 = arith.constant 0 : index
    %c0_24 = arith.constant 0 : index
    %26 = vector.load %arg2[%c3, %c0_23, %c0_24] : memref<5x32x72xbf16, #tpu.memory_space<vmem>>, vector<1x32x72xbf16>
    %27 = vector.shape_cast %26 : vector<1x32x72xbf16> to vector<32x72xbf16>
    %cst_25 = arith.constant dense<0.000000e+00> : vector<32x128xf32>
    %28 = tpu.matmul %27, %0, %cst_25 {dimension_numbers = #tpu.dot_dimension_numbers<[1], [0], [0], [1], [0, 0, 1, 1], [], []>} : vector<32x72xbf16>, vector<72x128xbf16>, vector<32x128xf32> -> vector<32x128xf32>
    %29 = arith.truncf %28 : vector<32x128xf32> to vector<32x128xbf16>
    %c3_26 = arith.constant 3 : index
    %c0_27 = arith.constant 0 : index
    %c0_28 = arith.constant 0 : index
    %30 = vector.load %arg3[%c3_26, %c0_27, %c0_28] : memref<5x128x256xbf16, #tpu.memory_space<vmem>>, vector<1x128x256xbf16>
    %31 = vector.shape_cast %30 : vector<1x128x256xbf16> to vector<128x256xbf16>
    %cst_29 = arith.constant dense<0.000000e+00> : vector<32x256xf32>
    %32 = tpu.matmul %29, %31, %cst_29 {dimension_numbers = #tpu.dot_dimension_numbers<[1], [0], [0], [1], [0, 0, 1, 1], [], []>} : vector<32x128xbf16>, vector<128x256xbf16>, vector<32x256xf32> -> vector<32x256xf32>
    %33 = arith.addf %25, %32 : vector<32x256xf32>
    %c4 = arith.constant 4 : index
    %c0_30 = arith.constant 0 : index
    %c0_31 = arith.constant 0 : index
    %34 = vector.load %arg2[%c4, %c0_30, %c0_31] : memref<5x32x72xbf16, #tpu.memory_space<vmem>>, vector<1x32x72xbf16>
    %35 = vector.shape_cast %34 : vector<1x32x72xbf16> to vector<32x72xbf16>
    %cst_32 = arith.constant dense<0.000000e+00> : vector<32x128xf32>
    %36 = tpu.matmul %35, %0, %cst_32 {dimension_numbers = #tpu.dot_dimension_numbers<[1], [0], [0], [1], [0, 0, 1, 1], [], []>} : vector<32x72xbf16>, vector<72x128xbf16>, vector<32x128xf32> -> vector<32x128xf32>
    %37 = arith.truncf %36 : vector<32x128xf32> to vector<32x128xbf16>
    %c4_33 = arith.constant 4 : index
    %c0_34 = arith.constant 0 : index
    %c0_35 = arith.constant 0 : index
    %38 = vector.load %arg3[%c4_33, %c0_34, %c0_35] : memref<5x128x256xbf16, #tpu.memory_space<vmem>>, vector<1x128x256xbf16>
    %39 = vector.shape_cast %38 : vector<1x128x256xbf16> to vector<128x256xbf16>
    %cst_36 = arith.constant dense<0.000000e+00> : vector<32x256xf32>
    %40 = tpu.matmul %37, %39, %cst_36 {dimension_numbers = #tpu.dot_dimension_numbers<[1], [0], [0], [1], [0, 0, 1, 1], [], []>} : vector<32x128xbf16>, vector<128x256xbf16>, vector<32x256xf32> -> vector<32x256xf32>
    %41 = arith.addf %33, %40 : vector<32x256xf32>
    %cst_37 = arith.constant dense<0.000000e+00> : vector<256xf32>
    %42 = vector.multi_reduction <add>, %41, %cst_37 [0] : vector<32x256xf32> to vector<256xf32>
    %43 = vector.shape_cast %42 : vector<256xf32> to vector<1x256xf32>
    %44 = arith.mulf %41, %41 : vector<32x256xf32>
    %cst_38 = arith.constant dense<0.000000e+00> : vector<256xf32>
    %45 = vector.multi_reduction <add>, %44, %cst_38 [0] : vector<32x256xf32> to vector<256xf32>
    %46 = vector.shape_cast %45 : vector<256xf32> to vector<1x256xf32>
    %c0_39 = arith.constant 0 : index
    %c0_40 = arith.constant 0 : index
    %47 = vector.load %arg5[%c0_39, %c0_40] : memref<256x16xf32, #tpu.memory_space<vmem>>, vector<256x16xf32>
    %cst_41 = arith.constant dense<0.000000e+00> : vector<1x16xf32>
    %48 = tpu.matmul %43, %47, %cst_41 {dimension_numbers = #tpu.dot_dimension_numbers<[1], [0], [0], [1], [0, 0, 1, 1], [], []>} : vector<1x256xf32>, vector<256x16xf32>, vector<1x16xf32> -> vector<1x16xf32>
    %cst_42 = arith.constant 5.120000e+02 : f32
    %49 = vector.broadcast %cst_42 : f32 to vector<1x16xf32>
    %50 = arith.divf %48, %49 : vector<1x16xf32>
    %c0_43 = arith.constant 0 : index
    %c0_44 = arith.constant 0 : index
    %51 = vector.load %arg5[%c0_43, %c0_44] : memref<256x16xf32, #tpu.memory_space<vmem>>, vector<256x16xf32>
    %cst_45 = arith.constant dense<0.000000e+00> : vector<1x16xf32>
    %52 = tpu.matmul %46, %51, %cst_45 {dimension_numbers = #tpu.dot_dimension_numbers<[1], [0], [0], [1], [0, 0, 1, 1], [], []>} : vector<1x256xf32>, vector<256x16xf32>, vector<1x16xf32> -> vector<1x16xf32>
    %cst_46 = arith.constant 5.120000e+02 : f32
    %53 = vector.broadcast %cst_46 : f32 to vector<1x16xf32>
    %54 = arith.divf %52, %53 : vector<1x16xf32>
    %55 = arith.mulf %50, %50 : vector<1x16xf32>
    %56 = arith.subf %54, %55 : vector<1x16xf32>
    %cst_47 = arith.constant 0.000000e+00 : f32
    %57 = vector.broadcast %cst_47 : f32 to vector<1x16xf32>
    %58 = arith.maximumf %56, %57 : vector<1x16xf32>
    %c0_48 = arith.constant 0 : index
    %c0_49 = arith.constant 0 : index
    %59 = vector.load %arg4[%c0_48, %c0_49] : memref<2x16xf32, #tpu.memory_space<vmem>>, vector<1x16xf32>
    %c1_50 = arith.constant 1 : index
    %c0_51 = arith.constant 0 : index
    %60 = vector.load %arg4[%c1_50, %c0_51] : memref<2x16xf32, #tpu.memory_space<vmem>>, vector<1x16xf32>
    %cst_52 = arith.constant 9.99999974E-6 : f32
    %61 = vector.broadcast %cst_52 : f32 to vector<1x16xf32>
    %62 = arith.addf %58, %61 : vector<1x16xf32>
    %63 = math.rsqrt %62 : vector<1x16xf32>
    %64 = arith.mulf %59, %63 : vector<1x16xf32>
    %65 = arith.mulf %50, %64 : vector<1x16xf32>
    %66 = arith.subf %60, %65 : vector<1x16xf32>
    %c0_53 = arith.constant 0 : index
    %c0_54 = arith.constant 0 : index
    %67 = vector.load %arg6[%c0_53, %c0_54] : memref<16x256xf32, #tpu.memory_space<vmem>>, vector<16x256xf32>
    %cst_55 = arith.constant dense<0.000000e+00> : vector<1x256xf32>
    %68 = tpu.matmul %64, %67, %cst_55 {dimension_numbers = #tpu.dot_dimension_numbers<[1], [0], [0], [1], [0, 0, 1, 1], [], []>} : vector<1x16xf32>, vector<16x256xf32>, vector<1x256xf32> -> vector<1x256xf32>
    %c0_56 = arith.constant 0 : index
    %c0_57 = arith.constant 0 : index
    %69 = vector.load %arg6[%c0_56, %c0_57] : memref<16x256xf32, #tpu.memory_space<vmem>>, vector<16x256xf32>
    %cst_58 = arith.constant dense<0.000000e+00> : vector<1x256xf32>
    %70 = tpu.matmul %66, %69, %cst_58 {dimension_numbers = #tpu.dot_dimension_numbers<[1], [0], [0], [1], [0, 0, 1, 1], [], []>} : vector<1x16xf32>, vector<16x256xf32>, vector<1x256xf32> -> vector<1x256xf32>
    %71 = vector.broadcast %68 : vector<1x256xf32> to vector<32x256xf32>
    %72 = arith.mulf %41, %71 : vector<32x256xf32>
    %73 = vector.broadcast %70 : vector<1x256xf32> to vector<32x256xf32>
    %74 = arith.addf %72, %73 : vector<32x256xf32>
    %cst_59 = arith.constant 0.000000e+00 : f32
    %75 = vector.broadcast %cst_59 : f32 to vector<32x256xf32>
    %76 = arith.maximumf %74, %75 : vector<32x256xf32>
    %77 = arith.truncf %76 : vector<32x256xf32> to vector<32x256xbf16>
    %cst_60 = arith.constant 0.000000e+00 : f32
    %78 = vector.broadcast %cst_60 : f32 to vector<12x192xf32>
    %c0_61 = arith.constant 0 : index
    %c0_62 = arith.constant 0 : index
    %c0_63 = arith.constant 0 : index
    %79 = vector.load %arg7[%c0_61, %c0_62, %c0_63] : memref<5x12x32xbf16, #tpu.memory_space<vmem>>, vector<1x12x32xbf16>
    %80 = vector.shape_cast %79 : vector<1x12x32xbf16> to vector<12x32xbf16>
    %cst_64 = arith.constant dense<0.000000e+00> : vector<12x256xf32>
    %81 = tpu.matmul %80, %77, %cst_64 {dimension_numbers = #tpu.dot_dimension_numbers<[1], [0], [0], [1], [0, 0, 1, 1], [], []>} : vector<12x32xbf16>, vector<32x256xbf16>, vector<12x256xf32> -> vector<12x256xf32>
    %82 = arith.truncf %81 : vector<12x256xf32> to vector<12x256xbf16>
    %c0_65 = arith.constant 0 : index
    %c0_66 = arith.constant 0 : index
    %c0_67 = arith.constant 0 : index
    %83 = vector.load %arg8[%c0_65, %c0_66, %c0_67] : memref<5x256x192xbf16, #tpu.memory_space<vmem>>, vector<1x256x192xbf16>
    %84 = vector.shape_cast %83 : vector<1x256x192xbf16> to vector<256x192xbf16>
    %cst_68 = arith.constant dense<0.000000e+00> : vector<12x192xf32>
    %85 = tpu.matmul %82, %84, %cst_68 {dimension_numbers = #tpu.dot_dimension_numbers<[1], [0], [0], [1], [0, 0, 1, 1], [], []>} : vector<12x256xbf16>, vector<256x192xbf16>, vector<12x192xf32> -> vector<12x192xf32>
    %86 = arith.addf %78, %85 : vector<12x192xf32>
    %c1_69 = arith.constant 1 : index
    %c0_70 = arith.constant 0 : index
    %c0_71 = arith.constant 0 : index
    %87 = vector.load %arg7[%c1_69, %c0_70, %c0_71] : memref<5x12x32xbf16, #tpu.memory_space<vmem>>, vector<1x12x32xbf16>
    %88 = vector.shape_cast %87 : vector<1x12x32xbf16> to vector<12x32xbf16>
    %cst_72 = arith.constant dense<0.000000e+00> : vector<12x256xf32>
    %89 = tpu.matmul %88, %77, %cst_72 {dimension_numbers = #tpu.dot_dimension_numbers<[1], [0], [0], [1], [0, 0, 1, 1], [], []>} : vector<12x32xbf16>, vector<32x256xbf16>, vector<12x256xf32> -> vector<12x256xf32>
    %90 = arith.truncf %89 : vector<12x256xf32> to vector<12x256xbf16>
    %c1_73 = arith.constant 1 : index
    %c0_74 = arith.constant 0 : index
    %c0_75 = arith.constant 0 : index
    %91 = vector.load %arg8[%c1_73, %c0_74, %c0_75] : memref<5x256x192xbf16, #tpu.memory_space<vmem>>, vector<1x256x192xbf16>
    %92 = vector.shape_cast %91 : vector<1x256x192xbf16> to vector<256x192xbf16>
    %cst_76 = arith.constant dense<0.000000e+00> : vector<12x192xf32>
    %93 = tpu.matmul %90, %92, %cst_76 {dimension_numbers = #tpu.dot_dimension_numbers<[1], [0], [0], [1], [0, 0, 1, 1], [], []>} : vector<12x256xbf16>, vector<256x192xbf16>, vector<12x192xf32> -> vector<12x192xf32>
    %94 = arith.addf %86, %93 : vector<12x192xf32>
    %c2_77 = arith.constant 2 : index
    %c0_78 = arith.constant 0 : index
    %c0_79 = arith.constant 0 : index
    %95 = vector.load %arg7[%c2_77, %c0_78, %c0_79] : memref<5x12x32xbf16, #tpu.memory_space<vmem>>, vector<1x12x32xbf16>
    %96 = vector.shape_cast %95 : vector<1x12x32xbf16> to vector<12x32xbf16>
    %cst_80 = arith.constant dense<0.000000e+00> : vector<12x256xf32>
    %97 = tpu.matmul %96, %77, %cst_80 {dimension_numbers = #tpu.dot_dimension_numbers<[1], [0], [0], [1], [0, 0, 1, 1], [], []>} : vector<12x32xbf16>, vector<32x256xbf16>, vector<12x256xf32> -> vector<12x256xf32>
    %98 = arith.truncf %97 : vector<12x256xf32> to vector<12x256xbf16>
    %c2_81 = arith.constant 2 : index
    %c0_82 = arith.constant 0 : index
    %c0_83 = arith.constant 0 : index
    %99 = vector.load %arg8[%c2_81, %c0_82, %c0_83] : memref<5x256x192xbf16, #tpu.memory_space<vmem>>, vector<1x256x192xbf16>
    %100 = vector.shape_cast %99 : vector<1x256x192xbf16> to vector<256x192xbf16>
    %cst_84 = arith.constant dense<0.000000e+00> : vector<12x192xf32>
    %101 = tpu.matmul %98, %100, %cst_84 {dimension_numbers = #tpu.dot_dimension_numbers<[1], [0], [0], [1], [0, 0, 1, 1], [], []>} : vector<12x256xbf16>, vector<256x192xbf16>, vector<12x192xf32> -> vector<12x192xf32>
    %102 = arith.addf %94, %101 : vector<12x192xf32>
    %c3_85 = arith.constant 3 : index
    %c0_86 = arith.constant 0 : index
    %c0_87 = arith.constant 0 : index
    %103 = vector.load %arg7[%c3_85, %c0_86, %c0_87] : memref<5x12x32xbf16, #tpu.memory_space<vmem>>, vector<1x12x32xbf16>
    %104 = vector.shape_cast %103 : vector<1x12x32xbf16> to vector<12x32xbf16>
    %cst_88 = arith.constant dense<0.000000e+00> : vector<12x256xf32>
    %105 = tpu.matmul %104, %77, %cst_88 {dimension_numbers = #tpu.dot_dimension_numbers<[1], [0], [0], [1], [0, 0, 1, 1], [], []>} : vector<12x32xbf16>, vector<32x256xbf16>, vector<12x256xf32> -> vector<12x256xf32>
    %106 = arith.truncf %105 : vector<12x256xf32> to vector<12x256xbf16>
    %c3_89 = arith.constant 3 : index
    %c0_90 = arith.constant 0 : index
    %c0_91 = arith.constant 0 : index
    %107 = vector.load %arg8[%c3_89, %c0_90, %c0_91] : memref<5x256x192xbf16, #tpu.memory_space<vmem>>, vector<1x256x192xbf16>
    %108 = vector.shape_cast %107 : vector<1x256x192xbf16> to vector<256x192xbf16>
    %cst_92 = arith.constant dense<0.000000e+00> : vector<12x192xf32>
    %109 = tpu.matmul %106, %108, %cst_92 {dimension_numbers = #tpu.dot_dimension_numbers<[1], [0], [0], [1], [0, 0, 1, 1], [], []>} : vector<12x256xbf16>, vector<256x192xbf16>, vector<12x192xf32> -> vector<12x192xf32>
    %110 = arith.addf %102, %109 : vector<12x192xf32>
    %c4_93 = arith.constant 4 : index
    %c0_94 = arith.constant 0 : index
    %c0_95 = arith.constant 0 : index
    %111 = vector.load %arg7[%c4_93, %c0_94, %c0_95] : memref<5x12x32xbf16, #tpu.memory_space<vmem>>, vector<1x12x32xbf16>
    %112 = vector.shape_cast %111 : vector<1x12x32xbf16> to vector<12x32xbf16>
    %cst_96 = arith.constant dense<0.000000e+00> : vector<12x256xf32>
    %113 = tpu.matmul %112, %77, %cst_96 {dimension_numbers = #tpu.dot_dimension_numbers<[1], [0], [0], [1], [0, 0, 1, 1], [], []>} : vector<12x32xbf16>, vector<32x256xbf16>, vector<12x256xf32> -> vector<12x256xf32>
    %114 = arith.truncf %113 : vector<12x256xf32> to vector<12x256xbf16>
    %c4_97 = arith.constant 4 : index
    %c0_98 = arith.constant 0 : index
    %c0_99 = arith.constant 0 : index
    %115 = vector.load %arg8[%c4_97, %c0_98, %c0_99] : memref<5x256x192xbf16, #tpu.memory_space<vmem>>, vector<1x256x192xbf16>
    %116 = vector.shape_cast %115 : vector<1x256x192xbf16> to vector<256x192xbf16>
    %cst_100 = arith.constant dense<0.000000e+00> : vector<12x192xf32>
    %117 = tpu.matmul %114, %116, %cst_100 {dimension_numbers = #tpu.dot_dimension_numbers<[1], [0], [0], [1], [0, 0, 1, 1], [], []>} : vector<12x256xbf16>, vector<256x192xbf16>, vector<12x192xf32> -> vector<12x192xf32>
    %118 = arith.addf %110, %117 : vector<12x192xf32>
    %cst_101 = arith.constant dense<0.000000e+00> : vector<192xf32>
    %119 = vector.multi_reduction <add>, %118, %cst_101 [0] : vector<12x192xf32> to vector<192xf32>
    %120 = vector.shape_cast %119 : vector<192xf32> to vector<1x192xf32>
    %121 = arith.mulf %118, %118 : vector<12x192xf32>
    %cst_102 = arith.constant dense<0.000000e+00> : vector<192xf32>
    %122 = vector.multi_reduction <add>, %121, %cst_102 [0] : vector<12x192xf32> to vector<192xf32>
    %123 = vector.shape_cast %122 : vector<192xf32> to vector<1x192xf32>
    %c0_103 = arith.constant 0 : index
    %c0_104 = arith.constant 0 : index
    %124 = vector.load %arg10[%c0_103, %c0_104] : memref<192x32xf32, #tpu.memory_space<vmem>>, vector<192x32xf32>
    %cst_105 = arith.constant dense<0.000000e+00> : vector<1x32xf32>
    %125 = tpu.matmul %120, %124, %cst_105 {dimension_numbers = #tpu.dot_dimension_numbers<[1], [0], [0], [1], [0, 0, 1, 1], [], []>} : vector<1x192xf32>, vector<192x32xf32>, vector<1x32xf32> -> vector<1x32xf32>
    %cst_106 = arith.constant 7.200000e+01 : f32
    %126 = vector.broadcast %cst_106 : f32 to vector<1x32xf32>
    %127 = arith.divf %125, %126 : vector<1x32xf32>
    %c0_107 = arith.constant 0 : index
    %c0_108 = arith.constant 0 : index
    %128 = vector.load %arg10[%c0_107, %c0_108] : memref<192x32xf32, #tpu.memory_space<vmem>>, vector<192x32xf32>
    %cst_109 = arith.constant dense<0.000000e+00> : vector<1x32xf32>
    %129 = tpu.matmul %123, %128, %cst_109 {dimension_numbers = #tpu.dot_dimension_numbers<[1], [0], [0], [1], [0, 0, 1, 1], [], []>} : vector<1x192xf32>, vector<192x32xf32>, vector<1x32xf32> -> vector<1x32xf32>
    %cst_110 = arith.constant 7.200000e+01 : f32
    %130 = vector.broadcast %cst_110 : f32 to vector<1x32xf32>
    %131 = arith.divf %129, %130 : vector<1x32xf32>
    %132 = arith.mulf %127, %127 : vector<1x32xf32>
    %133 = arith.subf %131, %132 : vector<1x32xf32>
    %cst_111 = arith.constant 0.000000e+00 : f32
    %134 = vector.broadcast %cst_111 : f32 to vector<1x32xf32>
    %135 = arith.maximumf %133, %134 : vector<1x32xf32>
    %c0_112 = arith.constant 0 : index
    %c0_113 = arith.constant 0 : index
    %136 = vector.load %arg9[%c0_112, %c0_113] : memref<2x32xf32, #tpu.memory_space<vmem>>, vector<1x32xf32>
    %c1_114 = arith.constant 1 : index
    %c0_115 = arith.constant 0 : index
    %137 = vector.load %arg9[%c1_114, %c0_115] : memref<2x32xf32, #tpu.memory_space<vmem>>, vector<1x32xf32>
    %cst_116 = arith.constant 9.99999974E-6 : f32
    %138 = vector.broadcast %cst_116 : f32 to vector<1x32xf32>
    %139 = arith.addf %135, %138 : vector<1x32xf32>
    %140 = math.rsqrt %139 : vector<1x32xf32>
    %141 = arith.mulf %136, %140 : vector<1x32xf32>
    %142 = arith.mulf %127, %141 : vector<1x32xf32>
    %143 = arith.subf %137, %142 : vector<1x32xf32>
    %c0_117 = arith.constant 0 : index
    %c0_118 = arith.constant 0 : index
    %144 = vector.load %arg11[%c0_117, %c0_118] : memref<32x192xf32, #tpu.memory_space<vmem>>, vector<32x192xf32>
    %cst_119 = arith.constant dense<0.000000e+00> : vector<1x192xf32>
    %145 = tpu.matmul %141, %144, %cst_119 {dimension_numbers = #tpu.dot_dimension_numbers<[1], [0], [0], [1], [0, 0, 1, 1], [], []>} : vector<1x32xf32>, vector<32x192xf32>, vector<1x192xf32> -> vector<1x192xf32>
    %c0_120 = arith.constant 0 : index
    %c0_121 = arith.constant 0 : index
    %146 = vector.load %arg11[%c0_120, %c0_121] : memref<32x192xf32, #tpu.memory_space<vmem>>, vector<32x192xf32>
    %cst_122 = arith.constant dense<0.000000e+00> : vector<1x192xf32>
    %147 = tpu.matmul %143, %146, %cst_122 {dimension_numbers = #tpu.dot_dimension_numbers<[1], [0], [0], [1], [0, 0, 1, 1], [], []>} : vector<1x32xf32>, vector<32x192xf32>, vector<1x192xf32> -> vector<1x192xf32>
    %148 = vector.broadcast %145 : vector<1x192xf32> to vector<12x192xf32>
    %149 = arith.mulf %118, %148 : vector<12x192xf32>
    %150 = vector.broadcast %147 : vector<1x192xf32> to vector<12x192xf32>
    %151 = arith.addf %149, %150 : vector<12x192xf32>
    %cst_123 = arith.constant 0.000000e+00 : f32
    %152 = vector.broadcast %cst_123 : f32 to vector<12x192xf32>
    %153 = arith.maximumf %151, %152 : vector<12x192xf32>
    %154 = arith.truncf %153 : vector<12x192xf32> to vector<12x192xbf16>
    %cst_124 = arith.constant 0.000000e+00 : f32
    %155 = vector.broadcast %cst_124 : f32 to vector<2x32xf32>
    %c0_125 = arith.constant 0 : index
    %c0_126 = arith.constant 0 : index
    %c0_127 = arith.constant 0 : index
    %156 = vector.load %arg12[%c0_125, %c0_126, %c0_127] : memref<5x2x12xbf16, #tpu.memory_space<vmem>>, vector<1x2x12xbf16>
    %157 = vector.shape_cast %156 : vector<1x2x12xbf16> to vector<2x12xbf16>
    %cst_128 = arith.constant dense<0.000000e+00> : vector<2x192xf32>
    %158 = tpu.matmul %157, %154, %cst_128 {dimension_numbers = #tpu.dot_dimension_numbers<[1], [0], [0], [1], [0, 0, 1, 1], [], []>} : vector<2x12xbf16>, vector<12x192xbf16>, vector<2x192xf32> -> vector<2x192xf32>
    %159 = arith.truncf %158 : vector<2x192xf32> to vector<2x192xbf16>
    %c0_129 = arith.constant 0 : index
    %c0_130 = arith.constant 0 : index
    %c0_131 = arith.constant 0 : index
    %160 = vector.load %arg13[%c0_129, %c0_130, %c0_131] : memref<5x192x32xbf16, #tpu.memory_space<vmem>>, vector<1x192x32xbf16>
    %161 = vector.shape_cast %160 : vector<1x192x32xbf16> to vector<192x32xbf16>
    %cst_132 = arith.constant dense<0.000000e+00> : vector<2x32xf32>
    %162 = tpu.matmul %159, %161, %cst_132 {dimension_numbers = #tpu.dot_dimension_numbers<[1], [0], [0], [1], [0, 0, 1, 1], [], []>} : vector<2x192xbf16>, vector<192x32xbf16>, vector<2x32xf32> -> vector<2x32xf32>
    %163 = arith.addf %155, %162 : vector<2x32xf32>
    %c1_133 = arith.constant 1 : index
    %c0_134 = arith.constant 0 : index
    %c0_135 = arith.constant 0 : index
    %164 = vector.load %arg12[%c1_133, %c0_134, %c0_135] : memref<5x2x12xbf16, #tpu.memory_space<vmem>>, vector<1x2x12xbf16>
    %165 = vector.shape_cast %164 : vector<1x2x12xbf16> to vector<2x12xbf16>
    %cst_136 = arith.constant dense<0.000000e+00> : vector<2x192xf32>
    %166 = tpu.matmul %165, %154, %cst_136 {dimension_numbers = #tpu.dot_dimension_numbers<[1], [0], [0], [1], [0, 0, 1, 1], [], []>} : vector<2x12xbf16>, vector<12x192xbf16>, vector<2x192xf32> -> vector<2x192xf32>
    %167 = arith.truncf %166 : vector<2x192xf32> to vector<2x192xbf16>
    %c1_137 = arith.constant 1 : index
    %c0_138 = arith.constant 0 : index
    %c0_139 = arith.constant 0 : index
    %168 = vector.load %arg13[%c1_137, %c0_138, %c0_139] : memref<5x192x32xbf16, #tpu.memory_space<vmem>>, vector<1x192x32xbf16>
    %169 = vector.shape_cast %168 : vector<1x192x32xbf16> to vector<192x32xbf16>
    %cst_140 = arith.constant dense<0.000000e+00> : vector<2x32xf32>
    %170 = tpu.matmul %167, %169, %cst_140 {dimension_numbers = #tpu.dot_dimension_numbers<[1], [0], [0], [1], [0, 0, 1, 1], [], []>} : vector<2x192xbf16>, vector<192x32xbf16>, vector<2x32xf32> -> vector<2x32xf32>
    %171 = arith.addf %163, %170 : vector<2x32xf32>
    %c2_141 = arith.constant 2 : index
    %c0_142 = arith.constant 0 : index
    %c0_143 = arith.constant 0 : index
    %172 = vector.load %arg12[%c2_141, %c0_142, %c0_143] : memref<5x2x12xbf16, #tpu.memory_space<vmem>>, vector<1x2x12xbf16>
    %173 = vector.shape_cast %172 : vector<1x2x12xbf16> to vector<2x12xbf16>
    %cst_144 = arith.constant dense<0.000000e+00> : vector<2x192xf32>
    %174 = tpu.matmul %173, %154, %cst_144 {dimension_numbers = #tpu.dot_dimension_numbers<[1], [0], [0], [1], [0, 0, 1, 1], [], []>} : vector<2x12xbf16>, vector<12x192xbf16>, vector<2x192xf32> -> vector<2x192xf32>
    %175 = arith.truncf %174 : vector<2x192xf32> to vector<2x192xbf16>
    %c2_145 = arith.constant 2 : index
    %c0_146 = arith.constant 0 : index
    %c0_147 = arith.constant 0 : index
    %176 = vector.load %arg13[%c2_145, %c0_146, %c0_147] : memref<5x192x32xbf16, #tpu.memory_space<vmem>>, vector<1x192x32xbf16>
    %177 = vector.shape_cast %176 : vector<1x192x32xbf16> to vector<192x32xbf16>
    %cst_148 = arith.constant dense<0.000000e+00> : vector<2x32xf32>
    %178 = tpu.matmul %175, %177, %cst_148 {dimension_numbers = #tpu.dot_dimension_numbers<[1], [0], [0], [1], [0, 0, 1, 1], [], []>} : vector<2x192xbf16>, vector<192x32xbf16>, vector<2x32xf32> -> vector<2x32xf32>
    %179 = arith.addf %171, %178 : vector<2x32xf32>
    %c3_149 = arith.constant 3 : index
    %c0_150 = arith.constant 0 : index
    %c0_151 = arith.constant 0 : index
    %180 = vector.load %arg12[%c3_149, %c0_150, %c0_151] : memref<5x2x12xbf16, #tpu.memory_space<vmem>>, vector<1x2x12xbf16>
    %181 = vector.shape_cast %180 : vector<1x2x12xbf16> to vector<2x12xbf16>
    %cst_152 = arith.constant dense<0.000000e+00> : vector<2x192xf32>
    %182 = tpu.matmul %181, %154, %cst_152 {dimension_numbers = #tpu.dot_dimension_numbers<[1], [0], [0], [1], [0, 0, 1, 1], [], []>} : vector<2x12xbf16>, vector<12x192xbf16>, vector<2x192xf32> -> vector<2x192xf32>
    %183 = arith.truncf %182 : vector<2x192xf32> to vector<2x192xbf16>
    %c3_153 = arith.constant 3 : index
    %c0_154 = arith.constant 0 : index
    %c0_155 = arith.constant 0 : index
    %184 = vector.load %arg13[%c3_153, %c0_154, %c0_155] : memref<5x192x32xbf16, #tpu.memory_space<vmem>>, vector<1x192x32xbf16>
    %185 = vector.shape_cast %184 : vector<1x192x32xbf16> to vector<192x32xbf16>
    %cst_156 = arith.constant dense<0.000000e+00> : vector<2x32xf32>
    %186 = tpu.matmul %183, %185, %cst_156 {dimension_numbers = #tpu.dot_dimension_numbers<[1], [0], [0], [1], [0, 0, 1, 1], [], []>} : vector<2x192xbf16>, vector<192x32xbf16>, vector<2x32xf32> -> vector<2x32xf32>
    %187 = arith.addf %179, %186 : vector<2x32xf32>
    %c4_157 = arith.constant 4 : index
    %c0_158 = arith.constant 0 : index
    %c0_159 = arith.constant 0 : index
    %188 = vector.load %arg12[%c4_157, %c0_158, %c0_159] : memref<5x2x12xbf16, #tpu.memory_space<vmem>>, vector<1x2x12xbf16>
    %189 = vector.shape_cast %188 : vector<1x2x12xbf16> to vector<2x12xbf16>
    %cst_160 = arith.constant dense<0.000000e+00> : vector<2x192xf32>
    %190 = tpu.matmul %189, %154, %cst_160 {dimension_numbers = #tpu.dot_dimension_numbers<[1], [0], [0], [1], [0, 0, 1, 1], [], []>} : vector<2x12xbf16>, vector<12x192xbf16>, vector<2x192xf32> -> vector<2x192xf32>
    %191 = arith.truncf %190 : vector<2x192xf32> to vector<2x192xbf16>
    %c4_161 = arith.constant 4 : index
    %c0_162 = arith.constant 0 : index
    %c0_163 = arith.constant 0 : index
    %192 = vector.load %arg13[%c4_161, %c0_162, %c0_163] : memref<5x192x32xbf16, #tpu.memory_space<vmem>>, vector<1x192x32xbf16>
    %193 = vector.shape_cast %192 : vector<1x192x32xbf16> to vector<192x32xbf16>
    %cst_164 = arith.constant dense<0.000000e+00> : vector<2x32xf32>
    %194 = tpu.matmul %191, %193, %cst_164 {dimension_numbers = #tpu.dot_dimension_numbers<[1], [0], [0], [1], [0, 0, 1, 1], [], []>} : vector<2x192xbf16>, vector<192x32xbf16>, vector<2x32xf32> -> vector<2x32xf32>
    %195 = arith.addf %187, %194 : vector<2x32xf32>
    %cst_165 = arith.constant dense<0.000000e+00> : vector<32xf32>
    %196 = vector.multi_reduction <add>, %195, %cst_165 [0] : vector<2x32xf32> to vector<32xf32>
    %197 = vector.shape_cast %196 : vector<32xf32> to vector<1x32xf32>
    %198 = arith.mulf %195, %195 : vector<2x32xf32>
    %cst_166 = arith.constant dense<0.000000e+00> : vector<32xf32>
    %199 = vector.multi_reduction <add>, %198, %cst_166 [0] : vector<2x32xf32> to vector<32xf32>
    %200 = vector.shape_cast %199 : vector<32xf32> to vector<1x32xf32>
    %c0_167 = arith.constant 0 : index
    %c0_168 = arith.constant 0 : index
    %201 = vector.load %arg15[%c0_167, %c0_168] : memref<32x32xf32, #tpu.memory_space<vmem>>, vector<32x32xf32>
    %cst_169 = arith.constant dense<0.000000e+00> : vector<1x32xf32>
    %202 = tpu.matmul %197, %201, %cst_169 {dimension_numbers = #tpu.dot_dimension_numbers<[1], [0], [0], [1], [0, 0, 1, 1], [], []>} : vector<1x32xf32>, vector<32x32xf32>, vector<1x32xf32> -> vector<1x32xf32>
    %cst_170 = arith.constant 2.000000e+00 : f32
    %203 = vector.broadcast %cst_170 : f32 to vector<1x32xf32>
    %204 = arith.divf %202, %203 : vector<1x32xf32>
    %c0_171 = arith.constant 0 : index
    %c0_172 = arith.constant 0 : index
    %205 = vector.load %arg15[%c0_171, %c0_172] : memref<32x32xf32, #tpu.memory_space<vmem>>, vector<32x32xf32>
    %cst_173 = arith.constant dense<0.000000e+00> : vector<1x32xf32>
    %206 = tpu.matmul %200, %205, %cst_173 {dimension_numbers = #tpu.dot_dimension_numbers<[1], [0], [0], [1], [0, 0, 1, 1], [], []>} : vector<1x32xf32>, vector<32x32xf32>, vector<1x32xf32> -> vector<1x32xf32>
    %cst_174 = arith.constant 2.000000e+00 : f32
    %207 = vector.broadcast %cst_174 : f32 to vector<1x32xf32>
    %208 = arith.divf %206, %207 : vector<1x32xf32>
    %209 = arith.mulf %204, %204 : vector<1x32xf32>
    %210 = arith.subf %208, %209 : vector<1x32xf32>
    %cst_175 = arith.constant 0.000000e+00 : f32
    %211 = vector.broadcast %cst_175 : f32 to vector<1x32xf32>
    %212 = arith.maximumf %210, %211 : vector<1x32xf32>
    %c0_176 = arith.constant 0 : index
    %c0_177 = arith.constant 0 : index
    %213 = vector.load %arg14[%c0_176, %c0_177] : memref<2x32xf32, #tpu.memory_space<vmem>>, vector<1x32xf32>
    %c1_178 = arith.constant 1 : index
    %c0_179 = arith.constant 0 : index
    %214 = vector.load %arg14[%c1_178, %c0_179] : memref<2x32xf32, #tpu.memory_space<vmem>>, vector<1x32xf32>
    %cst_180 = arith.constant 9.99999974E-6 : f32
    %215 = vector.broadcast %cst_180 : f32 to vector<1x32xf32>
    %216 = arith.addf %212, %215 : vector<1x32xf32>
    %217 = math.rsqrt %216 : vector<1x32xf32>
    %218 = arith.mulf %213, %217 : vector<1x32xf32>
    %219 = arith.mulf %204, %218 : vector<1x32xf32>
    %220 = arith.subf %214, %219 : vector<1x32xf32>
    %c0_181 = arith.constant 0 : index
    %c0_182 = arith.constant 0 : index
    %221 = vector.load %arg16[%c0_181, %c0_182] : memref<32x32xf32, #tpu.memory_space<vmem>>, vector<32x32xf32>
    %cst_183 = arith.constant dense<0.000000e+00> : vector<1x32xf32>
    %222 = tpu.matmul %218, %221, %cst_183 {dimension_numbers = #tpu.dot_dimension_numbers<[1], [0], [0], [1], [0, 0, 1, 1], [], []>} : vector<1x32xf32>, vector<32x32xf32>, vector<1x32xf32> -> vector<1x32xf32>
    %c0_184 = arith.constant 0 : index
    %c0_185 = arith.constant 0 : index
    %223 = vector.load %arg16[%c0_184, %c0_185] : memref<32x32xf32, #tpu.memory_space<vmem>>, vector<32x32xf32>
    %cst_186 = arith.constant dense<0.000000e+00> : vector<1x32xf32>
    %224 = tpu.matmul %220, %223, %cst_186 {dimension_numbers = #tpu.dot_dimension_numbers<[1], [0], [0], [1], [0, 0, 1, 1], [], []>} : vector<1x32xf32>, vector<32x32xf32>, vector<1x32xf32> -> vector<1x32xf32>
    %225 = vector.broadcast %222 : vector<1x32xf32> to vector<2x32xf32>
    %226 = arith.mulf %195, %225 : vector<2x32xf32>
    %227 = vector.broadcast %224 : vector<1x32xf32> to vector<2x32xf32>
    %228 = arith.addf %226, %227 : vector<2x32xf32>
    %cst_187 = arith.constant 0.000000e+00 : f32
    %229 = vector.broadcast %cst_187 : f32 to vector<2x32xf32>
    %230 = arith.maximumf %228, %229 : vector<2x32xf32>
    %c0_188 = arith.constant 0 : index
    %c0_189 = arith.constant 0 : index
    %231 = vector.load %arg18[%c0_188, %c0_189] : memref<1x4xf32, #tpu.memory_space<vmem>>, vector<1x4xf32>
    %232 = vector.shape_cast %231 : vector<1x4xf32> to vector<1x4xf32>
    %233 = vector.broadcast %232 : vector<1x4xf32> to vector<2x4xf32>
    %c0_190 = arith.constant 0 : index
    %c0_191 = arith.constant 0 : index
    %c0_192 = arith.constant 0 : index
    %234 = vector.load %arg17[%c0_190, %c0_191, %c0_192] : memref<1x32x4xf32, #tpu.memory_space<vmem>>, vector<1x32x4xf32>
    %235 = vector.shape_cast %234 : vector<1x32x4xf32> to vector<32x4xf32>
    %cst_193 = arith.constant dense<0.000000e+00> : vector<2x4xf32>
    %236 = tpu.matmul %230, %235, %cst_193 {dimension_numbers = #tpu.dot_dimension_numbers<[1], [0], [0], [1], [0, 0, 1, 1], [], []>} : vector<2x32xf32>, vector<32x4xf32>, vector<2x4xf32> -> vector<2x4xf32>
    %237 = arith.addf %233, %236 : vector<2x4xf32>
    %c0_194 = arith.constant 0 : index
    %c0_195 = arith.constant 0 : index
    %238 = vector.load %arg19[%c0_194, %c0_195] : memref<2x4xf32, #tpu.memory_space<vmem>>, vector<2x4xf32>
    tpu.vector_store %arg19[%c0_194, %c0_195], %237 {strides = array<i32>} : memref<2x4xf32, #tpu.memory_space<vmem>>, vector<2x4xf32>,
    return
  }
  func.func @transform_0(%arg0: i32) -> (i32, i32) {
    %c0_i32 = arith.constant 0 : i32
    %c0_i32_0 = arith.constant 0 : i32
    %c0_i32_1 = arith.constant 0 : i32
    return %c0_i32, %c0_i32_0 : i32, i32
  }
  func.func @transform_1(%arg0: i32) -> (i32, i32, i32) {
    %c0_i32 = arith.constant 0 : i32
    %c0_i32_0 = arith.constant 0 : i32
    %c0_i32_1 = arith.constant 0 : i32
    %c0_i32_2 = arith.constant 0 : i32
    return %c0_i32, %c0_i32_0, %c0_i32_1 : i32, i32, i32
  }
  func.func @transform_2(%arg0: i32) -> (i32, i32, i32) {
    %c0_i32 = arith.constant 0 : i32
    %c0_i32_0 = arith.constant 0 : i32
    %c0_i32_1 = arith.constant 0 : i32
    %c0_i32_2 = arith.constant 0 : i32
    return %c0_i32, %c0_i32_0, %c0_i32_1 : i32, i32, i32
  }
  func.func @transform_3(%arg0: i32) -> (i32, i32) {
    %c0_i32 = arith.constant 0 : i32
    %c0_i32_0 = arith.constant 0 : i32
    %c0_i32_1 = arith.constant 0 : i32
    return %c0_i32, %c0_i32_0 : i32, i32
  }
  func.func @transform_4(%arg0: i32) -> (i32, i32) {
    %c0_i32 = arith.constant 0 : i32
    %c0_i32_0 = arith.constant 0 : i32
    %c0_i32_1 = arith.constant 0 : i32
    return %c0_i32, %c0_i32_0 : i32, i32
  }
  func.func @transform_5(%arg0: i32) -> (i32, i32) {
    %c0_i32 = arith.constant 0 : i32
    %c0_i32_0 = arith.constant 0 : i32
    %c0_i32_1 = arith.constant 0 : i32
    return %c0_i32, %c0_i32_0 : i32, i32
  }
  func.func @transform_6(%arg0: i32) -> (i32, i32, i32) {
    %c0_i32 = arith.constant 0 : i32
    %c0_i32_0 = arith.constant 0 : i32
    %c0_i32_1 = arith.constant 0 : i32
    %c0_i32_2 = arith.constant 0 : i32
    return %c0_i32, %c0_i32_0, %c0_i32_1 : i32, i32, i32
  }
  func.func @transform_7(%arg0: i32) -> (i32, i32, i32) {
    %c0_i32 = arith.constant 0 : i32
    %c0_i32_0 = arith.constant 0 : i32
    %c0_i32_1 = arith.constant 0 : i32
    %c0_i32_2 = arith.constant 0 : i32
    return %c0_i32, %c0_i32_0, %c0_i32_1 : i32, i32, i32
  }
  func.func @transform_8(%arg0: i32) -> (i32, i32) {
    %c0_i32 = arith.constant 0 : i32
    %c0_i32_0 = arith.constant 0 : i32
    %c0_i32_1 = arith.constant 0 : i32
    return %c0_i32, %c0_i32_0 : i32, i32
  }
  func.func @transform_9(%arg0: i32) -> (i32, i32) {
    %c0_i32 = arith.constant 0 : i32
    %c0_i32_0 = arith.constant 0 : i32
    %c0_i32_1 = arith.constant 0 : i32
    return %c0_i32, %c0_i32_0 : i32, i32
  }
  func.func @transform_10(%arg0: i32) -> (i32, i32) {
    %c0_i32 = arith.constant 0 : i32
    %c0_i32_0 = arith.constant 0 : i32
    %c0_i32_1 = arith.constant 0 : i32
    return %c0_i32, %c0_i32_0 : i32, i32
  }
  func.func @transform_11(%arg0: i32) -> (i32, i32, i32) {
    %c0_i32 = arith.constant 0 : i32
    %c0_i32_0 = arith.constant 0 : i32
    %c0_i32_1 = arith.constant 0 : i32
    %c0_i32_2 = arith.constant 0 : i32
    return %c0_i32, %c0_i32_0, %c0_i32_1 : i32, i32, i32
  }
  func.func @transform_12(%arg0: i32) -> (i32, i32, i32) {
    %c0_i32 = arith.constant 0 : i32
    %c0_i32_0 = arith.constant 0 : i32
    %c0_i32_1 = arith.constant 0 : i32
    %c0_i32_2 = arith.constant 0 : i32
    return %c0_i32, %c0_i32_0, %c0_i32_1 : i32, i32, i32
  }
  func.func @transform_13(%arg0: i32) -> (i32, i32) {
    %c0_i32 = arith.constant 0 : i32
    %c0_i32_0 = arith.constant 0 : i32
    %c0_i32_1 = arith.constant 0 : i32
    return %c0_i32, %c0_i32_0 : i32, i32
  }
  func.func @transform_14(%arg0: i32) -> (i32, i32) {
    %c0_i32 = arith.constant 0 : i32
    %c0_i32_0 = arith.constant 0 : i32
    %c0_i32_1 = arith.constant 0 : i32
    return %c0_i32, %c0_i32_0 : i32, i32
  }
  func.func @transform_15(%arg0: i32) -> (i32, i32) {
    %c0_i32 = arith.constant 0 : i32
    %c0_i32_0 = arith.constant 0 : i32
    %c0_i32_1 = arith.constant 0 : i32
    return %c0_i32, %c0_i32_0 : i32, i32
  }
  func.func @transform_16(%arg0: i32) -> (i32, i32, i32) {
    %c0_i32 = arith.constant 0 : i32
    %c0_i32_0 = arith.constant 0 : i32
    %c0_i32_1 = arith.constant 0 : i32
    %c0_i32_2 = arith.constant 0 : i32
    return %c0_i32, %c0_i32_0, %c0_i32_1 : i32, i32, i32
  }
  func.func @transform_17(%arg0: i32) -> (i32, i32) {
    %c0_i32 = arith.constant 0 : i32
    %c0_i32_0 = arith.constant 0 : i32
    %c0_i32_1 = arith.constant 0 : i32
    return %c0_i32, %c0_i32_0 : i32, i32
  }
  func.func @transform_18(%arg0: i32) -> (i32, i32) {
    %c0_i32 = arith.constant 0 : i32
    %c0_i32_0 = arith.constant 0 : i32
    %c0_i32_1 = arith.constant 0 : i32
    return %c0_i32, %c0_i32_0 : i32, i32
  }
}

</mosaic_0001>

<bundles_post_ra>
// kernel: cnn_forward.1
= control target key start
LH: loop header
LB: loop body
LE: loop exit
PB: predicated region body
PF: predicated region fallthrough
CT: control target
= control target key end

     0   :  { %s8476_s0 = inlined_call_operand.vmem [shape: bf16[72,128], index: 0, kind: input, shape index: {}]   ;;  %s8477_s1 = inlined_call_operand.vmem [shape: bf16[5,32,72], index: 1, kind: input, shape index: {}]   ;;  %s8478_s2 = inlined_call_operand.vmem [shape: bf16[5,128,256], index: 2, kind: input, shape index: {}]   ;;  %s8479_s3 = inlined_call_operand.vmem [shape: f32[2,16], index: 3, kind: input, shape index: {}]   ;;  %s8480_s4 = inlined_call_operand.vmem [shape: f32[256,16], index: 4, kind: input, shape index: {}]   ;;  %s8481_s5 = inlined_call_operand.vmem [shape: f32[16,256], index: 5, kind: input, shape index: {}]   ;;  %s8482_s6 = inlined_call_operand.vmem [shape: bf16[5,12,32], index: 6, kind: input, shape index: {}]   ;;  %s8483_s7 = inlined_call_operand.vmem [shape: bf16[5,256,192], index: 7, kind: input, shape index: {}]   ;;  %s8484_s8 = inlined_call_operand.vmem [shape: f32[2,32], index: 8, kind: input, shape index: {}]   ;;  %s8485_s9 = inlined_call_operand.vmem [shape: f32[192,32], index: 9, kind: input, shape index: {}]   ;;  %s8486_s10 = inlined_call_operand.vmem [shape: f32[32,192], index: 10, kind: input, shape index: {}]   ;;  %s8487_s11 = inlined_call_operand.vmem [shape: bf16[5,2,12], index: 11, kind: input, shape index: {}]   ;;  %s8488_s12 = inlined_call_operand.vmem [shape: bf16[5,192,32], index: 12, kind: input, shape index: {}]   ;;  %s8489_s13 = inlined_call_operand.vmem [shape: f32[2,32], index: 13, kind: input, shape index: {}]   ;;  %s8490_s14 = inlined_call_operand.vmem [shape: f32[32,32], index: 14, kind: input, shape index: {}, may-alias: {14,15}]   ;;  %s8491_s15 = inlined_call_operand.vmem [shape: f32[32,32], index: 15, kind: input, shape index: {}, may-alias: {14,15}]   ;;  %s8492_s16 = inlined_call_operand.vmem [shape: f32[1,32,4], index: 16, kind: input, shape index: {}]   ;;  %s8493_s17 = inlined_call_operand.vmem [shape: f32[1,4], index: 17, kind: input, shape index: {}]   ;;  %s8494_s18 = inlined_call_operand.hbm [shape: f32[2,4], index: 18, kind: output, shape index: {}]  }
   0x1   :  { %8498 = sst [smem:[#allocation5_spill]] %s8476_s0 }
   0x2   :  { %8499 = sst [smem:[#allocation6_spill]] %s8477_s1 }
   0x3   :  { %8500 = sst [smem:[#allocation7_spill]] %s8478_s2 }
   0x4   :  { %s8501_s29 = sld [smem:[#allocation5_spill]]  ;;  %vm111_vm0 = vcmask 588800   ;;  %s8502_s22 = sld [smem:[#allocation6_spill]]  ;;  %vm118_vm1 = vcmask 1043456   ;;  %v6602_v26 = vmov 0  }
   0x5   :  { %s8503_s1 = sld [smem:[#allocation7_spill]] }
   0xa   :  { %v6705_v0 = vld [vmem:[%s8501_s29] sm:$0xff]   ;;  %v6128_v1 = vld [vmem:[%s8501_s29 + $0x8] sm:$0xff]   ;;  %v6129_v2 = vld [vmem:[%s8501_s29 + $0x10] sm:$0xff]  }
   0xb   :  { %5752 = vmatprep.subr.bf16.mxu1 %v6705_v0  ;;  %5738 = vmatprep.subr.bf16.mxu0 %v6705_v0  ;;  %v6132_v3 = vld [vmem:[%s8502_s22 + $0x10] sm:$0xff]   ;;  %v6724_v4 = vld [vmem:[%s8501_s29 + $0x18] sm:$0xff]   ;;  %v6140_v5 = vld [vmem:[%s8502_s22] sm:$0xff]  }
   0xc   :  { %5753 = vmatpush3.bf16.msra.mxu1 %v6705_v0  ;;  %5739 = vmatpush3.bf16.msra.mxu0 %v6705_v0  ;;  %v6733_v6 = vld [vmem:[%s8501_s29 + $0x20] ss:$0 sps:$4 sm:$0xff]   ;;  %v6133_v8 = vld [vmem:[%s8502_s22 + $0x18] sm:$0xff]   ;;  %v6136_v9 = vld [vmem:[%s8503_s1 + $0x84] ss:$8 sps:$4 sm:$0xff]  }
   0xd   :  { %5754 = vmatprep.subr.bf16.mxu1 %v6128_v1  ;;  %5740 = vmatprep.subr.bf16.mxu0 %v6128_v1  ;;  %v6742_v7 = vsel %vm118_vm1, %v6733_v6, 0  ;;  %v6134_v10 = vld [vmem:[%s8503_s1 + $0x80] ss:$8 sps:$4 sm:$0xff]   ;;  %v6139_v12 = vld [vmem:[%s8503_s1 + $0x94] ss:$8 sps:$4 sm:$0xff]  }
   0xe   :  { %5762 = vmatprep.mubr.msk.bf16.mxu1 %vm111_vm0, %v6132_v3  ;;  %5748 = vmatprep.mubr.msk.bf16.mxu0 %vm111_vm0, %v6140_v5  ;;  %v6144_v11 = vld [vmem:[%s8502_s22 + $0x8] sm:$0xff]   ;;  %v6137_v13 = vld [vmem:[%s8503_s1 + $0x90] ss:$8 sps:$4 sm:$0xff]   ;;  %v6147_v16 = vld [vmem:[%s8503_s1 + $0xb4] ss:$8 sps:$4 sm:$0xff]  }
   0xf   :  { %v6143_v14 = vld [vmem:[%s8503_s1 + $0xa4] ss:$8 sps:$4 sm:$0xff]   ;;  %v6141_v15 = vld [vmem:[%s8503_s1 + $0xa0] ss:$8 sps:$4 sm:$0xff]   ;;  %v6145_v17 = vld [vmem:[%s8503_s1 + $0xb0] ss:$8 sps:$4 sm:$0xff]  }
  0x10   :  { %5755 = vmatpush3.bf16.msra.mxu1 %v6128_v1  ;;  %5741 = vmatpush3.bf16.msra.mxu0 %v6128_v1  ;;  %v6150_v18 = vld [vmem:[%s8503_s1 + $0xc4] ss:$8 sps:$4 sm:$0xff]   ;;  %v6148_v19 = vld [vmem:[%s8503_s1 + $0xc0] ss:$8 sps:$4 sm:$0xff]   ;;  %v6153_v20 = vld [vmem:[%s8503_s1 + $0xd4] ss:$8 sps:$4 sm:$0xff]  }
  0x11   :  { %5756 = vmatprep.subr.bf16.mxu1 %v6129_v2  ;;  %5742 = vmatprep.subr.bf16.mxu0 %v6129_v2  ;;  %v6151_v21 = vld [vmem:[%s8503_s1 + $0xd0] ss:$8 sps:$4 sm:$0xff]   ;;  %v6156_v22 = vld [vmem:[%s8503_s1 + $0xe4] ss:$8 sps:$4 sm:$0xff]   ;;  %v6154_v23 = vld [vmem:[%s8503_s1 + $0xe0] ss:$8 sps:$4 sm:$0xff]  }
  0x12   :  { %v6159_v24 = vld [vmem:[%s8503_s1 + $0xf4] ss:$8 sps:$4 sm:$0xff]   ;;  %v6157_v25 = vld [vmem:[%s8503_s1 + $0xf0] ss:$8 sps:$4 sm:$0xff]  }
  0x14   :  { %5757 = vmatpush3.bf16.msra.mxu1 %v6129_v2  ;;  %5743 = vmatpush3.bf16.msra.mxu0 %v6129_v2 }
  0x15   :  { %5758 = vmatprep.subr.bf16.mxu1 %v6724_v4  ;;  %5744 = vmatprep.subr.bf16.mxu0 %v6724_v4 }
  0x18   :  { %5759 = vmatpush3.bf16.msra.mxu1 %v6724_v4  ;;  %5745 = vmatpush3.bf16.msra.mxu0 %v6724_v4 }
  0x19   :  { %6118 = vmatprep.subr.msk.bf16.mxu1 %vm118_vm1, %v6733_v6  ;;  %6117 = vmatprep.subr.msk.bf16.mxu0 %vm118_vm1, %v6733_v6 }
  0x1c   :  { %5761 = vmatpush3.bf16.msra.mxu1 %v6742_v7  ;;  %5747 = vmatpush3.bf16.msra.mxu0 %v6742_v7 }
  0x1d   :  { %358 = vmatprep.subr.bf16.mxu1 %v6136_v9 }
  0x1f   :  { %5763 = vmatmul.mubr.msk.bf16.vlgmr.msra.gmra.mrb[0].mxu1 %vm111_vm0, %v6133_v8  ;;  %5749 = vmatmul.mubr.msk.bf16.vlgmr.msra.gmra.mrb[0].mxu0 %vm111_vm0, %v6144_v11 }
  0x20   :  { %359 = vmatpush1.bf16.msra.mxu1 %v6134_v10  ;;  %390 = vmatprep.mubr.bf16.mxu1 %v6602_v26 }
  0x21   :  { %360 = vmatprep.subr.bf16.mxu1 %v6139_v12  ;;  %523 = vmatprep.mubr.bf16.mxu0 %v6602_v26 }
  0x24   :  { %361 = vmatpush1.bf16.msra.mxu1 %v6137_v13 }
  0x25   :  { %362 = vmatprep.subr.bf16.mxu1 %v6143_v14 }
  0x28   :  { %363 = vmatpush1.bf16.msra.mxu1 %v6141_v15 }
  0x29   :  { %364 = vmatprep.subr.bf16.mxu1 %v6147_v16 }
  0x2c   :  { %365 = vmatpush1.bf16.msra.mxu1 %v6145_v17 }
  0x2d   :  { %366 = vmatprep.subr.bf16.mxu1 %v6150_v18 }
  0x30   :  { %367 = vmatpush1.bf16.msra.mxu1 %v6148_v19 }
  0x31   :  { %368 = vmatprep.subr.bf16.mxu1 %v6153_v20 }
  0x34   :  { %369 = vmatpush1.bf16.msra.mxu1 %v6151_v21 }
  0x35   :  { %370 = vmatprep.subr.bf16.mxu1 %v6156_v22 }
  0x38   :  { %371 = vmatpush1.bf16.msra.mxu1 %v6154_v23 }
  0x39   :  { %372 = vmatprep.subr.bf16.mxu1 %v6159_v24 }
  0x3c   :  { %373 = vmatpush1.bf16.msra.mxu1 %v6157_v25 }
  0x3d   :  { %5766 = vmatprep.subr.bf16.mxu1 %v6705_v0 }
  0x3e   :  { %23 = vsyncpa [#allocation3], 0  ;;  %v6166_v27 = vld [vmem:[%s8503_s1] ss:$8 sps:$4 sm:$0xff]   ;;  %v6168_v28 = vld [vmem:[%s8503_s1 + $0x4] ss:$8 sps:$4 sm:$0xff]  }
  0x3f   :  { %v6171_v29 = vld [vmem:[%s8503_s1 + $0x14] ss:$8 sps:$4 sm:$0xff]   ;;  %491 = vmatprep.subr.bf16.mxu0 %v6168_v28  ;;  %v6169_v30 = vld [vmem:[%s8503_s1 + $0x10] ss:$8 sps:$4 sm:$0xff]   ;;  %v6174_v31 = vld [vmem:[%s8503_s1 + $0x24] ss:$8 sps:$4 sm:$0xff]  }
  0x40   :  { %492 = vmatpush1.bf16.msra.mxu0 %v6166_v27  ;;  %v6172_v32 = vld [vmem:[%s8503_s1 + $0x20] ss:$8 sps:$4 sm:$0xff]   ;;  %v6177_v33 = vld [vmem:[%s8503_s1 + $0x34] ss:$8 sps:$4 sm:$0xff]   ;;  %v6175_v34 = vld [vmem:[%s8503_s1 + $0x30] ss:$8 sps:$4 sm:$0xff]  }
  0x41   :  { %493 = vmatprep.subr.bf16.mxu0 %v6171_v29  ;;  %v6180_v35 = vld [vmem:[%s8503_s1 + $0x44] ss:$8 sps:$4 sm:$0xff]   ;;  %v6178_v36 = vld [vmem:[%s8503_s1 + $0x40] ss:$8 sps:$4 sm:$0xff]   ;;  %v6183_v37 = vld [vmem:[%s8503_s1 + $0x54] ss:$8 sps:$4 sm:$0xff]  }
  0x42   :  { %v6181_v38 = vld [vmem:[%s8503_s1 + $0x50] ss:$8 sps:$4 sm:$0xff]   ;;  %v6186_v39 = vld [vmem:[%s8503_s1 + $0x64] ss:$8 sps:$4 sm:$0xff]   ;;  %v6184_v40 = vld [vmem:[%s8503_s1 + $0x60] ss:$8 sps:$4 sm:$0xff]  }
  0x43   :  { %v6189_v41 = vld [vmem:[%s8503_s1 + $0x74] ss:$8 sps:$4 sm:$0xff]   ;;  %v6187_v42 = vld [vmem:[%s8503_s1 + $0x70] ss:$8 sps:$4 sm:$0xff]   ;;  %v6192_v43 = vld [vmem:[%s8503_s1 + $0x104] ss:$8 sps:$4 sm:$0xff]  }
  0x44   :  { %494 = vmatpush1.bf16.msra.mxu0 %v6169_v30  ;;  %v6190_v56 = vld [vmem:[%s8503_s1 + $0x100] ss:$8 sps:$4 sm:$0xff]   ;;  %v6195_v57 = vld [vmem:[%s8503_s1 + $0x114] ss:$8 sps:$4 sm:$0xff]   ;;  %v6193_v60 = vld [vmem:[%s8503_s1 + $0x110] ss:$8 sps:$4 sm:$0xff]  }
  0x45   :  { %495 = vmatprep.subr.bf16.mxu0 %v6174_v31  ;;  %v6573_v58 = vld [vmem:[%s8501_s29] sm:$0xff]   ;;  %v6574_v59 = vld [vmem:[%s8501_s29 + $0x8] sm:$0xff]   ;;  %v6575_v62 = vld [vmem:[%s8501_s29 + $0x10] sm:$0xff]   ;;  %vm1467_vm2 = vcmask 130048   ;;  %vm1667_vm3 = vcmask 261120   ;;  %vm3139_vm4 = vcmask 523264  }
  0x46   :  { %v6160_v61 = vld [vmem:[%s8502_s22 + $0x20] sm:$0xff]   ;;  %v6161_v63 = vld [vmem:[%s8502_s22 + $0x28] sm:$0xff]   ;;  %v6162_v0 = vld [vmem:[%s8502_s22 + $0x30] sm:$0xff]   ;;  %vm3141_vm5 = vcmask 519168   ;;  %vm3545_vm6 = vcmask 1045504   ;;  %vm3541_vm7 = vcmask 97280  }
  0x47   :  { %v6576_v1 = vld [vmem:[%s8501_s29 + $0x18] sm:$0xff]   ;;  %v6577_v2 = vld [vmem:[%s8501_s29 + $0x20] ss:$0 sps:$4 sm:$0xff]   ;;  %v6165_v5 = vld [vmem:[%s8502_s22 + $0x48] sm:$0xff]   ;;  %vm6605_vm8 = vmmov 0   ;;  %vm4489_vm9 = vcmask 254976  }
  0x48   :  { %496 = vmatpush1.bf16.msra.mxu0 %v6172_v32  ;;  %v6163_v3 = vld [vmem:[%s8502_s22 + $0x38] sm:$0xff]   ;;  %v6196_v8 = vld [vmem:[%s8503_s1 + $0x120] ss:$8 sps:$4 sm:$0xff]   ;;  %v6204_v10 = vld [vmem:[%s8503_s1 + $0x144] ss:$8 sps:$4 sm:$0xff]   ;;  %vm4914_vm10 = vcmask 25600  }
  0x49   :  { %497 = vmatprep.subr.bf16.mxu0 %v6177_v33  ;;  %v6199_v9 = vld [vmem:[%s8503_s1 + $0x130] ss:$8 sps:$4 sm:$0xff]   ;;  %v6202_v11 = vld [vmem:[%s8503_s1 + $0x140] ss:$8 sps:$4 sm:$0xff]   ;;  %v6207_v13 = vld [vmem:[%s8503_s1 + $0x154] ss:$8 sps:$4 sm:$0xff]  }
  0x4a   :  { %v6205_v12 = vld [vmem:[%s8503_s1 + $0x150] ss:$8 sps:$4 sm:$0xff]   ;;  %v6210_v14 = vld [vmem:[%s8503_s1 + $0x164] ss:$8 sps:$4 sm:$0xff]   ;;  %v6208_v15 = vld [vmem:[%s8503_s1 + $0x160] ss:$8 sps:$4 sm:$0xff]  }
  0x4b   :  { %v6213_v16 = vld [vmem:[%s8503_s1 + $0x174] ss:$8 sps:$4 sm:$0xff]   ;;  %v6211_v17 = vld [vmem:[%s8503_s1 + $0x170] ss:$8 sps:$4 sm:$0xff]   ;;  %v6216_v18 = vld [vmem:[%s8503_s1 + $0x184] ss:$8 sps:$4 sm:$0xff]  }
  0x4c   :  { %498 = vmatpush1.bf16.msra.mxu0 %v6175_v34  ;;  %v1294_v19 = vld [vmem:[%s8480_s4 + $0x80] sm:$0xff]  ;;  %v1295_v20 = vld [vmem:[%s8480_s4 + $0x88] sm:$0xff] }
  0x4d   :  { %499 = vmatprep.subr.bf16.mxu0 %v6180_v35  ;;  %v1278_v21 = vld [vmem:[%s8480_s4] sm:$0xff]  ;;  %v6967_v22 = vpack.c.bf16 %v1295_v20, %v1294_v19  ;;  %v1279_v23 = vld [vmem:[%s8480_s4 + $0x8] sm:$0xff]  ;;  %v1296_v19 = vld [vmem:[%s8480_s4 + $0x90] sm:$0xff] }
  0x4e   :  { %v6972_v24 = vpack.c.bf16 %v1279_v23, %v1278_v21  ;;  %v1297_v20 = vld [vmem:[%s8480_s4 + $0x98] sm:$0xff]  ;;  %v1280_v23 = vld [vmem:[%s8480_s4 + $0x10] sm:$0xff] }
  0x4f   :  { %v7097_v21 = vpack.c.bf16 %v1297_v20, %v1296_v19 }
  0x50   :  { %500 = vmatpush1.bf16.msra.mxu0 %v6178_v36 }
  0x51   :  { %501 = vmatprep.subr.bf16.mxu0 %v6183_v37 }
  0x54   :  { %502 = vmatpush1.bf16.msra.mxu0 %v6181_v38 }
  0x55   :  { %503 = vmatprep.subr.bf16.mxu0 %v6186_v39  ;;  %v6214_v39 = vld [vmem:[%s8503_s1 + $0x180] ss:$8 sps:$4 sm:$0xff]  }
  0x58   :  { %504 = vmatpush1.bf16.msra.mxu0 %v6184_v40 }
  0x59   :  { %505 = vmatprep.subr.bf16.mxu0 %v6189_v41  ;;  %v6219_v41 = vld [vmem:[%s8503_s1 + $0x194] ss:$8 sps:$4 sm:$0xff]  }
  0x5c   :  { %506 = vmatpush1.bf16.msra.mxu0 %v6187_v42  ;;  %v6217_v42 = vld [vmem:[%s8503_s1 + $0x190] ss:$8 sps:$4 sm:$0xff]  }
  0x5d   :  { %713 = vmatprep.subr.bf16.mxu0 %v6192_v43  ;;  %v6222_v43 = vld [vmem:[%s8503_s1 + $0x1a4] ss:$8 sps:$4 sm:$0xff]  }
  0xf2   :  { %v5764_v44 = vpop.f32.mrb[0].mxu1  ;;  %v5750_v46 = vpop.f32.mrb[0].mxu0 }
  0xf3   :  { %v244_v45 = vpop.f32.mrb[1].mxu1  ;;  %v156_v48 = vpop.f32.mrb[1].mxu0 }
  0xf4   :  { %v5765_v47 = vpop.f32.mrb[2].mxu1  ;;  %v5751_v51 = vpop.f32.mrb[2].mxu0 }
  0xf5   :  { %v260_v49 = vpack.c.bf16 %v5765_v47, %v5764_v44  ;;  %v247_v50 = vpop.f32.mrb[3].mxu1  ;;  %v172_v53 = vpack.c.bf16 %v5751_v51, %v5750_v46  ;;  %v159_v54 = vpop.f32.mrb[3].mxu0  ;;  %v6220_v44 = vld [vmem:[%s8503_s1 + $0x1a0] ss:$8 sps:$4 sm:$0xff]   ;;  %v6223_v46 = vld [vmem:[%s8503_s1 + $0x1b0] ss:$8 sps:$4 sm:$0xff]  }
  0xf6   :  { %v259_v52 = vpack.c.bf16 %v247_v50, %v244_v45  ;;  %v171_v55 = vpack.c.bf16 %v159_v54, %v156_v48  ;;  %v6225_v45 = vld [vmem:[%s8503_s1 + $0x1b4] ss:$8 sps:$4 sm:$0xff]   ;;  %v6228_v47 = vld [vmem:[%s8503_s1 + $0x1c4] ss:$8 sps:$4 sm:$0xff]   ;;  %v6226_v48 = vld [vmem:[%s8503_s1 + $0x1c0] ss:$8 sps:$4 sm:$0xff]  }
  0xf8   :  { %391 = vmatmul.mubr.bf16.vlgmr.msra.gmra.mrb[4].mxu1 %v259_v52  ;;  %524 = vmatmul.mubr.bf16.vlgmr.msra.gmra.mrb[4].mxu0 %v171_v55 }
  0xf9   :  { %5767 = vmatpush3.bf16.msra.mxu1 %v6573_v58  ;;  %400 = vmatprep.mubr.bf16.mxu1 %v6602_v26 }
  0xfa   :  { %5768 = vmatprep.subr.bf16.mxu1 %v6574_v59  ;;  %533 = vmatprep.mubr.bf16.mxu0 %v6602_v26 }
  0xfb   :  { %714 = vmatpush1.bf16.msra.mxu0 %v6190_v56  ;;  %v6234_v56 = vld [vmem:[%s8503_s1 + $0x1e4] ss:$8 sps:$4 sm:$0xff]  }
  0xfc   :  { %715 = vmatprep.subr.bf16.mxu0 %v6195_v57 }
  0xfd   :  { %5769 = vmatpush3.bf16.msra.mxu1 %v6574_v59 }
  0xfe   :  { %5770 = vmatprep.subr.bf16.mxu1 %v6575_v62 }
  0xff   :  { %716 = vmatpush1.bf16.msra.mxu0 %v6193_v60  ;;  %v6235_v60 = vld [vmem:[%s8503_s1 + $0x1f0] ss:$8 sps:$4 sm:$0xff]  }
 0x100   :  { %401 = vmatmul.mubr.bf16.gmra.mrb[8].mxu1 %v260_v49  ;;  %534 = vmatmul.mubr.bf16.gmra.mrb[8].mxu0 %v172_v53  ;;  %v6231_v49 = vld [vmem:[%s8503_s1 + $0x1d4] ss:$8 sps:$4 sm:$0xff]   ;;  %v6229_v53 = vld [vmem:[%s8503_s1 + $0x1d0] ss:$8 sps:$4 sm:$0xff]  }
 0x101   :  { %5771 = vmatpush3.bf16.msra.mxu1 %v6575_v62  ;;  %5776 = vmatprep.mubr.msk.bf16.mxu1 %vm111_vm0, %v6160_v61  ;;  %v6240_v61 = vld [vmem:[%s8503_s1 + $0x204] ss:$8 sps:$4 sm:$0xff]  }
 0x102   :  { %5772 = vmatprep.subr.bf16.mxu1 %v6724_v4  ;;  %745 = vmatprep.mubr.bf16.mxu0 %v6602_v26 }
 0x105   :  { %5773 = vmatpush3.bf16.msra.mxu1 %v6724_v4  ;;  %v6164_v4 = vld [vmem:[%s8502_s22 + $0x40] sm:$0xff]  }
 0x106   :  { %6119 = vmatprep.subr.msk.bf16.mxu1 %vm118_vm1, %v6733_v6  ;;  %v6198_v6 = vld [vmem:[%s8503_s1 + $0x124] ss:$8 sps:$4 sm:$0xff]  }
 0x107   :  { %717 = vmatprep.subr.bf16.mxu0 %v6198_v6 }
 0x108   :  { %718 = vmatpush1.bf16.msra.mxu0 %v6196_v8 }
 0x109   :  { %5775 = vmatpush3.bf16.msra.mxu1 %v6742_v7 }
 0x10a   :  { %5780 = vmatprep.subr.bf16.mxu1 %v6573_v58 }
 0x10c   :  { %5777 = vmatmul.mubr.msk.bf16.vlgmr.msra.gmra.mrb[12].mxu1 %vm111_vm0, %v6161_v63  ;;  %v6243_v63 = vld [vmem:[%s8503_s1 + $0x214] ss:$8 sps:$4 sm:$0xff]  }
 0x10d   :  { %5781 = vmatpush3.bf16.msra.mxu1 %v6573_v58  ;;  %5790 = vmatprep.mubr.msk.bf16.mxu1 %vm111_vm0, %v6162_v0  ;;  %v6241_v0 = vld [vmem:[%s8503_s1 + $0x210] ss:$8 sps:$4 sm:$0xff]  }
 0x10e   :  { %5782 = vmatprep.subr.bf16.mxu1 %v6574_v59 }
 0x111   :  { %5783 = vmatpush3.bf16.msra.mxu1 %v6574_v59 }
 0x112   :  { %5784 = vmatprep.subr.bf16.mxu1 %v6575_v62 }
 0x115   :  { %5785 = vmatpush3.bf16.msra.mxu1 %v6575_v62 }
 0x116   :  { %5786 = vmatprep.subr.bf16.mxu1 %v6576_v1 }
 0x119   :  { %5787 = vmatpush3.bf16.msra.mxu1 %v6576_v1 }
 0x11a   :  { %6120 = vmatprep.subr.msk.bf16.mxu1 %vm118_vm1, %v6577_v2 }
 0x11d   :  { %5789 = vmatpush3.bf16.msra.mxu1 %v6742_v7 }
 0x11e   :  { %5794 = vmatprep.subr.bf16.mxu1 %v6573_v58 }
 0x120   :  { %5791 = vmatmul.mubr.msk.bf16.vlgmr.msra.gmra.mrb[16].mxu1 %vm111_vm0, %v6163_v3 }
 0x121   :  { %5795 = vmatpush3.bf16.msra.mxu1 %v6573_v58  ;;  %5804 = vmatprep.mubr.msk.bf16.mxu1 %vm111_vm0, %v6164_v4  ;;  %v6232_v58 = vld [vmem:[%s8503_s1 + $0x1e0] ss:$8 sps:$4 sm:$0xff]  }
 0x122   :  { %5796 = vmatprep.subr.bf16.mxu1 %v6574_v59 }
 0x125   :  { %5797 = vmatpush3.bf16.msra.mxu1 %v6574_v59  ;;  %v6237_v59 = vld [vmem:[%s8503_s1 + $0x1f4] ss:$8 sps:$4 sm:$0xff]  }
 0x126   :  { %5798 = vmatprep.subr.bf16.mxu1 %v6575_v62 }
 0x129   :  { %5799 = vmatpush3.bf16.msra.mxu1 %v6575_v62  ;;  %v6238_v62 = vld [vmem:[%s8503_s1 + $0x200] ss:$8 sps:$4 sm:$0xff]  }
 0x12a   :  { %5800 = vmatprep.subr.bf16.mxu1 %v6576_v1 }
 0x12d   :  { %5801 = vmatpush3.bf16.msra.mxu1 %v6576_v1  ;;  %v6246_v1 = vld [vmem:[%s8503_s1 + $0x224] ss:$8 sps:$4 sm:$0xff]  }
 0x12e   :  { %6121 = vmatprep.subr.msk.bf16.mxu1 %vm118_vm1, %v6577_v2 }
 0x131   :  { %5803 = vmatpush3.bf16.msra.mxu1 %v6742_v7  ;;  %v6201_v7 = vld [vmem:[%s8503_s1 + $0x134] ss:$8 sps:$4 sm:$0xff]  }
 0x132   :  { %719 = vmatprep.subr.bf16.mxu0 %v6201_v7  ;;  %5864 = vmatprep.subr.bf16.mxu1 %v6967_v22 }
 0x133   :  { %720 = vmatpush1.bf16.msra.mxu0 %v6199_v9  ;;  %v6249_v9 = vld [vmem:[%s8503_s1 + $0x234] ss:$8 sps:$4 sm:$0xff]  }
 0x134   :  { %5805 = vmatmul.mubr.msk.bf16.vlgmr.msra.gmra.mrb[20].mxu1 %vm111_vm0, %v6165_v5  ;;  %721 = vmatprep.subr.bf16.mxu0 %v6204_v10  ;;  %v6244_v5 = vld [vmem:[%s8503_s1 + $0x220] ss:$8 sps:$4 sm:$0xff]   ;;  %v6247_v10 = vld [vmem:[%s8503_s1 + $0x230] ss:$8 sps:$4 sm:$0xff]  }
 0x135   :  { %5866 = vmatpush3.bf16.msra.mxu1 %v6972_v24 }
 0x136   :  { %5868 = vmatprep.subr.bf16.mxu1 %v7097_v21 }
 0x137   :  { %722 = vmatpush1.bf16.msra.mxu0 %v6202_v11  ;;  %v6252_v11 = vld [vmem:[%s8503_s1 + $0x244] ss:$8 sps:$4 sm:$0xff]  }
 0x138   :  { %723 = vmatprep.subr.bf16.mxu0 %v6207_v13  ;;  %v6255_v13 = vld [vmem:[%s8503_s1 + $0x254] ss:$8 sps:$4 sm:$0xff]  }
 0x13b   :  { %724 = vmatpush1.bf16.msra.mxu0 %v6205_v12  ;;  %v6250_v12 = vld [vmem:[%s8503_s1 + $0x240] ss:$8 sps:$4 sm:$0xff]  }
 0x13c   :  { %725 = vmatprep.subr.bf16.mxu0 %v6210_v14  ;;  %v6253_v14 = vld [vmem:[%s8503_s1 + $0x250] ss:$8 sps:$4 sm:$0xff]  }
 0x13f   :  { %726 = vmatpush1.bf16.msra.mxu0 %v6208_v15  ;;  %v6258_v15 = vld [vmem:[%s8503_s1 + $0x264] ss:$8 sps:$4 sm:$0xff]  }
 0x140   :  { %727 = vmatprep.subr.bf16.mxu0 %v6213_v16  ;;  %v6256_v16 = vld [vmem:[%s8503_s1 + $0x260] ss:$8 sps:$4 sm:$0xff]  }
 0x143   :  { %728 = vmatpush1.bf16.msra.mxu0 %v6211_v17  ;;  %v6261_v17 = vld [vmem:[%s8503_s1 + $0x274] ss:$8 sps:$4 sm:$0xff]  }
 0x144   :  { %943 = vmatprep.subr.bf16.mxu0 %v6216_v18  ;;  %v6259_v18 = vld [vmem:[%s8503_s1 + $0x270] ss:$8 sps:$4 sm:$0xff]  }
 0x1cb   :  { %v6976_v25 = vpop.f32.mrb[4].mxu1 }
 0x1cc   :  { %v6978_v27 = vpop.f32.mrb[5].mxu1 }
 0x1cd   :  { %v6980_v28 = vpop.f32.mrb[6].mxu1 }
 0x1ce   :  { %v6982_v29 = vpop.f32.mrb[7].mxu1 }
 0x1d3   :  { %v6984_v30 = vpop.f32.mrb[8].mxu1 }
 0x1d4   :  { %v6986_v31 = vpop.f32.mrb[9].mxu1 }
 0x1d5   :  { %v6988_v32 = vpop.f32.mrb[10].mxu1 }
 0x1d6   :  { %v6990_v33 = vpop.f32.mrb[11].mxu1 }
 0x1df   :  { %v5778_v34 = vpop.f32.mrb[12].mxu1 }
 0x1e0   :  { %v599_v35 = vpop.f32.mrb[13].mxu1 }
 0x1e1   :  { %v5779_v36 = vpop.f32.mrb[14].mxu1 }
 0x1e2   :  { %v615_v37 = vpack.c.bf16 %v5779_v36, %v5778_v34  ;;  %v602_v38 = vpop.f32.mrb[15].mxu1  ;;  %v1281_v34 = vld [vmem:[%s8480_s4 + $0x18] sm:$0xff]  ;;  %v1298_v36 = vld [vmem:[%s8480_s4 + $0xa0] sm:$0xff] }
 0x1e3   :  { %v614_v40 = vpack.c.bf16 %v602_v38, %v599_v35  ;;  %v7105_v35 = vpack.c.bf16 %v1281_v34, %v1280_v23 }
 0x1e5   :  { %746 = vmatmul.mubr.bf16.vlgmr.msra.gmra.mrb[4].mxu0 %v614_v40  ;;  %5870 = vmatpush3.bf16.msra.mxu1 %v7105_v35  ;;  %v1283_v40 = vld [vmem:[%s8480_s4 + $0x28] sm:$0xff] }
 0x1e6   :  { %944 = vmatpush1.bf16.msra.mxu0 %v6214_v39  ;;  %755 = vmatprep.mubr.bf16.mxu0 %v6602_v26  ;;  %v1282_v39 = vld [vmem:[%s8480_s4 + $0x20] sm:$0xff] }
 0x1e7   :  { %945 = vmatprep.subr.bf16.mxu0 %v6219_v41  ;;  %v7123_v41 = vpack.c.bf16 %v1283_v40, %v1282_v39 }
 0x1ea   :  { %946 = vmatpush1.bf16.msra.mxu0 %v6217_v42  ;;  %v1300_v42 = vld [vmem:[%s8480_s4 + $0xb0] sm:$0xff] }
 0x1eb   :  { %947 = vmatprep.subr.bf16.mxu0 %v6222_v43  ;;  %v1301_v43 = vld [vmem:[%s8480_s4 + $0xb8] sm:$0xff] }
 0x1ed   :  { %756 = vmatmul.mubr.bf16.gmra.mrb[8].mxu0 %v615_v37  ;;  %v1299_v37 = vld [vmem:[%s8480_s4 + $0xa8] sm:$0xff] }
 0x1ee   :  { %948 = vmatpush1.bf16.msra.mxu0 %v6220_v44  ;;  %975 = vmatprep.mubr.bf16.mxu0 %v6602_v26  ;;  %v7115_v38 = vpack.c.bf16 %v1299_v37, %v1298_v36  ;;  %v7133_v44 = vpack.c.bf16 %v1301_v43, %v1300_v42 }
 0x1ef   :  { %949 = vmatprep.subr.bf16.mxu0 %v6225_v45  ;;  %v1284_v45 = vld [vmem:[%s8480_s4 + $0x30] sm:$0xff] }
 0x1f0   :  { %5872 = vmatprep.subr.bf16.mxu1 %v7115_v38 }
 0x1f1   :  { %5874 = vmatpush3.bf16.msra.mxu1 %v7123_v41 }
 0x1f2   :  { %950 = vmatpush1.bf16.msra.mxu0 %v6223_v46  ;;  %v1285_v46 = vld [vmem:[%s8480_s4 + $0x38] sm:$0xff]  ;;  %5876 = vmatprep.subr.bf16.mxu1 %v7133_v44 }
 0x1f3   :  { %951 = vmatprep.subr.bf16.mxu0 %v6228_v47  ;;  %v5792_v50 = vpop.f32.mrb[16].mxu1  ;;  %v7141_v47 = vpack.c.bf16 %v1285_v46, %v1284_v45 }
 0x1f4   :  { %v829_v51 = vpop.f32.mrb[17].mxu1 }
 0x1f5   :  { %v5793_v52 = vpop.f32.mrb[18].mxu1  ;;  %5878 = vmatpush3.bf16.msra.mxu1 %v7141_v47 }
 0x1f6   :  { %952 = vmatpush1.bf16.msra.mxu0 %v6226_v48  ;;  %v845_v54 = vpack.c.bf16 %v5793_v52, %v5792_v50  ;;  %v832_v55 = vpop.f32.mrb[19].mxu1  ;;  %v1302_v48 = vld [vmem:[%s8480_s4 + $0xc0] sm:$0xff]  ;;  %v1287_v52 = vld [vmem:[%s8480_s4 + $0x48] sm:$0xff] }
 0x1f7   :  { %953 = vmatprep.subr.bf16.mxu0 %v6231_v49  ;;  %v844_v57 = vpack.c.bf16 %v832_v55, %v829_v51  ;;  %v1303_v49 = vld [vmem:[%s8480_s4 + $0xc8] sm:$0xff]  ;;  %v1286_v51 = vld [vmem:[%s8480_s4 + $0x40] sm:$0xff]  ;;  %v1305_v55 = vld [vmem:[%s8480_s4 + $0xd8] sm:$0xff] }
 0x1f8   :  { %v7151_v50 = vpack.c.bf16 %v1303_v49, %v1302_v48 }
 0x1fa   :  { %954 = vmatpush1.bf16.msra.mxu0 %v6229_v53  ;;  %v7159_v53 = vpack.c.bf16 %v1287_v52, %v1286_v51  ;;  %5880 = vmatprep.subr.bf16.mxu1 %v7151_v50 }
 0x1fb   :  { %955 = vmatprep.subr.bf16.mxu0 %v6234_v56 }
 0x1fc   :  { %5882 = vmatpush3.bf16.msra.mxu1 %v7159_v53 }
 0x1fe   :  { %956 = vmatpush1.bf16.msra.mxu0 %v6232_v58  ;;  %v1289_v58 = vld [vmem:[%s8480_s4 + $0x58] sm:$0xff] }
 0x1ff   :  { %957 = vmatprep.subr.bf16.mxu0 %v6237_v59 }
 0x202   :  { %958 = vmatpush1.bf16.msra.mxu0 %v6235_v60  ;;  %v1306_v60 = vld [vmem:[%s8480_s4 + $0xe0] sm:$0xff] }
 0x203   :  { %1173 = vmatprep.subr.bf16.mxu0 %v6240_v61  ;;  %v1307_v61 = vld [vmem:[%s8480_s4 + $0xe8] sm:$0xff] }
 0x205   :  { %976 = vmatmul.mubr.bf16.vlgmr.msra.gmra.mrb[4].mxu0 %v844_v57  ;;  %v1288_v57 = vld [vmem:[%s8480_s4 + $0x50] sm:$0xff] }
 0x206   :  { %1174 = vmatpush1.bf16.msra.mxu0 %v6238_v62  ;;  %985 = vmatprep.mubr.bf16.mxu0 %v6602_v26  ;;  %v7177_v59 = vpack.c.bf16 %v1289_v58, %v1288_v57  ;;  %v7187_v62 = vpack.c.bf16 %v1307_v61, %v1306_v60 }
 0x207   :  { %1175 = vmatprep.subr.bf16.mxu0 %v6243_v63  ;;  %v5806_v2 = vpop.f32.mrb[20].mxu1  ;;  %v1290_v63 = vld [vmem:[%s8480_s4 + $0x60] sm:$0xff] }
 0x208   :  { %v1059_v3 = vpop.f32.mrb[21].mxu1 }
 0x209   :  { %v5807_v4 = vpop.f32.mrb[22].mxu1 }
 0x20a   :  { %1176 = vmatpush1.bf16.msra.mxu0 %v6241_v0  ;;  %v1075_v6 = vpack.c.bf16 %v5807_v4, %v5806_v2  ;;  %v1062_v8 = vpop.f32.mrb[23].mxu1  ;;  %v1291_v0 = vld [vmem:[%s8480_s4 + $0x68] sm:$0xff]  ;;  %v1308_v2 = vld [vmem:[%s8480_s4 + $0xf0] sm:$0xff] }
 0x20b   :  { %1177 = vmatprep.subr.bf16.mxu0 %v6246_v1  ;;  %v1074_v7 = vpack.c.bf16 %v1062_v8, %v1059_v3  ;;  %v7195_v1 = vpack.c.bf16 %v1291_v0, %v1290_v63  ;;  %v1309_v3 = vld [vmem:[%s8480_s4 + $0xf8] sm:$0xff]  ;;  %v1292_v4 = vld [vmem:[%s8480_s4 + $0x70] sm:$0xff] }
 0x20d   :  { %986 = vmatmul.mubr.bf16.gmra.mrb[8].mxu0 %v845_v54  ;;  %v1304_v54 = vld [vmem:[%s8480_s4 + $0xd0] sm:$0xff] }
 0x20e   :  { %1178 = vmatpush1.bf16.msra.mxu0 %v6244_v5  ;;  %1205 = vmatprep.mubr.bf16.mxu0 %v6602_v26  ;;  %v7169_v56 = vpack.c.bf16 %v1305_v55, %v1304_v54  ;;  %v7208_v5 = vpack.c.bf16 %v1309_v3, %v1308_v2 }
 0x20f   :  { %1179 = vmatprep.subr.bf16.mxu0 %v6249_v9 }
 0x210   :  { %5884 = vmatprep.subr.bf16.mxu1 %v7169_v56 }
 0x211   :  { %5886 = vmatpush3.bf16.msra.mxu1 %v7177_v59 }
 0x212   :  { %1180 = vmatpush1.bf16.msra.mxu0 %v6247_v10  ;;  %5888 = vmatprep.subr.bf16.mxu1 %v7187_v62 }
 0x213   :  { %1181 = vmatprep.subr.bf16.mxu0 %v6252_v11 }
 0x215   :  { %5890 = vmatpush3.bf16.msra.mxu1 %v7195_v1 }
 0x216   :  { %1182 = vmatpush1.bf16.msra.mxu0 %v6250_v12  ;;  %5892 = vmatprep.subr.bf16.mxu1 %v7208_v5 }
 0x217   :  { %1183 = vmatprep.subr.bf16.mxu0 %v6255_v13 }
 0x21a   :  { %1184 = vmatpush1.bf16.msra.mxu0 %v6253_v14 }
 0x21b   :  { %1185 = vmatprep.subr.bf16.mxu0 %v6258_v15 }
 0x21e   :  { %1186 = vmatpush1.bf16.msra.mxu0 %v6256_v16 }
 0x21f   :  { %1187 = vmatprep.subr.bf16.mxu0 %v6261_v17 }
 0x222   :  { %1188 = vmatpush1.bf16.msra.mxu0 %v6259_v18 }
 0x225   :  { %1206 = vmatmul.mubr.bf16.vlgmr.msra.gmra.mrb[4].mxu0 %v1074_v7 }
 0x226   :  { %1215 = vmatprep.mubr.bf16.mxu0 %v6602_v26 }
 0x22d   :  { %1216 = vmatmul.mubr.bf16.gmra.mrb[8].mxu0 %v1075_v6  ;;  %v1293_v6 = vld [vmem:[%s8480_s4 + $0x78] sm:$0xff] }
 0x22e   :  { %2286 = vmatprep.mubr.bf16.mxu0 %v6602_v26  ;;  %v7213_v8 = vpack.c.bf16 %v1293_v6, %v1292_v4 }
 0x230   :  { %5894 = vmatpush3.bf16.msra.mxu1 %v7213_v8 }
 0x231   :  { %5896 = vmatprep.subr.bf16.mxu1 %v6967_v22 }
 0x2f8   :  { %v1207_v9 = vpop.f32.mrb[4].mxu0 }
 0x2f9   :  { %v7219_v7 = vadd.f32 %v1207_v9, %v6976_v25  ;;  %v1209_v10 = vpop.f32.mrb[5].mxu0 }
 0x2fa   :  { %v7222_v11 = vadd.f32 %v1209_v10, %v6978_v27  ;;  %v1211_v12 = vpop.f32.mrb[6].mxu0 }
 0x2fb   :  { %v7225_v13 = vadd.f32 %v1211_v12, %v6980_v28  ;;  %v1213_v14 = vpop.f32.mrb[7].mxu0  ;;  %v1252_v4 = vmul.f32 %v7219_v7, %v7219_v7 }
 0x2fc   :  { %v7228_v15 = vadd.f32 %v1213_v14, %v6982_v29  ;;  %v1253_v18 = vmul.f32 %v7222_v11, %v7222_v11 }
 0x2fd   :  { %v1234_v25 = vadd.f32 %v7225_v13, %v7219_v7  ;;  %v1254_v0 = vmul.f32 %v7225_v13, %v7225_v13 }
 0x2fe   :  { %v1255_v16 = vmul.f32 %v7228_v15, %v7228_v15  ;;  %v1243_v28 = vadd.f32 %v7228_v15, %v7222_v11 }
 0x2ff   :  { %v1260_v12 = vadd.f32 %v1254_v0, %v1252_v4 }
 0x300   :  { %v1217_v22 = vpop.f32.mrb[8].mxu0  ;;  %v1269_v36 = vadd.f32 %v1255_v16, %v1253_v18 }
 0x301   :  { %v7235_v17 = vadd.f32 %v1217_v22, %v6984_v30  ;;  %v1219_v27 = vpop.f32.mrb[9].mxu0 }
 0x302   :  { %v7242_v29 = vadd.f32 %v1219_v27, %v6986_v31  ;;  %v1221_v19 = vpop.f32.mrb[10].mxu0 }
 0x303   :  { %v1235_v20 = vadd.f32 %v7235_v17, %v1234_v25  ;;  %v7246_v23 = vadd.f32 %v1221_v19, %v6988_v32  ;;  %v1223_v34 = vpop.f32.mrb[11].mxu0  ;;  %v1256_v6 = vmul.f32 %v7235_v17, %v7235_v17 }
 0x304   :  { %v1244_v30 = vadd.f32 %v7242_v29, %v1243_v28  ;;  %v1257_v37 = vmul.f32 %v7242_v29, %v7242_v29  ;;  %v7252_v39 = vadd.f32 %v1223_v34, %v6990_v33 }
 0x305   :  { %v1236_v40 = vadd.f32 %v7246_v23, %v1235_v20  ;;  %v1261_v14 = vadd.f32 %v1260_v12, %v1256_v6  ;;  %v1258_v16 = vmul.f32 %v7246_v23, %v7246_v23 }
 0x306   :  { %v1270_v31 = vadd.f32 %v1269_v36, %v1257_v37  ;;  %v1245_v42 = vadd.f32 %v7252_v39, %v1244_v30  ;;  %v1259_v43 = vmul.f32 %v7252_v39, %v7252_v39 }
 0x307   :  { %v1237_v32 = vrot.slane %v1236_v40, 4  ;;  %v1262_v22 = vadd.f32 %v1261_v14, %v1258_v16 }
 0x308   :  { %v1246_v45 = vrot.slane %v1245_v42, 4  ;;  %v1271_v46 = vadd.f32 %v1270_v31, %v1259_v43  ;;  %v1457_v43 = vld [vmem:[%s8479_s3 + $0x1] sm:$0x1] }
 0x309   :  { %v1238_v48 = vadd.f32 %v1237_v32, %v1236_v40  ;;  %v1263_v25 = vrot.slane %v1262_v22, 4  ;;  %v1456_v40 = vld [vmem:[%s8479_s3] sm:$0x1] }
 0x30a   :  { %v1247_v49 = vadd.f32 %v1246_v45, %v1245_v42  ;;  %v1272_v51 = vrot.slane %v1271_v46, 4 }
 0x30b   :  { %v1239_v52 = vrot.slane %v1238_v48, 2 }
 0x30c   :  { %v1248_v54 = vrot.slane %v1247_v49, 2  ;;  %v1273_v55 = vadd.f32 %v1272_v51, %v1271_v46  ;;  %v1616_v46 = vlaneseq }
 0x30d   :  { %v1240_v57 = vadd.f32 %v1239_v52, %v1238_v48 }
 0x30e   :  { %v1249_v33 = vadd.f32 %v1248_v54, %v1247_v49  ;;  %v1274_v58 = vrot.slane %v1273_v55, 2  ;;  %v1617_v48 = vshrl.u32 %v1616_v46, 7  ;;  %v6293_v46 = vld [vmem:[%s8483_s7 + $0x190] ss:$8 sps:$4 sm:$0xff]  }
 0x30f   :  { %v1241_v60 = vrot.slane %v1240_v57, 1 }
 0x310   :  { %v1250_v61 = vrot.slane %v1249_v33, 1  ;;  %v1275_v63 = vadd.f32 %v1274_v58, %v1273_v55  ;;  %v7302_v49 = vsub.s32 0, %v1617_v48  ;;  %v6298_v48 = vld [vmem:[%s8483_s7 + $0x1a4] ss:$8 sps:$4 sm:$0xff]  }
 0x311   :  { %v1242_v9 = vadd.f32 %v1241_v60, %v1240_v57 }
 0x312   :  { %v1251_v2 = vadd.f32 %v1250_v61, %v1249_v33  ;;  %v1276_v3 = vrot.slane %v1275_v63, 1 }
 0x314   :  { %1374 = vmatprep.mubr.f32.mxu1 %v1251_v2  ;;  %v1277_v10 = vadd.f32 %v1276_v3, %v1275_v63 }
 0x315   :  { %1375 = vmatmul.mubr.f32.vlgmr.msra.gmra.mrb[24].mxu1 %v1242_v9 }
 0x316   :  { %5898 = vmatpush3.bf16.msra.mxu1 %v6972_v24  ;;  %1446 = vmatprep.mubr.f32.mxu1 %v1277_v10  ;;  %v1264_v24 = vadd.f32 %v1263_v25, %v1262_v22 }
 0x317   :  { %5900 = vmatprep.subr.bf16.mxu1 %v7097_v21 }
 0x318   :  { %v1265_v27 = vrot.slane %v1264_v24, 2 }
 0x31a   :  { %5902 = vmatpush3.bf16.msra.mxu1 %v7105_v35  ;;  %v1266_v21 = vadd.f32 %v1265_v27, %v1264_v24 }
 0x31b   :  { %5904 = vmatprep.subr.bf16.mxu1 %v7115_v38 }
 0x31c   :  { %v1267_v35 = vrot.slane %v1266_v21, 1 }
 0x31e   :  { %5906 = vmatpush3.bf16.msra.mxu1 %v7123_v41  ;;  %v1268_v38 = vadd.f32 %v1267_v35, %v1266_v21  ;;  %v1464_v41 = vld [vmem:[%s8481_s5 + $0x8] sm:$0xff] }
 0x31f   :  { %5908 = vmatprep.subr.bf16.mxu1 %v7133_v44  ;;  %v1466_v44 = vld [vmem:[%s8481_s5 + $0x18] sm:$0xff] }
 0x322   :  { %5910 = vmatpush3.bf16.msra.mxu1 %v7141_v47  ;;  %v1463_v47 = vld [vmem:[%s8481_s5] sm:$0xff] }
 0x323   :  { %5912 = vmatprep.subr.bf16.mxu1 %v7151_v50  ;;  %v5927_v50 = vpack.c.bf16 %v1466_v44, %v1464_v41  ;;  %v6262_v44 = vld [vmem:[%s8482_s6] sm:$0x3f]  }
 0x326   :  { %5914 = vmatpush3.bf16.msra.mxu1 %v7159_v53  ;;  %v1465_v53 = vld [vmem:[%s8481_s5 + $0x10] sm:$0xff] }
 0x327   :  { %5916 = vmatprep.subr.bf16.mxu1 %v7169_v56  ;;  %v6603_v56 = vmov 0.0  }
 0x32a   :  { %5918 = vmatpush3.bf16.msra.mxu1 %v7177_v59  ;;  %v5929_v59 = vpack.c.bf16 %v1465_v53, %v1463_v47  ;;  %v6263_v47 = vld [vmem:[%s8482_s6 + $0x10] sm:$0x3f]   ;;  %v6264_v53 = vld [vmem:[%s8482_s6 + $0x8] sm:$0x3f]  }
 0x32b   :  { %5920 = vmatprep.subr.bf16.mxu1 %v7187_v62 }
 0x32e   :  { %5922 = vmatpush3.bf16.msra.mxu1 %v7195_v1 }
 0x32f   :  { %5924 = vmatprep.subr.bf16.mxu1 %v7208_v5 }
 0x332   :  { %5926 = vmatpush3.bf16.msra.mxu1 %v7213_v8 }
 0x333   :  { %5928 = vmatprep.subr.bf16.mxu1 %v5927_v50 }
 0x335   :  { %1447 = vmatmul.mubr.f32.vlgmr.msra.gmra.mrb[26].mxu1 %v1268_v38 }
 0x336   :  { %1535 = vmatprep.mubr.f32.mxu1 %v6603_v56  ;;  %5930 = vmatpush1.bf16.msra.mxu1 %v5929_v59 }
 0x337   :  { %5932 = vmatprep.subr.bf16.mxu1 %v5927_v50  ;;  %v6268_v50 = vld [vmem:[%s8483_s7 + $0x104] ss:$8 sps:$4 sm:$0xff]  }
 0x3e8   :  { %v5675_v62 = vpop.f32.mrb[24].mxu1 }
 0x3e9   :  { %v5676_v1 = vpop.f32.mrb[25].mxu1 }
 0x3ea   :  { %v5677_v5 = vadd.f32 %v5676_v1, %v5675_v62  ;;  %v6266_v62 = vld [vmem:[%s8483_s7 + $0x100] ss:$8 sps:$4 sm:$0xff]   ;;  %v6271_v1 = vld [vmem:[%s8483_s7 + $0x114] ss:$8 sps:$4 sm:$0xff]  }
 0x3ec   :  { %v1381_v8 = vmul.f32 0.001953125, %v5677_v5  ;;  %v6269_v5 = vld [vmem:[%s8483_s7 + $0x110] ss:$8 sps:$4 sm:$0xff]  }
 0x3ee   :  { %v1453_v20 = vmul.f32 %v1381_v8, %v1381_v8 }
 0x408   :  { %v5710_v18 = vpop.f32.mrb[26].mxu1 }
 0x409   :  { %v5711_v28 = vpop.f32.mrb[27].mxu1 }
 0x40a   :  { %v5712_v19 = vadd.f32 %v5711_v28, %v5710_v18  ;;  %v6272_v18 = vld [vmem:[%s8483_s7 + $0x120] ss:$8 sps:$4 sm:$0xff]   ;;  %v6277_v28 = vld [vmem:[%s8483_s7 + $0x134] ss:$8 sps:$4 sm:$0xff]  }
 0x40c   :  { %v1452_v34 = vmul.f32 0.001953125, %v5712_v19  ;;  %v6275_v19 = vld [vmem:[%s8483_s7 + $0x130] ss:$8 sps:$4 sm:$0xff]  }
 0x40e   :  { %v1454_v36 = vsub.f32 %v1452_v34, %v1453_v20  ;;  %v6280_v20 = vld [vmem:[%s8483_s7 + $0x144] ss:$8 sps:$4 sm:$0xff]   ;;  %v6278_v34 = vld [vmem:[%s8483_s7 + $0x140] ss:$8 sps:$4 sm:$0xff]  }
 0x410   :  { %v1455_v30 = vmax.f32 %v1454_v36, 0.0  ;;  %v6283_v36 = vld [vmem:[%s8483_s7 + $0x154] ss:$8 sps:$4 sm:$0xff]  }
 0x412   :  { %v1458_v37 = vadd.f32 1e-05, %v1455_v30  ;;  %v6281_v30 = vld [vmem:[%s8483_s7 + $0x150] ss:$8 sps:$4 sm:$0xff]  }
 0x414   :  { %6567 = vrsqrt.f32 %v1458_v37  ;;  %v6286_v37 = vld [vmem:[%s8483_s7 + $0x164] ss:$8 sps:$4 sm:$0xff]  }
 0x41e   :  { %v6568_v31 = vpop.eup %6567 }
 0x41f   :  { %v1460_v42 = vmul.f32 %v6568_v31, %v1456_v40  ;;  %v6284_v40 = vld [vmem:[%s8483_s7 + $0x160] ss:$8 sps:$4 sm:$0xff]   ;;  %v6289_v31 = vld [vmem:[%s8483_s7 + $0x174] ss:$8 sps:$4 sm:$0xff]  }
 0x421   :  { %5115 = vmatmul.mubr.msk.f32.vlgmr.msra.gmra.mrb[28].mxu1 %vm1467_vm2, %v1460_v42  ;;  %v1461_v32 = vmul.f32 %v1460_v42, %v1381_v8  ;;  %v6274_v8 = vld [vmem:[%s8483_s7 + $0x124] ss:$8 sps:$4 sm:$0xff]   ;;  %v6287_v42 = vld [vmem:[%s8483_s7 + $0x170] ss:$8 sps:$4 sm:$0xff]  }
 0x422   :  { %5934 = vmatpush1.bf16.msra.mxu1 %v5929_v59  ;;  %1609 = vmatprep.mubr.f32.mxu1 %v6603_v56  ;;  %v6265_v59 = vld [vmem:[%s8482_s6 + $0x18] sm:$0x3f]  }
 0x423   :  { %v1462_v45 = vsub.f32 %v1457_v43, %v1461_v32  ;;  %v6292_v43 = vld [vmem:[%s8483_s7 + $0x184] ss:$8 sps:$4 sm:$0xff]   ;;  %v6290_v32 = vld [vmem:[%s8483_s7 + $0x180] ss:$8 sps:$4 sm:$0xff]  }
 0x425   :  { %5116 = vmatmul.mubr.msk.f32.vlgmr.msra.gmra.mrb[30].mxu1 %vm1467_vm2, %v1462_v45  ;;  %v6295_v45 = vld [vmem:[%s8483_s7 + $0x194] ss:$8 sps:$4 sm:$0xff]  }
 0x426   :  { %1703 = vmatprep.mubr.bf16.mxu1 %v6602_v26 }
 0x4f4   :  { %v1537_v51 = vpop.f32.mrb[28].mxu1 }
 0x4f5   :  { %v1619_v52 = vrot.slane %v1537_v51, %v7302_v49  ;;  %v1539_v54 = vpop.f32.mrb[29].mxu1  ;;  %v6296_v51 = vld [vmem:[%s8483_s7 + $0x1a0] ss:$8 sps:$4 sm:$0xff]  }
 0x4f6   :  { %v1623_v55 = vrot.slane %v1539_v54, %v7302_v49  ;;  %v6299_v54 = vld [vmem:[%s8483_s7 + $0x1b0] ss:$8 sps:$4 sm:$0xff]  }
 0x4f7   :  { %v1624_v57 = vmul.f32 %v7219_v7, %v1619_v52  ;;  %v1626_v33 = vmul.f32 %v7225_v13, %v1619_v52  ;;  %v1628_v60 = vmul.f32 %v7235_v17, %v1619_v52  ;;  %v1630_v61 = vmul.f32 %v7246_v23, %v1619_v52  ;;  %v6301_v52 = vld [vmem:[%s8483_s7 + $0x1b4] ss:$8 sps:$4 sm:$0xff]  }
 0x4f8   :  { %v1611_v58 = vpop.f32.mrb[30].mxu1  ;;  %v1625_v63 = vmul.f32 %v7222_v11, %v1623_v55  ;;  %v1627_v3 = vmul.f32 %v7228_v15, %v1623_v55  ;;  %v1629_v4 = vmul.f32 %v7242_v29, %v1623_v55  ;;  %v1631_v6 = vmul.f32 %v7252_v39, %v1623_v55  ;;  %v6304_v55 = vld [vmem:[%s8483_s7 + $0x1c4] ss:$8 sps:$4 sm:$0xff]  }
 0x4f9   :  { %v1635_v0 = vrot.slane %v1611_v58, %v7302_v49  ;;  %v1613_v2 = vpop.f32.mrb[31].mxu1  ;;  %v6305_v58 = vld [vmem:[%s8483_s7 + $0x1d0] ss:$8 sps:$4 sm:$0xff]  }
 0x4fa   :  { %v1639_v7 = vrot.slane %v1613_v2, %v7302_v49  ;;  %v6316_v2 = vld [vmem:[%s8483_s7 + $0x4] ss:$8 sps:$4 sm:$0xff]  }
 0x4fb   :  { %v1640_v9 = vadd.f32 %v1635_v0, %v1624_v57  ;;  %v1642_v13 = vadd.f32 %v1635_v0, %v1626_v33  ;;  %v1644_v10 = vadd.f32 %v1635_v0, %v1628_v60  ;;  %v1646_v12 = vadd.f32 %v1635_v0, %v1630_v61  ;;  %v6302_v57 = vld [vmem:[%s8483_s7 + $0x1c0] ss:$8 sps:$4 sm:$0xff]   ;;  %v6307_v33 = vld [vmem:[%s8483_s7 + $0x1d4] ss:$8 sps:$4 sm:$0xff]   ;;  %v6310_v61 = vld [vmem:[%s8483_s7 + $0x1e4] ss:$8 sps:$4 sm:$0xff]  }
 0x4fc   :  { %v1641_v17 = vadd.f32 %v1639_v7, %v1625_v63  ;;  %v1643_v14 = vadd.f32 %v1639_v7, %v1627_v3  ;;  %v1645_v23 = vadd.f32 %v1639_v7, %v1629_v4  ;;  %v1647_v16 = vadd.f32 %v1639_v7, %v1631_v6  ;;  %v6308_v60 = vld [vmem:[%s8483_s7 + $0x1e0] ss:$8 sps:$4 sm:$0xff]   ;;  %v6313_v63 = vld [vmem:[%s8483_s7 + $0x1f4] ss:$8 sps:$4 sm:$0xff]   ;;  %v6311_v0 = vld [vmem:[%s8483_s7 + $0x1f0] ss:$8 sps:$4 sm:$0xff]  }
 0x4fd   :  { %v1648_v11 = vmax.f32 %v1640_v9, 0.0  ;;  %v1650_v22 = vmax.f32 %v1642_v13, 0.0  ;;  %v1652_v25 = vmax.f32 %v1644_v10, 0.0  ;;  %v1654_v24 = vmax.f32 %v1646_v12, 0.0  ;;  %v6341_v3 = vld [vmem:[%s8482_s6 + $0x20] sm:$0x3f]  }
 0x4fe   :  { %v1649_v27 = vmax.f32 %v1641_v17, 0.0  ;;  %v1651_v15 = vmax.f32 %v1643_v14, 0.0  ;;  %v1653_v21 = vmax.f32 %v1645_v23, 0.0  ;;  %v1655_v29 = vmax.f32 %v1647_v16, 0.0 }
 0x4ff   :  { %v1656_v35 = vpack.c.bf16 %v1650_v22, %v1648_v11  ;;  %v1658_v39 = vpack.c.bf16 %v1654_v24, %v1652_v25 }
 0x500   :  { %v1657_v38 = vpack.c.bf16 %v1651_v15, %v1649_v27  ;;  %v1659_v41 = vpack.c.bf16 %v1655_v29, %v1653_v21  ;;  %v6314_v29 = vld [vmem:[%s8483_s7] ss:$8 sps:$4 sm:$0xff]  }
 0x502   :  { %1671 = vmatprep.subr.bf16.mxu1 %v1657_v38  ;;  %2254 = vmatprep.subr.bf16.mxu0 %v1657_v38 }
 0x503   :  { %1672 = vmatpush1.bf16.msra.mxu1 %v1656_v35  ;;  %2255 = vmatpush1.bf16.msra.mxu0 %v1656_v35 }
 0x504   :  { %1673 = vmatprep.subr.bf16.mxu1 %v1659_v41  ;;  %2256 = vmatprep.subr.bf16.mxu0 %v1659_v41 }
 0x507   :  { %1674 = vmatpush1.bf16.msra.mxu1 %v1658_v39  ;;  %2257 = vmatpush1.bf16.msra.mxu0 %v1658_v39 }
 0x508   :  { %1759 = vmatprep.subr.bf16.mxu1 %v1657_v38  ;;  %2550 = vmatprep.subr.bf16.mxu0 %v1657_v38 }
 0x50a   :  { %5118 = vmatmul.mubr.msk.bf16.vlgmr.msra.gmra.mrb[32].mxu1 %vm1667_vm3, %v6262_v44  ;;  %5222 = vmatmul.mubr.msk.bf16.vlgmr.msra.gmra.mrb[12].mxu0 %vm1667_vm3, %v6263_v47  ;;  %v6325_v44 = vld [vmem:[%s8483_s7 + $0x34] ss:$8 sps:$4 sm:$0xff]   ;;  %v6323_v47 = vld [vmem:[%s8483_s7 + $0x30] ss:$8 sps:$4 sm:$0xff]  }
 0x50b   :  { %1760 = vmatpush1.bf16.msra.mxu1 %v1656_v35  ;;  %2551 = vmatpush1.bf16.msra.mxu0 %v1656_v35 }
 0x50c   :  { %1761 = vmatprep.subr.bf16.mxu1 %v1659_v41  ;;  %2552 = vmatprep.subr.bf16.mxu0 %v1659_v41 }
 0x50d   :  { %1791 = vmatprep.mubr.bf16.mxu1 %v6602_v26  ;;  %2582 = vmatprep.mubr.bf16.mxu0 %v6602_v26 }
 0x50f   :  { %1762 = vmatpush1.bf16.msra.mxu1 %v1658_v39  ;;  %2553 = vmatpush1.bf16.msra.mxu0 %v1658_v39 }
 0x510   :  { %2846 = vmatprep.subr.bf16.mxu0 %v1657_v38  ;;  %1997 = vmatprep.subr.bf16.mxu1 %v6268_v50  ;;  %v6322_v38 = vld [vmem:[%s8483_s7 + $0x24] ss:$8 sps:$4 sm:$0xff]  }
 0x511   :  { %v6328_v50 = vld [vmem:[%s8483_s7 + $0x44] ss:$8 sps:$4 sm:$0xff]  }
 0x512   :  { %5122 = vmatmul.mubr.msk.bf16.vlgmr.msra.gmra.mrb[36].mxu1 %vm1667_vm3, %v6264_v53  ;;  %5290 = vmatmul.mubr.msk.bf16.vlgmr.msra.gmra.mrb[16].mxu0 %vm1667_vm3, %v6265_v59  ;;  %v6326_v53 = vld [vmem:[%s8483_s7 + $0x40] ss:$8 sps:$4 sm:$0xff]   ;;  %v6331_v59 = vld [vmem:[%s8483_s7 + $0x54] ss:$8 sps:$4 sm:$0xff]  }
 0x513   :  { %2847 = vmatpush1.bf16.msra.mxu0 %v1656_v35  ;;  %1998 = vmatpush1.bf16.msra.mxu1 %v6266_v62  ;;  %v6319_v35 = vld [vmem:[%s8483_s7 + $0x14] ss:$8 sps:$4 sm:$0xff]   ;;  %v6329_v62 = vld [vmem:[%s8483_s7 + $0x50] ss:$8 sps:$4 sm:$0xff]  }
 0x514   :  { %2848 = vmatprep.subr.bf16.mxu0 %v1659_v41  ;;  %1999 = vmatprep.subr.bf16.mxu1 %v6271_v1  ;;  %v6320_v41 = vld [vmem:[%s8483_s7 + $0x20] ss:$8 sps:$4 sm:$0xff]   ;;  %v6334_v1 = vld [vmem:[%s8483_s7 + $0x64] ss:$8 sps:$4 sm:$0xff]  }
 0x515   :  { %2878 = vmatprep.mubr.bf16.mxu0 %v6602_v26 }
 0x517   :  { %2849 = vmatpush1.bf16.msra.mxu0 %v1658_v39  ;;  %2000 = vmatpush1.bf16.msra.mxu1 %v6269_v5  ;;  %v6317_v39 = vld [vmem:[%s8483_s7 + $0x10] ss:$8 sps:$4 sm:$0xff]   ;;  %v6332_v5 = vld [vmem:[%s8483_s7 + $0x60] ss:$8 sps:$4 sm:$0xff]  }
 0x518   :  { %2001 = vmatprep.subr.bf16.mxu1 %v6274_v8  ;;  %v6337_v8 = vld [vmem:[%s8483_s7 + $0x74] ss:$8 sps:$4 sm:$0xff]  }
 0x51a   :  { %5358 = vmatmul.mubr.msk.bf16.vlgmr.msra.gmra.mrb[20].mxu0 %vm1667_vm3, %v6341_v3  ;;  %v6369_v3 = vld [vmem:[%s8483_s7 + $0x220] ss:$8 sps:$4 sm:$0xff]  }
 0x51b   :  { %2002 = vmatpush1.bf16.msra.mxu1 %v6272_v18  ;;  %v6335_v18 = vld [vmem:[%s8483_s7 + $0x70] ss:$8 sps:$4 sm:$0xff]  }
 0x51c   :  { %2003 = vmatprep.subr.bf16.mxu1 %v6277_v28  ;;  %v6340_v28 = vld [vmem:[%s8483_s7 + $0x84] ss:$8 sps:$4 sm:$0xff]  }
 0x51f   :  { %2004 = vmatpush1.bf16.msra.mxu1 %v6275_v19  ;;  %v6338_v19 = vld [vmem:[%s8483_s7 + $0x80] ss:$8 sps:$4 sm:$0xff]  }
 0x520   :  { %2005 = vmatprep.subr.bf16.mxu1 %v6280_v20  ;;  %v6344_v20 = vld [vmem:[%s8483_s7 + $0x94] ss:$8 sps:$4 sm:$0xff]  }
 0x523   :  { %2006 = vmatpush1.bf16.msra.mxu1 %v6278_v34  ;;  %v6342_v34 = vld [vmem:[%s8483_s7 + $0x90] ss:$8 sps:$4 sm:$0xff]  }
 0x524   :  { %2007 = vmatprep.subr.bf16.mxu1 %v6283_v36  ;;  %v6347_v36 = vld [vmem:[%s8483_s7 + $0xa4] ss:$8 sps:$4 sm:$0xff]  }
 0x527   :  { %2008 = vmatpush1.bf16.msra.mxu1 %v6281_v30  ;;  %v6345_v30 = vld [vmem:[%s8483_s7 + $0xa0] ss:$8 sps:$4 sm:$0xff]  }
 0x528   :  { %2009 = vmatprep.subr.bf16.mxu1 %v6286_v37  ;;  %v6350_v37 = vld [vmem:[%s8483_s7 + $0xb4] ss:$8 sps:$4 sm:$0xff]  }
 0x52b   :  { %2010 = vmatpush1.bf16.msra.mxu1 %v6284_v40  ;;  %v6348_v40 = vld [vmem:[%s8483_s7 + $0xb0] ss:$8 sps:$4 sm:$0xff]  }
 0x52c   :  { %2011 = vmatprep.subr.bf16.mxu1 %v6289_v31  ;;  %v6353_v31 = vld [vmem:[%s8483_s7 + $0xc4] ss:$8 sps:$4 sm:$0xff]  }
 0x52f   :  { %2012 = vmatpush1.bf16.msra.mxu1 %v6287_v42  ;;  %v6351_v42 = vld [vmem:[%s8483_s7 + $0xc0] ss:$8 sps:$4 sm:$0xff]  }
 0x530   :  { %2013 = vmatprep.subr.bf16.mxu1 %v6292_v43  ;;  %v6356_v43 = vld [vmem:[%s8483_s7 + $0xd4] ss:$8 sps:$4 sm:$0xff]  }
 0x533   :  { %2014 = vmatpush1.bf16.msra.mxu1 %v6290_v32  ;;  %v6354_v32 = vld [vmem:[%s8483_s7 + $0xd0] ss:$8 sps:$4 sm:$0xff]  }
 0x534   :  { %2015 = vmatprep.subr.bf16.mxu1 %v6295_v45  ;;  %v6359_v45 = vld [vmem:[%s8483_s7 + $0xe4] ss:$8 sps:$4 sm:$0xff]  }
 0x537   :  { %2016 = vmatpush1.bf16.msra.mxu1 %v6293_v46  ;;  %v6357_v46 = vld [vmem:[%s8483_s7 + $0xe0] ss:$8 sps:$4 sm:$0xff]  }
 0x538   :  { %2017 = vmatprep.subr.bf16.mxu1 %v6298_v48 }
 0x53b   :  { %2018 = vmatpush1.bf16.msra.mxu1 %v6296_v51  ;;  %v6362_v51 = vld [vmem:[%s8483_s7 + $0xf4] ss:$8 sps:$4 sm:$0xff]  }
 0x53c   :  { %2019 = vmatprep.subr.bf16.mxu1 %v6301_v52 }
 0x53f   :  { %2020 = vmatpush1.bf16.msra.mxu1 %v6299_v54 }
 0x540   :  { %2021 = vmatprep.subr.bf16.mxu1 %v6304_v55 }
 0x543   :  { %2022 = vmatpush1.bf16.msra.mxu1 %v6302_v57  ;;  %v6360_v57 = vld [vmem:[%s8483_s7 + $0xf0] ss:$8 sps:$4 sm:$0xff]  }
 0x544   :  { %2023 = vmatprep.subr.bf16.mxu1 %v6307_v33 }
 0x547   :  { %2024 = vmatpush1.bf16.msra.mxu1 %v6305_v58  ;;  %v6365_v58 = vld [vmem:[%s8483_s7 + $0x204] ss:$8 sps:$4 sm:$0xff]  }
 0x548   :  { %2025 = vmatprep.subr.bf16.mxu1 %v6310_v61  ;;  %v6363_v61 = vld [vmem:[%s8483_s7 + $0x200] ss:$8 sps:$4 sm:$0xff]  }
 0x54b   :  { %2026 = vmatpush1.bf16.msra.mxu1 %v6308_v60 }
 0x54c   :  { %2027 = vmatprep.subr.bf16.mxu1 %v6313_v63  ;;  %v6368_v63 = vld [vmem:[%s8483_s7 + $0x214] ss:$8 sps:$4 sm:$0xff]  }
 0x54f   :  { %2028 = vmatpush1.bf16.msra.mxu1 %v6311_v0  ;;  %v6366_v0 = vld [vmem:[%s8483_s7 + $0x210] ss:$8 sps:$4 sm:$0xff]  }
 0x550   :  { %2200 = vmatprep.subr.bf16.mxu1 %v6316_v2  ;;  %v6371_v2 = vld [vmem:[%s8483_s7 + $0x224] ss:$8 sps:$4 sm:$0xff]  }
 0x5dd   :  { %v7438_v4 = vpop.f32.mrb[32].mxu1  ;;  %v7444_v12 = vpop.f32.mrb[12].mxu0 }
 0x5de   :  { %v1707_v6 = vpop.f32.mrb[33].mxu1  ;;  %v7446_v17 = vpop.f32.mrb[13].mxu0 }
 0x5df   :  { %v7440_v7 = vpop.f32.mrb[34].mxu1  ;;  %v7448_v14 = vpop.f32.mrb[14].mxu0 }
 0x5e0   :  { %v1714_v9 = vpack.c.bf16 %v7440_v7, %v7438_v4  ;;  %v1711_v13 = vpop.f32.mrb[35].mxu1  ;;  %v2297_v23 = vpack.c.bf16 %v7448_v14, %v7444_v12  ;;  %v7452_v11 = vpop.f32.mrb[15].mxu0  ;;  %v6374_v4 = vld [vmem:[%s8483_s7 + $0x234] ss:$8 sps:$4 sm:$0xff]   ;;  %v6377_v7 = vld [vmem:[%s8483_s7 + $0x244] ss:$8 sps:$4 sm:$0xff]  }
 0x5e1   :  { %v1715_v10 = vpack.c.bf16 %v1711_v13, %v1707_v6  ;;  %v2298_v25 = vpack.c.bf16 %v7452_v11, %v7446_v17  ;;  %v6372_v6 = vld [vmem:[%s8483_s7 + $0x230] ss:$8 sps:$4 sm:$0xff]   ;;  %v6380_v13 = vld [vmem:[%s8483_s7 + $0x254] ss:$8 sps:$4 sm:$0xff]   ;;  %v6383_v17 = vld [vmem:[%s8483_s7 + $0x264] ss:$8 sps:$4 sm:$0xff]  }
 0x5e2   :  { %v6386_v11 = vld [vmem:[%s8483_s7 + $0x274] ss:$8 sps:$4 sm:$0xff]  }
 0x5e3   :  { %v3174_v14 = vld [vmem:[%s8485_s9 + $0x18] sm:$0xff] }
 0x5e5   :  { %v1793_v16 = vpop.f32.mrb[36].mxu1  ;;  %v7543_v48 = vpop.f32.mrb[16].mxu0 }
 0x5e6   :  { %v1795_v22 = vpop.f32.mrb[37].mxu1  ;;  %v7548_v52 = vpop.f32.mrb[17].mxu0 }
 0x5e7   :  { %v1797_v24 = vpop.f32.mrb[38].mxu1  ;;  %v7550_v54 = vpop.f32.mrb[18].mxu0 }
 0x5e8   :  { %v1802_v27 = vpack.c.bf16 %v1797_v24, %v1793_v16  ;;  %v1799_v15 = vpop.f32.mrb[39].mxu1  ;;  %v2593_v55 = vpack.c.bf16 %v7550_v54, %v7543_v48  ;;  %v7557_v33 = vpop.f32.mrb[19].mxu0  ;;  %v6381_v16 = vld [vmem:[%s8483_s7 + $0x260] ss:$8 sps:$4 sm:$0xff]   ;;  %v6470_v54 = vld [vmem:[%s8483_s7 + $0x434] ss:$8 sps:$4 sm:$0xff]  }
 0x5e9   :  { %v1803_v21 = vpack.c.bf16 %v1799_v15, %v1795_v22  ;;  %v2594_v60 = vpack.c.bf16 %v7557_v33, %v7548_v52  ;;  %v6384_v22 = vld [vmem:[%s8483_s7 + $0x270] ss:$8 sps:$4 sm:$0xff]   ;;  %v6387_v24 = vld [vmem:[%s8483_s7 + $0x280] ss:$8 sps:$4 sm:$0xff]  }
 0x5ea   :  { %v6390_v15 = vld [vmem:[%s8483_s7 + $0x290] ss:$8 sps:$4 sm:$0xff]   ;;  %v6465_v48 = vld [vmem:[%s8483_s7 + $0x420] ss:$8 sps:$4 sm:$0xff]  }
 0x5eb   :  { %2029 = vmatprep.mubr.bf16.mxu1 %v1803_v21  ;;  %v6395_v21 = vld [vmem:[%s8483_s7 + $0x2a4] ss:$8 sps:$4 sm:$0xff]   ;;  %v3178_v33 = vld [vmem:[%s8485_s9 + $0x38] sm:$0xff] }
 0x5ec   :  { %2030 = vmatmul.mubr.bf16.vlgmr.msra.gmra.mrb[40].mxu1 %v1802_v27  ;;  %v6392_v27 = vld [vmem:[%s8483_s7 + $0x294] ss:$8 sps:$4 sm:$0xff]  }
 0x5ed   :  { %2201 = vmatpush1.bf16.msra.mxu1 %v6314_v29  ;;  %2232 = vmatprep.mubr.bf16.mxu1 %v1715_v10  ;;  %v6378_v10 = vld [vmem:[%s8483_s7 + $0x250] ss:$8 sps:$4 sm:$0xff]   ;;  %v6393_v29 = vld [vmem:[%s8483_s7 + $0x2a0] ss:$8 sps:$4 sm:$0xff]  }
 0x5ee   :  { %2202 = vmatprep.subr.bf16.mxu1 %v6319_v35  ;;  %v6398_v35 = vld [vmem:[%s8483_s7 + $0x2b4] ss:$8 sps:$4 sm:$0xff]  }
 0x5f1   :  { %2203 = vmatpush1.bf16.msra.mxu1 %v6317_v39  ;;  %v6396_v39 = vld [vmem:[%s8483_s7 + $0x2b0] ss:$8 sps:$4 sm:$0xff]  }
 0x5f2   :  { %2204 = vmatprep.subr.bf16.mxu1 %v6322_v38  ;;  %v6401_v38 = vld [vmem:[%s8483_s7 + $0x2c4] ss:$8 sps:$4 sm:$0xff]  }
 0x5f5   :  { %2205 = vmatpush1.bf16.msra.mxu1 %v6320_v41  ;;  %v6399_v41 = vld [vmem:[%s8483_s7 + $0x2c0] ss:$8 sps:$4 sm:$0xff]  }
 0x5f6   :  { %2206 = vmatprep.subr.bf16.mxu1 %v6325_v44  ;;  %v6404_v44 = vld [vmem:[%s8483_s7 + $0x2d4] ss:$8 sps:$4 sm:$0xff]  }
 0x5f9   :  { %2207 = vmatpush1.bf16.msra.mxu1 %v6323_v47  ;;  %v6402_v47 = vld [vmem:[%s8483_s7 + $0x2d0] ss:$8 sps:$4 sm:$0xff]  }
 0x5fa   :  { %2208 = vmatprep.subr.bf16.mxu1 %v6328_v50  ;;  %v6407_v50 = vld [vmem:[%s8483_s7 + $0x2e4] ss:$8 sps:$4 sm:$0xff]  }
 0x5fd   :  { %2209 = vmatpush1.bf16.msra.mxu1 %v6326_v53  ;;  %v6405_v53 = vld [vmem:[%s8483_s7 + $0x2e0] ss:$8 sps:$4 sm:$0xff]  }
 0x5fe   :  { %2210 = vmatprep.subr.bf16.mxu1 %v6331_v59  ;;  %v6410_v59 = vld [vmem:[%s8483_s7 + $0x2f4] ss:$8 sps:$4 sm:$0xff]  }
 0x601   :  { %2211 = vmatpush1.bf16.msra.mxu1 %v6329_v62  ;;  %v7660_v62 = vpop.f32.mrb[20].mxu0 }
 0x602   :  { %2212 = vmatprep.subr.bf16.mxu1 %v6334_v1  ;;  %v7662_v1 = vpop.f32.mrb[21].mxu0 }
 0x605   :  { %2213 = vmatpush1.bf16.msra.mxu1 %v6332_v5  ;;  %v7664_v5 = vpop.f32.mrb[22].mxu0 }
 0x606   :  { %2214 = vmatprep.subr.bf16.mxu1 %v6337_v8  ;;  %v6408_v8 = vld [vmem:[%s8483_s7 + $0x2f0] ss:$8 sps:$4 sm:$0xff]  }
 0x609   :  { %2215 = vmatpush1.bf16.msra.mxu1 %v6335_v18  ;;  %v2889_v18 = vpack.c.bf16 %v7664_v5, %v7660_v62  ;;  %v3187_v62 = vld [vmem:[%s8485_s9 + $0x80] sm:$0xff]  ;;  %v3188_v5 = vld [vmem:[%s8485_s9 + $0x88] sm:$0xff] }
 0x60a   :  { %2216 = vmatprep.subr.bf16.mxu1 %v6340_v28  ;;  %v7671_v28 = vpop.f32.mrb[23].mxu0 }
 0x60d   :  { %2217 = vmatpush1.bf16.msra.mxu1 %v6338_v19  ;;  %v6413_v19 = vld [vmem:[%s8483_s7 + $0x304] ss:$8 sps:$4 sm:$0xff]  }
 0x60e   :  { %2218 = vmatprep.subr.bf16.mxu1 %v6344_v20  ;;  %v2890_v20 = vpack.c.bf16 %v7671_v28, %v7662_v1  ;;  %v6473_v1 = vld [vmem:[%s8483_s7 + $0x444] ss:$8 sps:$4 sm:$0xff]   ;;  %v6471_v28 = vld [vmem:[%s8483_s7 + $0x440] ss:$8 sps:$4 sm:$0xff]  }
 0x611   :  { %2219 = vmatpush1.bf16.msra.mxu1 %v6342_v34  ;;  %v6411_v34 = vld [vmem:[%s8483_s7 + $0x300] ss:$8 sps:$4 sm:$0xff]  }
 0x612   :  { %2220 = vmatprep.subr.bf16.mxu1 %v6347_v36  ;;  %v6416_v36 = vld [vmem:[%s8483_s7 + $0x314] ss:$8 sps:$4 sm:$0xff]  }
 0x615   :  { %2221 = vmatpush1.bf16.msra.mxu1 %v6345_v30  ;;  %v3171_v30 = vld [vmem:[%s8485_s9] sm:$0xff] }
 0x616   :  { %2222 = vmatprep.subr.bf16.mxu1 %v6350_v37  ;;  %v3172_v37 = vld [vmem:[%s8485_s9 + $0x8] sm:$0xff] }
 0x617   :  { %v7702_v12 = vpack.c.bf16 %v3172_v37, %v3171_v30  ;;  %v6459_v30 = vld [vmem:[%s8483_s7 + $0x400] ss:$8 sps:$4 sm:$0xff]   ;;  %v6464_v37 = vld [vmem:[%s8483_s7 + $0x414] ss:$8 sps:$4 sm:$0xff]  }
 0x619   :  { %2223 = vmatpush1.bf16.msra.mxu1 %v6348_v40  ;;  %v3173_v40 = vld [vmem:[%s8485_s9 + $0x10] sm:$0xff] }
 0x61a   :  { %2224 = vmatprep.subr.bf16.mxu1 %v6353_v31  ;;  %v6414_v31 = vld [vmem:[%s8483_s7 + $0x310] ss:$8 sps:$4 sm:$0xff]  }
 0x61d   :  { %2225 = vmatpush1.bf16.msra.mxu1 %v6351_v42  ;;  %v6604_v42 = vmov 0.0|0.0  }
 0x61e   :  { %2226 = vmatprep.subr.bf16.mxu1 %v6356_v43  ;;  %5935 = vmatprep.subr.bf16.mxu0 %v6604_v42  ;;  %v7712_v43 = vpack.c.bf16 %v3174_v14, %v3173_v40  ;;  %v6462_v40 = vld [vmem:[%s8483_s7 + $0x410] ss:$8 sps:$4 sm:$0xff]  }
 0x61f   :  { %5937 = vmatpush1.bf16.msra.mxu0 %v7702_v12  ;;  %v6474_v14 = vld [vmem:[%s8483_s7 + $0x450] ss:$8 sps:$4 sm:$0xff]  }
 0x620   :  { %5938 = vmatprep.subr.bf16.mxu0 %v6604_v42 }
 0x621   :  { %2227 = vmatpush1.bf16.msra.mxu1 %v6354_v32  ;;  %v3175_v32 = vld [vmem:[%s8485_s9 + $0x20] sm:$0xff] }
 0x622   :  { %2228 = vmatprep.subr.bf16.mxu1 %v6359_v45  ;;  %v3176_v45 = vld [vmem:[%s8485_s9 + $0x28] sm:$0xff] }
 0x623   :  { %5940 = vmatpush1.bf16.msra.mxu0 %v7712_v43  ;;  %v7728_v52 = vpack.c.bf16 %v3176_v45, %v3175_v32  ;;  %v6477_v32 = vld [vmem:[%s8483_s7 + $0x460] ss:$8 sps:$4 sm:$0xff]   ;;  %v6482_v45 = vld [vmem:[%s8483_s7 + $0x474] ss:$8 sps:$4 sm:$0xff]  }
 0x624   :  { %5941 = vmatprep.subr.bf16.mxu0 %v6604_v42 }
 0x625   :  { %2229 = vmatpush1.bf16.msra.mxu1 %v6357_v46  ;;  %v6417_v46 = vld [vmem:[%s8483_s7 + $0x320] ss:$8 sps:$4 sm:$0xff]  }
 0x626   :  { %2230 = vmatprep.subr.bf16.mxu1 %v6362_v51  ;;  %v6422_v51 = vld [vmem:[%s8483_s7 + $0x334] ss:$8 sps:$4 sm:$0xff]  }
 0x627   :  { %5943 = vmatpush1.bf16.msra.mxu0 %v7728_v52 }
 0x628   :  { %5944 = vmatprep.subr.bf16.mxu0 %v6604_v42 }
 0x629   :  { %2231 = vmatpush1.bf16.msra.mxu1 %v6360_v57  ;;  %v3177_v57 = vld [vmem:[%s8485_s9 + $0x30] sm:$0xff] }
 0x62a   :  { %2492 = vmatprep.subr.bf16.mxu1 %v6365_v58  ;;  %v6420_v58 = vld [vmem:[%s8483_s7 + $0x330] ss:$8 sps:$4 sm:$0xff]  }
 0x62c   :  { %2233 = vmatmul.mubr.bf16.vlgmr.msra.gmra.mrb[40].mxu1 %v1714_v9  ;;  %v6375_v9 = vld [vmem:[%s8483_s7 + $0x240] ss:$8 sps:$4 sm:$0xff]  }
 0x62d   :  { %2493 = vmatpush1.bf16.msra.mxu1 %v6363_v61  ;;  %2524 = vmatprep.mubr.bf16.mxu1 %v2298_v25  ;;  %v6389_v25 = vld [vmem:[%s8483_s7 + $0x284] ss:$8 sps:$4 sm:$0xff]   ;;  %v7744_v61 = vpack.c.bf16 %v3178_v33, %v3177_v57  ;;  %v6483_v57 = vld [vmem:[%s8483_s7 + $0x480] ss:$8 sps:$4 sm:$0xff]   ;;  %v6488_v33 = vld [vmem:[%s8483_s7 + $0x494] ss:$8 sps:$4 sm:$0xff]  }
 0x62e   :  { %2494 = vmatprep.subr.bf16.mxu1 %v6368_v63  ;;  %v3179_v63 = vld [vmem:[%s8485_s9 + $0x40] sm:$0xff] }
 0x62f   :  { %5946 = vmatpush1.bf16.msra.mxu0 %v7744_v61 }
 0x630   :  { %5947 = vmatprep.subr.bf16.mxu0 %v6604_v42 }
 0x631   :  { %2495 = vmatpush1.bf16.msra.mxu1 %v6366_v0  ;;  %v3180_v0 = vld [vmem:[%s8485_s9 + $0x48] sm:$0xff] }
 0x632   :  { %2496 = vmatprep.subr.bf16.mxu1 %v6371_v2  ;;  %v6423_v2 = vld [vmem:[%s8483_s7 + $0x340] ss:$8 sps:$4 sm:$0xff]  }
 0x635   :  { %2497 = vmatpush1.bf16.msra.mxu1 %v6369_v3  ;;  %v6428_v3 = vld [vmem:[%s8483_s7 + $0x354] ss:$8 sps:$4 sm:$0xff]  }
 0x636   :  { %2498 = vmatprep.subr.bf16.mxu1 %v6374_v4  ;;  %v7760_v4 = vpack.c.bf16 %v3180_v0, %v3179_v63  ;;  %v6489_v63 = vld [vmem:[%s8483_s7 + $0x4a0] ss:$8 sps:$4 sm:$0xff]   ;;  %v6494_v0 = vld [vmem:[%s8483_s7 + $0x4b4] ss:$8 sps:$4 sm:$0xff]  }
 0x638   :  { %5949 = vmatpush1.bf16.msra.mxu0 %v7760_v4 }
 0x639   :  { %2499 = vmatpush1.bf16.msra.mxu1 %v6372_v6  ;;  %v3181_v6 = vld [vmem:[%s8485_s9 + $0x50] sm:$0xff]  ;;  %5950 = vmatprep.subr.bf16.mxu0 %v6604_v42 }
 0x63a   :  { %2500 = vmatprep.subr.bf16.mxu1 %v6377_v7  ;;  %v3182_v7 = vld [vmem:[%s8485_s9 + $0x58] sm:$0xff] }
 0x63d   :  { %2501 = vmatpush1.bf16.msra.mxu1 %v6375_v9  ;;  %v6426_v9 = vld [vmem:[%s8483_s7 + $0x350] ss:$8 sps:$4 sm:$0xff]  }
 0x63e   :  { %2502 = vmatprep.subr.bf16.mxu1 %v6380_v13  ;;  %v6431_v13 = vld [vmem:[%s8483_s7 + $0x364] ss:$8 sps:$4 sm:$0xff]  }
 0x641   :  { %2503 = vmatpush1.bf16.msra.mxu1 %v6378_v10  ;;  %v7776_v10 = vpack.c.bf16 %v3182_v7, %v3181_v6  ;;  %v6495_v6 = vld [vmem:[%s8483_s7 + $0x4c0] ss:$8 sps:$4 sm:$0xff]   ;;  %v6500_v7 = vld [vmem:[%s8483_s7 + $0x4d4] ss:$8 sps:$4 sm:$0xff]  }
 0x642   :  { %2504 = vmatprep.subr.bf16.mxu1 %v6383_v17  ;;  %v3183_v17 = vld [vmem:[%s8485_s9 + $0x60] sm:$0xff] }
 0x643   :  { %5952 = vmatpush1.bf16.msra.mxu0 %v7776_v10 }
 0x644   :  { %5953 = vmatprep.subr.bf16.mxu0 %v6604_v42 }
 0x645   :  { %2505 = vmatpush1.bf16.msra.mxu1 %v6381_v16  ;;  %v3184_v16 = vld [vmem:[%s8485_s9 + $0x68] sm:$0xff] }
 0x646   :  { %2506 = vmatprep.subr.bf16.mxu1 %v6386_v11  ;;  %v6429_v11 = vld [vmem:[%s8483_s7 + $0x360] ss:$8 sps:$4 sm:$0xff]  }
 0x649   :  { %2507 = vmatpush1.bf16.msra.mxu1 %v6384_v22  ;;  %v6434_v22 = vld [vmem:[%s8483_s7 + $0x374] ss:$8 sps:$4 sm:$0xff]  }
 0x64a   :  { %2508 = vmatprep.subr.bf16.mxu1 %v6389_v25  ;;  %v7792_v25 = vpack.c.bf16 %v3184_v16, %v3183_v17  ;;  %v6501_v17 = vld [vmem:[%s8483_s7 + $0x4e0] ss:$8 sps:$4 sm:$0xff]   ;;  %v6506_v16 = vld [vmem:[%s8483_s7 + $0x4f4] ss:$8 sps:$4 sm:$0xff]  }
 0x64c   :  { %5955 = vmatpush1.bf16.msra.mxu0 %v7792_v25 }
 0x64d   :  { %2509 = vmatpush1.bf16.msra.mxu1 %v6387_v24  ;;  %v6432_v24 = vld [vmem:[%s8483_s7 + $0x370] ss:$8 sps:$4 sm:$0xff]   ;;  %5956 = vmatprep.subr.bf16.mxu0 %v6604_v42 }
 0x64e   :  { %2510 = vmatprep.subr.bf16.mxu1 %v6392_v27  ;;  %v6437_v27 = vld [vmem:[%s8483_s7 + $0x384] ss:$8 sps:$4 sm:$0xff]  }
 0x651   :  { %2511 = vmatpush1.bf16.msra.mxu1 %v6390_v15  ;;  %v6435_v15 = vld [vmem:[%s8483_s7 + $0x380] ss:$8 sps:$4 sm:$0xff]  }
 0x652   :  { %2512 = vmatprep.subr.bf16.mxu1 %v6395_v21  ;;  %v6440_v21 = vld [vmem:[%s8483_s7 + $0x394] ss:$8 sps:$4 sm:$0xff]  }
 0x655   :  { %2513 = vmatpush1.bf16.msra.mxu1 %v6393_v29  ;;  %v6438_v29 = vld [vmem:[%s8483_s7 + $0x390] ss:$8 sps:$4 sm:$0xff]  }
 0x656   :  { %2514 = vmatprep.subr.bf16.mxu1 %v6398_v35  ;;  %v6443_v35 = vld [vmem:[%s8483_s7 + $0x3a4] ss:$8 sps:$4 sm:$0xff]  }
 0x659   :  { %2515 = vmatpush1.bf16.msra.mxu1 %v6396_v39  ;;  %v6441_v39 = vld [vmem:[%s8483_s7 + $0x3a0] ss:$8 sps:$4 sm:$0xff]  }
 0x65a   :  { %2516 = vmatprep.subr.bf16.mxu1 %v6401_v38  ;;  %v6446_v38 = vld [vmem:[%s8483_s7 + $0x3b4] ss:$8 sps:$4 sm:$0xff]  }
 0x65d   :  { %2517 = vmatpush1.bf16.msra.mxu1 %v6399_v41  ;;  %v6444_v41 = vld [vmem:[%s8483_s7 + $0x3b0] ss:$8 sps:$4 sm:$0xff]  }
 0x65e   :  { %2518 = vmatprep.subr.bf16.mxu1 %v6404_v44  ;;  %v6449_v44 = vld [vmem:[%s8483_s7 + $0x3c4] ss:$8 sps:$4 sm:$0xff]  }
 0x661   :  { %2519 = vmatpush1.bf16.msra.mxu1 %v6402_v47  ;;  %v6447_v47 = vld [vmem:[%s8483_s7 + $0x3c0] ss:$8 sps:$4 sm:$0xff]  }
 0x662   :  { %2520 = vmatprep.subr.bf16.mxu1 %v6407_v50  ;;  %v6452_v50 = vld [vmem:[%s8483_s7 + $0x3d4] ss:$8 sps:$4 sm:$0xff]  }
 0x665   :  { %2521 = vmatpush1.bf16.msra.mxu1 %v6405_v53  ;;  %v6450_v53 = vld [vmem:[%s8483_s7 + $0x3d0] ss:$8 sps:$4 sm:$0xff]  }
 0x666   :  { %2522 = vmatprep.subr.bf16.mxu1 %v6410_v59  ;;  %v6455_v59 = vld [vmem:[%s8483_s7 + $0x3e4] ss:$8 sps:$4 sm:$0xff]  }
 0x669   :  { %2523 = vmatpush1.bf16.msra.mxu1 %v6408_v8  ;;  %v6453_v8 = vld [vmem:[%s8483_s7 + $0x3e0] ss:$8 sps:$4 sm:$0xff]  }
 0x66a   :  { %2788 = vmatprep.subr.bf16.mxu1 %v6413_v19  ;;  %v6458_v19 = vld [vmem:[%s8483_s7 + $0x3f4] ss:$8 sps:$4 sm:$0xff]  }
 0x66c   :  { %2525 = vmatmul.mubr.bf16.vlgmr.msra.gmra.mrb[40].mxu1 %v2297_v23  ;;  %v6419_v23 = vld [vmem:[%s8483_s7 + $0x324] ss:$8 sps:$4 sm:$0xff]  }
 0x66d   :  { %2789 = vmatpush1.bf16.msra.mxu1 %v6411_v34  ;;  %2820 = vmatprep.mubr.bf16.mxu1 %v2594_v60  ;;  %v6425_v60 = vld [vmem:[%s8483_s7 + $0x344] ss:$8 sps:$4 sm:$0xff]   ;;  %v6456_v34 = vld [vmem:[%s8483_s7 + $0x3f0] ss:$8 sps:$4 sm:$0xff]  }
 0x66e   :  { %2790 = vmatprep.subr.bf16.mxu1 %v6416_v36  ;;  %v6461_v36 = vld [vmem:[%s8483_s7 + $0x404] ss:$8 sps:$4 sm:$0xff]  }
 0x671   :  { %2791 = vmatpush1.bf16.msra.mxu1 %v6414_v31  ;;  %v6467_v31 = vld [vmem:[%s8483_s7 + $0x424] ss:$8 sps:$4 sm:$0xff]  }
 0x672   :  { %2792 = vmatprep.subr.bf16.mxu1 %v6419_v23  ;;  %v6479_v23 = vld [vmem:[%s8483_s7 + $0x464] ss:$8 sps:$4 sm:$0xff]  }
 0x675   :  { %2793 = vmatpush1.bf16.msra.mxu1 %v6417_v46  ;;  %v6480_v46 = vld [vmem:[%s8483_s7 + $0x470] ss:$8 sps:$4 sm:$0xff]  }
 0x676   :  { %2794 = vmatprep.subr.bf16.mxu1 %v6422_v51  ;;  %v6485_v51 = vld [vmem:[%s8483_s7 + $0x484] ss:$8 sps:$4 sm:$0xff]  }
 0x679   :  { %2795 = vmatpush1.bf16.msra.mxu1 %v6420_v58  ;;  %v6486_v58 = vld [vmem:[%s8483_s7 + $0x490] ss:$8 sps:$4 sm:$0xff]  }
 0x67a   :  { %2796 = vmatprep.subr.bf16.mxu1 %v6425_v60  ;;  %v6491_v60 = vld [vmem:[%s8483_s7 + $0x4a4] ss:$8 sps:$4 sm:$0xff]  }
 0x67d   :  { %2797 = vmatpush1.bf16.msra.mxu1 %v6423_v2  ;;  %v6492_v2 = vld [vmem:[%s8483_s7 + $0x4b0] ss:$8 sps:$4 sm:$0xff]  }
 0x67e   :  { %2798 = vmatprep.subr.bf16.mxu1 %v6428_v3  ;;  %v6497_v3 = vld [vmem:[%s8483_s7 + $0x4c4] ss:$8 sps:$4 sm:$0xff]  }
 0x681   :  { %2799 = vmatpush1.bf16.msra.mxu1 %v6426_v9  ;;  %v6498_v9 = vld [vmem:[%s8483_s7 + $0x4d0] ss:$8 sps:$4 sm:$0xff]  }
 0x682   :  { %2800 = vmatprep.subr.bf16.mxu1 %v6431_v13  ;;  %v6503_v13 = vld [vmem:[%s8483_s7 + $0x4e4] ss:$8 sps:$4 sm:$0xff]  }
 0x685   :  { %2801 = vmatpush1.bf16.msra.mxu1 %v6429_v11  ;;  %v6504_v11 = vld [vmem:[%s8483_s7 + $0x4f0] ss:$8 sps:$4 sm:$0xff]  }
 0x686   :  { %2802 = vmatprep.subr.bf16.mxu1 %v6434_v22  ;;  %v3185_v22 = vld [vmem:[%s8485_s9 + $0x70] sm:$0xff] }
 0x689   :  { %2803 = vmatpush1.bf16.msra.mxu1 %v6432_v24  ;;  %v3186_v24 = vld [vmem:[%s8485_s9 + $0x78] sm:$0xff] }
 0x68a   :  { %2804 = vmatprep.subr.bf16.mxu1 %v6437_v27  ;;  %v7960_v27 = vpack.c.bf16 %v3186_v24, %v3185_v22  ;;  %v3356_v24 = vld [vmem:[%s8486_s10 + $0x10] sm:$0xff] }
 0x68c   :  { %5958 = vmatpush1.bf16.msra.mxu0 %v7960_v27 }
 0x68d   :  { %2805 = vmatpush1.bf16.msra.mxu1 %v6435_v15  ;;  %5959 = vmatprep.subr.bf16.mxu0 %v6604_v42  ;;  %v3189_v15 = vld [vmem:[%s8485_s9 + $0x90] sm:$0xff] }
 0x68e   :  { %2806 = vmatprep.subr.bf16.mxu1 %v6440_v21  ;;  %v3190_v21 = vld [vmem:[%s8485_s9 + $0x98] sm:$0xff] }
 0x691   :  { %2807 = vmatpush1.bf16.msra.mxu1 %v6438_v29  ;;  %v7980_v29 = vpack.c.bf16 %v3190_v21, %v3189_v15  ;;  %v3358_v15 = vld [vmem:[%s8486_s10 + $0x20] sm:$0xff]  ;;  %v3360_v21 = vld [vmem:[%s8486_s10 + $0x30] sm:$0xff] }
 0x692   :  { %2808 = vmatprep.subr.bf16.mxu1 %v6443_v35  ;;  %v3191_v35 = vld [vmem:[%s8485_s9 + $0xa0] sm:$0xff] }
 0x695   :  { %2809 = vmatpush1.bf16.msra.mxu1 %v6441_v39  ;;  %v3192_v39 = vld [vmem:[%s8485_s9 + $0xa8] sm:$0xff] }
 0x696   :  { %2810 = vmatprep.subr.bf16.mxu1 %v6446_v38  ;;  %v7990_v38 = vpack.c.bf16 %v3192_v39, %v3191_v35 }
 0x699   :  { %2811 = vmatpush1.bf16.msra.mxu1 %v6444_v41  ;;  %v3193_v41 = vld [vmem:[%s8485_s9 + $0xb0] sm:$0xff] }
 0x69a   :  { %2812 = vmatprep.subr.bf16.mxu1 %v6449_v44  ;;  %v3194_v44 = vld [vmem:[%s8485_s9 + $0xb8] sm:$0xff] }
 0x69d   :  { %2813 = vmatpush1.bf16.msra.mxu1 %v6447_v47  ;;  %v8000_v47 = vpack.c.bf16 %v3194_v44, %v3193_v41 }
 0x69e   :  { %2814 = vmatprep.subr.bf16.mxu1 %v6452_v50 }
 0x6a1   :  { %2815 = vmatpush1.bf16.msra.mxu1 %v6450_v53 }
 0x6a2   :  { %2816 = vmatprep.subr.bf16.mxu1 %v6455_v59 }
 0x6a5   :  { %2817 = vmatpush1.bf16.msra.mxu1 %v6453_v8 }
 0x6a6   :  { %2818 = vmatprep.subr.bf16.mxu1 %v6458_v19 }
 0x6a9   :  { %2819 = vmatpush1.bf16.msra.mxu1 %v6456_v34 }
 0x6aa   :  { %3084 = vmatprep.subr.bf16.mxu1 %v6461_v36 }
 0x6ac   :  { %2821 = vmatmul.mubr.bf16.vlgmr.msra.gmra.mrb[40].mxu1 %v2593_v55  ;;  %v6468_v55 = vld [vmem:[%s8483_s7 + $0x430] ss:$8 sps:$4 sm:$0xff]  }
 0x6ad   :  { %3085 = vmatpush1.bf16.msra.mxu1 %v6459_v30  ;;  %3116 = vmatprep.mubr.bf16.mxu1 %v2890_v20  ;;  %v6476_v20 = vld [vmem:[%s8483_s7 + $0x454] ss:$8 sps:$4 sm:$0xff]  }
 0x6ae   :  { %3086 = vmatprep.subr.bf16.mxu1 %v6464_v37 }
 0x6b1   :  { %3087 = vmatpush1.bf16.msra.mxu1 %v6462_v40 }
 0x6b2   :  { %3088 = vmatprep.subr.bf16.mxu1 %v6467_v31 }
 0x6b5   :  { %3089 = vmatpush1.bf16.msra.mxu1 %v6465_v48 }
 0x6b6   :  { %3090 = vmatprep.subr.bf16.mxu1 %v6470_v54 }
 0x6b9   :  { %3091 = vmatpush1.bf16.msra.mxu1 %v6468_v55 }
 0x6ba   :  { %3092 = vmatprep.subr.bf16.mxu1 %v6473_v1 }
 0x6bd   :  { %3093 = vmatpush1.bf16.msra.mxu1 %v6471_v28 }
 0x6be   :  { %3094 = vmatprep.subr.bf16.mxu1 %v6476_v20 }
 0x6c1   :  { %3095 = vmatpush1.bf16.msra.mxu1 %v6474_v14 }
 0x6c2   :  { %3096 = vmatprep.subr.bf16.mxu1 %v6479_v23 }
 0x6c5   :  { %3097 = vmatpush1.bf16.msra.mxu1 %v6477_v32 }
 0x6c6   :  { %3098 = vmatprep.subr.bf16.mxu1 %v6482_v45 }
 0x6c9   :  { %3099 = vmatpush1.bf16.msra.mxu1 %v6480_v46 }
 0x6ca   :  { %3100 = vmatprep.subr.bf16.mxu1 %v6485_v51 }
 0x6cd   :  { %3101 = vmatpush1.bf16.msra.mxu1 %v6483_v57 }
 0x6ce   :  { %3102 = vmatprep.subr.bf16.mxu1 %v6488_v33 }
 0x6d1   :  { %3103 = vmatpush1.bf16.msra.mxu1 %v6486_v58 }
 0x6d2   :  { %3104 = vmatprep.subr.bf16.mxu1 %v6491_v60 }
 0x6d5   :  { %3105 = vmatpush1.bf16.msra.mxu1 %v6489_v63 }
 0x6d6   :  { %3106 = vmatprep.subr.bf16.mxu1 %v6494_v0 }
 0x6d9   :  { %3107 = vmatpush1.bf16.msra.mxu1 %v6492_v2 }
 0x6da   :  { %3108 = vmatprep.subr.bf16.mxu1 %v6497_v3 }
 0x6dd   :  { %3109 = vmatpush1.bf16.msra.mxu1 %v6495_v6 }
 0x6de   :  { %3110 = vmatprep.subr.bf16.mxu1 %v6500_v7 }
 0x6e1   :  { %3111 = vmatpush1.bf16.msra.mxu1 %v6498_v9 }
 0x6e2   :  { %3112 = vmatprep.subr.bf16.mxu1 %v6503_v13 }
 0x6e5   :  { %3113 = vmatpush1.bf16.msra.mxu1 %v6501_v17 }
 0x6e6   :  { %3114 = vmatprep.subr.bf16.mxu1 %v6506_v16  ;;  %v3357_v16 = vld [vmem:[%s8486_s10 + $0x18] sm:$0xff] }
 0x6e9   :  { %3115 = vmatpush1.bf16.msra.mxu1 %v6504_v11  ;;  %v3354_v11 = vld [vmem:[%s8486_s10] sm:$0xff] }
 0x6ec   :  { %3117 = vmatmul.mubr.bf16.vlgmr.msra.gmra.mrb[40].mxu1 %v2889_v18  ;;  %v7970_v18 = vpack.c.bf16 %v3188_v5, %v3187_v62  ;;  %v3361_v62 = vld [vmem:[%s8486_s10 + $0x38] sm:$0xff]  ;;  %v6009_v5 = vpack.c.bf16 %v3356_v24, %v3354_v11  ;;  %v6516_v11 = vld [vmem:[%s8488_s12 + $0xa8] sm:$0xff]  }
 0x6ed   :  { %4337 = vmatprep.mubr.bf16.mxu1 %v6602_v26  ;;  %v6518_v24 = vld [vmem:[%s8488_s12 + $0xb8] sm:$0xff]  }
 0x6ee   :  { %5961 = vmatpush1.bf16.msra.mxu0 %v7970_v18 }
 0x6ef   :  { %5962 = vmatprep.subr.bf16.mxu0 %v6604_v42 }
 0x6f2   :  { %5964 = vmatpush1.bf16.msra.mxu0 %v7980_v29 }
 0x6f3   :  { %5965 = vmatprep.subr.bf16.mxu0 %v6604_v42 }
 0x6f6   :  { %5967 = vmatpush1.bf16.msra.mxu0 %v7990_v38 }
 0x6f7   :  { %5968 = vmatprep.subr.bf16.mxu0 %v6604_v42 }
 0x6fa   :  { %5970 = vmatpush1.bf16.msra.mxu0 %v8000_v47 }
 0x6fb   :  { %5971 = vmatprep.subr.bf16.mxu0 %v6604_v42 }
 0x7bf   :  { %v8004_v50 = vpop.f32.mrb[40].mxu1 }
 0x7c0   :  { %v8006_v53 = vpop.f32.mrb[41].mxu1  ;;  %v3150_v19 = vmul.f32 %v8004_v50, %v8004_v50 }
 0x7c1   :  { %v3151_v59 = vmul.f32 %v8006_v53, %v8006_v53  ;;  %v8010_v8 = vpop.f32.mrb[42].mxu1  ;;  %v3140_v37 = vsel %vm3139_vm4, %v8006_v53, 0.0 }
 0x7c2   :  { %v3131_v34 = vsel %vm118_vm1, %v8010_v8, 0.0  ;;  %v3152_v36 = vmul.f32 %v8010_v8, %v8010_v8  ;;  %v8018_v30 = vpop.f32.mrb[43].mxu1 }
 0x7c3   :  { %v3132_v40 = vadd.f32 %v3131_v34, %v8004_v50  ;;  %v3142_v31 = vsel %vm3141_vm5, %v8018_v30, 0.0  ;;  %v3153_v48 = vmul.f32 %v8018_v30, %v8018_v30  ;;  %v3162_v1 = vsel %vm3139_vm4, %v3151_v59, 0.0 }
 0x7c4   :  { %v3154_v54 = vsel %vm118_vm1, %v3152_v36, 0.0  ;;  %v3143_v55 = vadd.f32 %v3142_v31, %v3140_v37  ;;  %v3347_v37 = vld [vmem:[%s8484_s8] sm:$0x1] }
 0x7c5   :  { %v3133_v28 = vrot.slane %v3132_v40, 4  ;;  %v3155_v20 = vadd.f32 %v3154_v54, %v3150_v19  ;;  %v3163_v14 = vsel %vm3141_vm5, %v3153_v48, 0.0  ;;  %v3348_v54 = vld [vmem:[%s8484_s8 + $0x1] sm:$0x1] }
 0x7c6   :  { %v3144_v23 = vrot.slane %v3143_v55, 4  ;;  %v3164_v32 = vadd.f32 %v3163_v14, %v3162_v1 }
 0x7c7   :  { %v3134_v45 = vadd.f32 %v3133_v28, %v3132_v40 }
 0x7c8   :  { %v3145_v46 = vadd.f32 %v3144_v23, %v3143_v55  ;;  %v3165_v51 = vrot.slane %v3164_v32, 4 }
 0x7c9   :  { %v3135_v57 = vrot.slane %v3134_v45, 2 }
 0x7ca   :  { %v3146_v33 = vrot.slane %v3145_v46, 2  ;;  %v3166_v58 = vadd.f32 %v3165_v51, %v3164_v32 }
 0x7cb   :  { %v3136_v60 = vadd.f32 %v3135_v57, %v3134_v45 }
 0x7cc   :  { %v3147_v63 = vadd.f32 %v3146_v33, %v3145_v46  ;;  %v3167_v0 = vrot.slane %v3166_v58, 2 }
 0x7cd   :  { %v3137_v2 = vrot.slane %v3136_v60, 1 }
 0x7ce   :  { %v3148_v3 = vrot.slane %v3147_v63, 1  ;;  %v3168_v6 = vadd.f32 %v3167_v0, %v3166_v58 }
 0x7cf   :  { %v3138_v13 = vadd.f32 %v3137_v2, %v3136_v60 }
 0x7d0   :  { %v3149_v7 = vadd.f32 %v3148_v3, %v3147_v63  ;;  %v3169_v9 = vrot.slane %v3168_v6, 1 }
 0x7d2   :  { %5423 = vmatprep.mubr.msk.f32.mxu0 %vm3139_vm4, %v3149_v7  ;;  %v3170_v17 = vadd.f32 %v3169_v9, %v3168_v6 }
 0x7d3   :  { %3263 = vmatmul.mubr.f32.vlgmr.msra.gmra.mrb[24].mxu0 %v3138_v13  ;;  %v5429_v13 = vld [vmem:[%s8487_s11 + $0x1] sm:$0x1] }
 0x7d4   :  { %5973 = vmatpush1.bf16.msra.mxu0 %v7702_v12  ;;  %5424 = vmatprep.mubr.msk.f32.mxu0 %vm3139_vm4, %v3170_v17  ;;  %v3156_v12 = vrot.slane %v3155_v20, 4  ;;  %v6507_v17 = vld [vmem:[%s8488_s12 + $0x60] sm:$0xff]  }
 0x7d5   :  { %5974 = vmatprep.subr.bf16.mxu0 %v6604_v42 }
 0x7d8   :  { %5976 = vmatpush1.bf16.msra.mxu0 %v7712_v43  ;;  %v3157_v43 = vadd.f32 %v3156_v12, %v3155_v20  ;;  %v6508_v12 = vld [vmem:[%s8488_s12 + $0x68] sm:$0xff]  }
 0x7d9   :  { %5977 = vmatprep.subr.bf16.mxu0 %v6604_v42 }
 0x7dc   :  { %5979 = vmatpush1.bf16.msra.mxu0 %v7728_v52  ;;  %v3158_v52 = vrot.slane %v3157_v43, 2 }
 0x7dd   :  { %5980 = vmatprep.subr.bf16.mxu0 %v6604_v42 }
 0x7e0   :  { %5982 = vmatpush1.bf16.msra.mxu0 %v7744_v61  ;;  %v3159_v61 = vadd.f32 %v3158_v52, %v3157_v43  ;;  %v6509_v43 = vld [vmem:[%s8488_s12 + $0x70] sm:$0xff]   ;;  %v6510_v52 = vld [vmem:[%s8488_s12 + $0x78] sm:$0xff]  }
 0x7e1   :  { %5983 = vmatprep.subr.bf16.mxu0 %v6604_v42 }
 0x7e4   :  { %5985 = vmatpush1.bf16.msra.mxu0 %v7760_v4  ;;  %v3160_v4 = vrot.slane %v3159_v61, 1 }
 0x7e5   :  { %5986 = vmatprep.subr.bf16.mxu0 %v6604_v42 }
 0x7e8   :  { %5988 = vmatpush1.bf16.msra.mxu0 %v7776_v10  ;;  %v3161_v10 = vadd.f32 %v3160_v4, %v3159_v61  ;;  %v6511_v61 = vld [vmem:[%s8488_s12 + $0x80] sm:$0xff]   ;;  %v6512_v4 = vld [vmem:[%s8488_s12 + $0x88] sm:$0xff]  }
 0x7e9   :  { %5989 = vmatprep.subr.bf16.mxu0 %v6604_v42 }
 0x7ec   :  { %5991 = vmatpush1.bf16.msra.mxu0 %v7792_v25  ;;  %v3355_v25 = vld [vmem:[%s8486_s10 + $0x8] sm:$0xff] }
 0x7ed   :  { %5992 = vmatprep.subr.bf16.mxu0 %v6604_v42  ;;  %v6007_v22 = vpack.c.bf16 %v3357_v16, %v3355_v25  ;;  %v6514_v25 = vld [vmem:[%s8488_s12 + $0x98] sm:$0xff]   ;;  %v6515_v16 = vld [vmem:[%s8488_s12 + $0xa0] sm:$0xff]  }
 0x7f0   :  { %5994 = vmatpush1.bf16.msra.mxu0 %v7960_v27  ;;  %v3359_v27 = vld [vmem:[%s8486_s10 + $0x28] sm:$0xff] }
 0x7f1   :  { %5995 = vmatprep.subr.bf16.mxu0 %v6604_v42 }
 0x7f4   :  { %5997 = vmatpush1.bf16.msra.mxu0 %v7970_v18  ;;  %v6011_v18 = vpack.c.bf16 %v3361_v62, %v3359_v27 }
 0x7f5   :  { %5998 = vmatprep.subr.bf16.mxu0 %v6604_v42 }
 0x7f8   :  { %6000 = vmatpush1.bf16.msra.mxu0 %v7980_v29  ;;  %v6013_v29 = vpack.c.bf16 %v3360_v21, %v3358_v15 }
 0x7f9   :  { %6001 = vmatprep.subr.bf16.mxu0 %v6604_v42 }
 0x7fc   :  { %6003 = vmatpush1.bf16.msra.mxu0 %v7990_v38 }
 0x7fd   :  { %6004 = vmatprep.subr.bf16.mxu0 %v6604_v42 }
 0x800   :  { %6006 = vmatpush1.bf16.msra.mxu0 %v8000_v47 }
 0x801   :  { %6008 = vmatprep.subr.bf16.mxu0 %v6007_v22 }
 0x803   :  { %3338 = vmatmul.mubr.f32.vlgmr.msra.gmra.mrb[26].mxu0 %v3161_v10  ;;  %v6513_v10 = vld [vmem:[%s8488_s12 + $0x90] sm:$0xff]  }
 0x804   :  { %3429 = vmatprep.mubr.f32.mxu0 %v6603_v56  ;;  %6010 = vmatpush1.bf16.msra.mxu0 %v6009_v5 }
 0x805   :  { %6012 = vmatprep.subr.bf16.mxu0 %v6011_v18 }
 0x808   :  { %6014 = vmatpush1.bf16.msra.mxu0 %v6013_v29 }
 0x809   :  { %6016 = vmatprep.subr.bf16.mxu0 %v6007_v22  ;;  %v6517_v22 = vld [vmem:[%s8488_s12 + $0xb0] sm:$0xff]  }
 0x8a6   :  { %v3264_v35 = vpop.f32.mrb[24].mxu0 }
 0x8a7   :  { %v3266_v39 = vpop.f32.mrb[25].mxu0  ;;  %v3269_v38 = vmul.f32 0.013888889, %v3264_v35 }
 0x8a8   :  { %v6519_v39 = vld [vmem:[%s8488_s12] sm:$0xff]  }
 0x8a9   :  { %v3344_v44 = vmul.f32 %v3269_v38, %v3269_v38 }
 0x8d6   :  { %v3339_v41 = vpop.f32.mrb[26].mxu0 }
 0x8d7   :  { %v3343_v47 = vmul.f32 0.013888889, %v3339_v41  ;;  %v3341_v59 = vpop.f32.mrb[27].mxu0 }
 0x8d8   :  { %v6521_v59 = vld [vmem:[%s8488_s12 + $0x10] sm:$0xff]  }
 0x8d9   :  { %v3345_v19 = vsub.f32 %v3343_v47, %v3344_v44  ;;  %v6520_v47 = vld [vmem:[%s8488_s12 + $0x8] sm:$0xff]  }
 0x8db   :  { %v3346_v34 = vmax.f32 %v3345_v19, 0.0  ;;  %v6522_v19 = vld [vmem:[%s8488_s12 + $0x18] sm:$0xff]  }
 0x8dd   :  { %v3349_v36 = vadd.f32 1e-05, %v3346_v34  ;;  %v6523_v34 = vld [vmem:[%s8488_s12 + $0x20] sm:$0xff]  }
 0x8df   :  { %6569 = vrsqrt.f32 %v3349_v36  ;;  %v6524_v36 = vld [vmem:[%s8488_s12 + $0x28] sm:$0xff]  }
 0x8e9   :  { %v6570_v40 = vpop.eup %6569 }
 0x8ea   :  { %v3351_v31 = vmul.f32 %v6570_v40, %v3347_v37  ;;  %v6525_v37 = vld [vmem:[%s8488_s12 + $0x30] sm:$0xff]   ;;  %v6526_v40 = vld [vmem:[%s8488_s12 + $0x38] sm:$0xff]  }
 0x8ec   :  { %5425 = vmatmul.mubr.msk.f32.vlgmr.msra.gmra.mrb[28].mxu0 %vm1667_vm3, %v3351_v31  ;;  %v3352_v48 = vmul.f32 %v3351_v31, %v3269_v38  ;;  %v6527_v31 = vld [vmem:[%s8488_s12 + $0x40] sm:$0xff]  }
 0x8ed   :  { %6018 = vmatpush1.bf16.msra.mxu0 %v6009_v5  ;;  %3503 = vmatprep.mubr.f32.mxu0 %v6603_v56 }
 0x8ee   :  { %6020 = vmatprep.subr.bf16.mxu0 %v6011_v18  ;;  %v3353_v55 = vsub.f32 %v3348_v54, %v3352_v48  ;;  %v6528_v48 = vld [vmem:[%s8488_s12 + $0x48] sm:$0xff]   ;;  %v6529_v54 = vld [vmem:[%s8488_s12 + $0x50] sm:$0xff]  }
 0x8f1   :  { %6022 = vmatpush1.bf16.msra.mxu0 %v6013_v29 }
 0x8f4   :  { %5426 = vmatmul.mubr.msk.f32.vlgmr.msra.gmra.mrb[30].mxu0 %vm1667_vm3, %v3353_v55  ;;  %v6530_v55 = vld [vmem:[%s8488_s12 + $0x58] sm:$0xff]  }
 0x8f5   :  { %3584 = vmatprep.mubr.bf16.mxu0 %v6602_v26 }
 0x9bf   :  { %v3431_v1 = vpop.f32.mrb[28].mxu0 }
 0x9c0   :  { %v3513_v28 = vrot.slane %v3431_v1, %v7302_v49  ;;  %v3433_v20 = vpop.f32.mrb[29].mxu0 }
 0x9c1   :  { %v3517_v14 = vrot.slane %v3433_v20, %v7302_v49  ;;  %v6531_v20 = vld [vmem:[%s8488_s12 + $0xc0] sm:$0xff]  }
 0x9c2   :  { %v3518_v23 = vmul.f32 %v3513_v28, %v8004_v50  ;;  %v3520_v32 = vmul.f32 %v3513_v28, %v8010_v8  ;;  %v5482_v28 = vld [vmem:[%s8487_s11 + $0x2] sm:$0x1] }
 0x9c3   :  { %v3519_v45 = vmul.f32 %v3517_v14, %v8006_v53  ;;  %v3521_v46 = vmul.f32 %v3517_v14, %v8018_v30  ;;  %v3540_v30 = vld [vmem:[%s8487_s11] sm:$0x1]  ;;  %v6532_v14 = vld [vmem:[%s8488_s12 + $0xc8] sm:$0xff]  }
 0x9c7   :  { %v3505_v51 = vpop.f32.mrb[30].mxu0 }
 0x9c8   :  { %v3525_v57 = vrot.slane %v3505_v51, %v7302_v49  ;;  %v3507_v33 = vpop.f32.mrb[31].mxu0  ;;  %v6537_v51 = vld [vmem:[%s8488_s12 + $0xf0] sm:$0xff]  }
 0x9c9   :  { %v3529_v58 = vrot.slane %v3507_v33, %v7302_v49  ;;  %v6539_v33 = vld [vmem:[%s8488_s12 + $0x100] sm:$0xff]  }
 0x9ca   :  { %v3530_v60 = vadd.f32 %v3525_v57, %v3518_v23  ;;  %v3532_v63 = vadd.f32 %v3525_v57, %v3520_v32  ;;  %v6533_v23 = vld [vmem:[%s8488_s12 + $0xd0] sm:$0xff]   ;;  %v6534_v32 = vld [vmem:[%s8488_s12 + $0xd8] sm:$0xff]  }
 0x9cb   :  { %v3531_v0 = vadd.f32 %v3529_v58, %v3519_v45  ;;  %v3533_v2 = vadd.f32 %v3529_v58, %v3521_v46  ;;  %v6535_v45 = vld [vmem:[%s8488_s12 + $0xe0] sm:$0xff]   ;;  %v6536_v46 = vld [vmem:[%s8488_s12 + $0xe8] sm:$0xff]   ;;  %v6538_v57 = vld [vmem:[%s8488_s12 + $0xf8] sm:$0xff]  }
 0x9cc   :  { %v3534_v3 = vmax.f32 %v3530_v60, 0.0  ;;  %v3536_v6 = vmax.f32 %v3532_v63, 0.0  ;;  %v6540_v58 = vld [vmem:[%s8488_s12 + $0x108] sm:$0xff]   ;;  %v6541_v60 = vld [vmem:[%s8488_s12 + $0x110] sm:$0xff]   ;;  %v6542_v63 = vld [vmem:[%s8488_s12 + $0x118] sm:$0xff]  }
 0x9cd   :  { %v3535_v7 = vmax.f32 %v3531_v0, 0.0  ;;  %v3537_v50 = vmax.f32 %v3533_v2, 0.0  ;;  %v5562_v0 = vld [vmem:[%s8487_s11 + $0x4] sm:$0x1] }
 0x9ce   :  { %v3538_v8 = vpack.c.bf16 %v3536_v6, %v3534_v3 }
 0x9cf   :  { %v8098_v9 = vpack.c.bf16 %v3537_v50, %v3535_v7 }
 0x9d0   :  { %v8101_v53 = vsel %vm3545_vm6, %v3538_v8, 0 }
 0x9d1   :  { %5427 = vmatprep.subr.msk.bf16.mxu0 %vm3545_vm6, %v8098_v9  ;;  %5563 = vmatprep.subr.msk.bf16.mxu1 %vm3545_vm6, %v8098_v9 }
 0x9d2   :  { %3553 = vmatpush1.bf16.msra.mxu0 %v8101_v53  ;;  %4306 = vmatpush1.bf16.msra.mxu1 %v8101_v53 }
 0x9d3   :  { %5430 = vmatprep.subr.msk.bf16.mxu0 %vm3545_vm6, %v8098_v9  ;;  %6023 = vmatprep.subr.bf16.mxu1 %v6604_v42 }
 0x9d5   :  { %5428 = vmatmul.mubr.msk.bf16.vlgmr.msra.gmra.mrb[32].mxu0 %vm3541_vm7, %v3540_v30  ;;  %5564 = vmatmul.mubr.msk.bf16.vlgmr.msra.gmra.mrb[44].mxu1 %vm3541_vm7, %v5562_v0  ;;  %v6543_v30 = vld [vmem:[%s8488_s12 + $0x120] sm:$0xff]  }
 0x9d6   :  { %3625 = vmatpush1.bf16.msra.mxu0 %v8101_v53  ;;  %3656 = vmatprep.mubr.bf16.mxu0 %v6602_v26 }
 0x9d7   :  { %3767 = vmatprep.subr.bf16.mxu0 %v6602_v26  ;;  %5816 = vmatprep.mubr.msk.f32.mxu1 %vm6605_vm8, %v6603_v56 }
 0x9dd   :  { %5431 = vmatmul.mubr.msk.bf16.vlgmr.msra.gmra.mrb[36].mxu0 %vm3541_vm7, %v5429_v13  ;;  %v6544_v13 = vld [vmem:[%s8488_s12 + $0x128] sm:$0xff]  }
 0x9de   :  { %3768 = vmatpush1.bf16.msra.mxu0 %v6507_v17  ;;  %v6546_v17 = vld [vmem:[%s8488_s12 + $0x138] sm:$0xff]  }
 0x9df   :  { %3769 = vmatprep.subr.bf16.mxu0 %v6602_v26 }
 0x9e2   :  { %3770 = vmatpush1.bf16.msra.mxu0 %v6508_v12  ;;  %v6547_v12 = vld [vmem:[%s8488_s12 + $0x140] sm:$0xff]  }
 0x9e3   :  { %3771 = vmatprep.subr.bf16.mxu0 %v6602_v26 }
 0x9e6   :  { %3772 = vmatpush1.bf16.msra.mxu0 %v6509_v43  ;;  %v6548_v43 = vld [vmem:[%s8488_s12 + $0x148] sm:$0xff]  }
 0x9e7   :  { %3773 = vmatprep.subr.bf16.mxu0 %v6602_v26 }
 0x9ea   :  { %3774 = vmatpush1.bf16.msra.mxu0 %v6510_v52  ;;  %v6549_v52 = vld [vmem:[%s8488_s12 + $0x150] sm:$0xff]  }
 0x9eb   :  { %3775 = vmatprep.subr.bf16.mxu0 %v6602_v26 }
 0x9ee   :  { %3776 = vmatpush1.bf16.msra.mxu0 %v6511_v61  ;;  %v6550_v61 = vld [vmem:[%s8488_s12 + $0x158] sm:$0xff]  }
 0x9ef   :  { %3777 = vmatprep.subr.bf16.mxu0 %v6602_v26 }
 0x9f2   :  { %3778 = vmatpush1.bf16.msra.mxu0 %v6512_v4  ;;  %v6551_v4 = vld [vmem:[%s8488_s12 + $0x160] sm:$0xff]  }
 0x9f3   :  { %3779 = vmatprep.subr.bf16.mxu0 %v6602_v26 }
 0x9f6   :  { %3780 = vmatpush1.bf16.msra.mxu0 %v6513_v10  ;;  %v6552_v10 = vld [vmem:[%s8488_s12 + $0x168] sm:$0xff]  }
 0x9f7   :  { %3781 = vmatprep.subr.bf16.mxu0 %v6602_v26 }
 0x9fa   :  { %3782 = vmatpush1.bf16.msra.mxu0 %v6514_v25  ;;  %v6553_v25 = vld [vmem:[%s8488_s12 + $0x170] sm:$0xff]  }
 0x9fb   :  { %3783 = vmatprep.subr.bf16.mxu0 %v6602_v26 }
 0x9fe   :  { %3784 = vmatpush1.bf16.msra.mxu0 %v6515_v16  ;;  %v6554_v16 = vld [vmem:[%s8488_s12 + $0x178] sm:$0xff]  }
 0x9ff   :  { %3785 = vmatprep.subr.bf16.mxu0 %v6602_v26 }
 0xa02   :  { %3786 = vmatpush1.bf16.msra.mxu0 %v6516_v11 }
 0xa03   :  { %3787 = vmatprep.subr.bf16.mxu0 %v6602_v26 }
 0xa06   :  { %3788 = vmatpush1.bf16.msra.mxu0 %v6517_v22 }
 0xa07   :  { %3789 = vmatprep.subr.bf16.mxu0 %v6602_v26 }
 0xa0a   :  { %3790 = vmatpush1.bf16.msra.mxu0 %v6518_v24 }
 0xa0b   :  { %3882 = vmatprep.subr.bf16.mxu0 %v6602_v26 }
 0xaa8   :  { %v3586_v27 = vpop.f32.mrb[32].mxu0  ;;  %v4339_v11 = vpop.f32.mrb[44].mxu1 }
 0xaa9   :  { %v3588_v62 = vpop.f32.mrb[33].mxu0  ;;  %v3593_v1 = vpack.c.bf16 %v3586_v27, %v3586_v27  ;;  %v4341_v22 = vpop.f32.mrb[45].mxu1 }
 0xaaa   :  { %v3590_v5 = vpop.f32.mrb[34].mxu0  ;;  %v3594_v44 = vpack.c.bf16 %v3588_v62, %v3588_v62  ;;  %v4343_v24 = vpop.f32.mrb[46].mxu1 }
 0xaab   :  { %v3591_v18 = vpop.f32.mrb[35].mxu0  ;;  %v4344_v27 = vpop.f32.mrb[47].mxu1 }
 0xab0   :  { %v3658_v15 = vpop.f32.mrb[36].mxu0 }
 0xab1   :  { %v3660_v21 = vpop.f32.mrb[37].mxu0  ;;  %v3665_v38 = vpack.c.bf16 %v3658_v15, %v3658_v15 }
 0xab2   :  { %v3666_v29 = vpack.c.bf16 %v3660_v21, %v3660_v21  ;;  %v3662_v35 = vpop.f32.mrb[38].mxu0  ;;  %v6555_v21 = vld [vmem:[%s8488_s12 + $0x180] sm:$0xff]  }
 0xab3   :  { %v3663_v41 = vpop.f32.mrb[39].mxu0 }
 0xab4   :  { %5468 = vmatprep.mubr.msk.bf16.mxu0 %vm3139_vm4, %v3666_v29  ;;  %v4347_v29 = vpack.c.bf16 %v4341_v22, %v4341_v22  ;;  %v6557_v41 = vld [vmem:[%s8488_s12 + $0x190] sm:$0xff]  }
 0xab5   :  { %3800 = vmatmul.mubr.bf16.vlgmr.msra.gmra.mrb[40].mxu0 %v3665_v38  ;;  %v6556_v38 = vld [vmem:[%s8488_s12 + $0x188] sm:$0xff]  }
 0xab6   :  { %3883 = vmatpush1.bf16.msra.mxu0 %v6519_v39  ;;  %5481 = vmatprep.mubr.msk.bf16.mxu0 %vm3139_vm4, %v3594_v44  ;;  %v6558_v44 = vld [vmem:[%s8488_s12 + $0x198] sm:$0xff]  }
 0xab7   :  { %3884 = vmatprep.subr.bf16.mxu0 %v6602_v26 }
 0xaba   :  { %3885 = vmatpush1.bf16.msra.mxu0 %v6520_v47  ;;  %v6559_v47 = vld [vmem:[%s8488_s12 + $0x1a0] sm:$0xff]  }
 0xabb   :  { %3886 = vmatprep.subr.bf16.mxu0 %v6602_v26 }
 0xabe   :  { %3887 = vmatpush1.bf16.msra.mxu0 %v6521_v59  ;;  %v6560_v59 = vld [vmem:[%s8488_s12 + $0x1a8] sm:$0xff]  }
 0xabf   :  { %3888 = vmatprep.subr.bf16.mxu0 %v6602_v26 }
 0xac2   :  { %3889 = vmatpush1.bf16.msra.mxu0 %v6522_v19  ;;  %v6561_v19 = vld [vmem:[%s8488_s12 + $0x1b0] sm:$0xff]  }
 0xac3   :  { %3890 = vmatprep.subr.bf16.mxu0 %v6602_v26 }
 0xac6   :  { %3891 = vmatpush1.bf16.msra.mxu0 %v6523_v34  ;;  %v6562_v34 = vld [vmem:[%s8488_s12 + $0x1b8] sm:$0xff]  }
 0xac7   :  { %3892 = vmatprep.subr.bf16.mxu0 %v6602_v26 }
 0xaca   :  { %3893 = vmatpush1.bf16.msra.mxu0 %v6524_v36  ;;  %v6563_v36 = vld [vmem:[%s8488_s12 + $0x1c0] sm:$0xff]  }
 0xacb   :  { %3894 = vmatprep.subr.bf16.mxu0 %v6602_v26 }
 0xace   :  { %3895 = vmatpush1.bf16.msra.mxu0 %v6525_v37  ;;  %v6564_v37 = vld [vmem:[%s8488_s12 + $0x1c8] sm:$0xff]  }
 0xacf   :  { %3896 = vmatprep.subr.bf16.mxu0 %v6602_v26 }
 0xad2   :  { %3897 = vmatpush1.bf16.msra.mxu0 %v6526_v40  ;;  %v6565_v40 = vld [vmem:[%s8488_s12 + $0x1d0] sm:$0xff]  }
 0xad3   :  { %3898 = vmatprep.subr.bf16.mxu0 %v6602_v26 }
 0xad6   :  { %3899 = vmatpush1.bf16.msra.mxu0 %v6527_v31  ;;  %v6566_v31 = vld [vmem:[%s8488_s12 + $0x1d8] sm:$0xff]  }
 0xad7   :  { %3900 = vmatprep.subr.bf16.mxu0 %v6602_v26 }
 0xada   :  { %3901 = vmatpush1.bf16.msra.mxu0 %v6528_v48  ;;  %v4346_v48 = vpack.c.bf16 %v4339_v11, %v4339_v11 }
 0xadb   :  { %3902 = vmatprep.subr.bf16.mxu0 %v6602_v26 }
 0xade   :  { %3903 = vmatpush1.bf16.msra.mxu0 %v6529_v54  ;;  %v4505_v54 = vld [vmem:[%s8490_s14] sm:$0xff] }
 0xadf   :  { %3904 = vmatprep.subr.bf16.mxu0 %v6602_v26 }
 0xae2   :  { %3905 = vmatpush1.bf16.msra.mxu0 %v6530_v55  ;;  %v4506_v55 = vld [vmem:[%s8490_s14 + $0x8] sm:$0xff] }
 0xae3   :  { %5483 = vmatprep.subr.msk.bf16.mxu0 %vm3545_vm6, %v8098_v9 }
 0xae5   :  { %3915 = vmatmul.mubr.bf16.vlgmr.msra.gmra.mrb[40].mxu0 %v3593_v1  ;;  %v6024_v1 = vpack.c.bf16 %v4506_v55, %v4505_v54 }
 0xae6   :  { %3928 = vmatpush1.bf16.msra.mxu0 %v8101_v53  ;;  %3959 = vmatprep.mubr.bf16.mxu0 %v6602_v26 }
 0xae7   :  { %4070 = vmatprep.subr.bf16.mxu0 %v6602_v26  ;;  %6025 = vmatpush3.bf16.msra.mxu1 %v6024_v1 }
 0xae8   :  { %6026 = vmatprep.subr.bf16.mxu1 %v6604_v42 }
 0xaed   :  { %5484 = vmatmul.mubr.msk.bf16.vlgmr.msra.gmra.mrb[44].mxu0 %vm3541_vm7, %v5482_v28  ;;  %v4507_v28 = vld [vmem:[%s8490_s14 + $0x10] sm:$0xff] }
 0xaee   :  { %4071 = vmatpush1.bf16.msra.mxu0 %v6531_v20 }
 0xaef   :  { %4072 = vmatprep.subr.bf16.mxu0 %v6602_v26 }
 0xaf2   :  { %4073 = vmatpush1.bf16.msra.mxu0 %v6532_v14 }
 0xaf3   :  { %4074 = vmatprep.subr.bf16.mxu0 %v6602_v26 }
 0xaf6   :  { %4075 = vmatpush1.bf16.msra.mxu0 %v6533_v23 }
 0xaf7   :  { %4076 = vmatprep.subr.bf16.mxu0 %v6602_v26 }
 0xafa   :  { %4077 = vmatpush1.bf16.msra.mxu0 %v6534_v32 }
 0xafb   :  { %4078 = vmatprep.subr.bf16.mxu0 %v6602_v26 }
 0xafe   :  { %4079 = vmatpush1.bf16.msra.mxu0 %v6535_v45 }
 0xaff   :  { %4080 = vmatprep.subr.bf16.mxu0 %v6602_v26 }
 0xb02   :  { %4081 = vmatpush1.bf16.msra.mxu0 %v6536_v46 }
 0xb03   :  { %4082 = vmatprep.subr.bf16.mxu0 %v6602_v26 }
 0xb06   :  { %4083 = vmatpush1.bf16.msra.mxu0 %v6537_v51 }
 0xb07   :  { %4084 = vmatprep.subr.bf16.mxu0 %v6602_v26 }
 0xb0a   :  { %4085 = vmatpush1.bf16.msra.mxu0 %v6538_v57 }
 0xb0b   :  { %4086 = vmatprep.subr.bf16.mxu0 %v6602_v26 }
 0xb0e   :  { %4087 = vmatpush1.bf16.msra.mxu0 %v6539_v33 }
 0xb0f   :  { %4088 = vmatprep.subr.bf16.mxu0 %v6602_v26 }
 0xb12   :  { %4089 = vmatpush1.bf16.msra.mxu0 %v6540_v58 }
 0xb13   :  { %4090 = vmatprep.subr.bf16.mxu0 %v6602_v26 }
 0xb16   :  { %4091 = vmatpush1.bf16.msra.mxu0 %v6541_v60 }
 0xb17   :  { %4092 = vmatprep.subr.bf16.mxu0 %v6602_v26 }
 0xb1a   :  { %4093 = vmatpush1.bf16.msra.mxu0 %v6542_v63 }
 0xb1b   :  { %5523 = vmatprep.subr.msk.bf16.mxu0 %vm3545_vm6, %v8098_v9  ;;  %v5522_v9 = vld [vmem:[%s8487_s11 + $0x3] sm:$0x1] }
 0xbc0   :  { %v3961_v2 = vpop.f32.mrb[44].mxu0 }
 0xbc1   :  { %v3963_v3 = vpop.f32.mrb[45].mxu0  ;;  %v3968_v50 = vpack.c.bf16 %v3961_v2, %v3961_v2 }
 0xbc2   :  { %v3969_v6 = vpack.c.bf16 %v3963_v3, %v3963_v3  ;;  %v3965_v7 = vpop.f32.mrb[46].mxu0 }
 0xbc3   :  { %v3966_v8 = vpop.f32.mrb[47].mxu0 }
 0xbc4   :  { %5521 = vmatprep.mubr.msk.bf16.mxu0 %vm3139_vm4, %v3969_v6 }
 0xbc5   :  { %4103 = vmatmul.mubr.bf16.vlgmr.msra.gmra.mrb[40].mxu0 %v3968_v50 }
 0xbc6   :  { %4117 = vmatpush1.bf16.msra.mxu0 %v8101_v53  ;;  %4148 = vmatprep.mubr.bf16.mxu0 %v6602_v26  ;;  %v6545_v53 = vld [vmem:[%s8488_s12 + $0x130] sm:$0xff]  }
 0xbc7   :  { %4259 = vmatprep.subr.bf16.mxu0 %v6602_v26 }
 0xbcd   :  { %5524 = vmatmul.mubr.msk.bf16.vlgmr.msra.gmra.mrb[48].mxu0 %vm3541_vm7, %v5522_v9 }
 0xbce   :  { %4260 = vmatpush1.bf16.msra.mxu0 %v6543_v30  ;;  %v4668_v30 = vld [vmem:[%s8491_s15] sm:$0xff] }
 0xbcf   :  { %4261 = vmatprep.subr.bf16.mxu0 %v6602_v26 }
 0xbd2   :  { %4262 = vmatpush1.bf16.msra.mxu0 %v6544_v13  ;;  %v4669_v13 = vld [vmem:[%s8491_s15 + $0x8] sm:$0xff] }
 0xbd3   :  { %4263 = vmatprep.subr.bf16.mxu0 %v6602_v26 }
 0xbd6   :  { %4264 = vmatpush1.bf16.msra.mxu0 %v6545_v53  ;;  %v4670_v53 = vld [vmem:[%s8491_s15 + $0x10] sm:$0xff] }
 0xbd7   :  { %4265 = vmatprep.subr.bf16.mxu0 %v6602_v26 }
 0xbda   :  { %4266 = vmatpush1.bf16.msra.mxu0 %v6546_v17  ;;  %v6036_v17 = vpack.c.bf16 %v4669_v13, %v4668_v30 }
 0xbdb   :  { %4267 = vmatprep.subr.bf16.mxu0 %v6602_v26 }
 0xbde   :  { %4268 = vmatpush1.bf16.msra.mxu0 %v6547_v12  ;;  %v4671_v12 = vld [vmem:[%s8491_s15 + $0x18] sm:$0xff] }
 0xbdf   :  { %4269 = vmatprep.subr.bf16.mxu0 %v6602_v26 }
 0xbe2   :  { %4270 = vmatpush1.bf16.msra.mxu0 %v6548_v43  ;;  %v6039_v43 = vpack.c.bf16 %v4671_v12, %v4670_v53 }
 0xbe3   :  { %4271 = vmatprep.subr.bf16.mxu0 %v6602_v26 }
 0xbe6   :  { %4272 = vmatpush1.bf16.msra.mxu0 %v6549_v52 }
 0xbe7   :  { %4273 = vmatprep.subr.bf16.mxu0 %v6602_v26 }
 0xbea   :  { %4274 = vmatpush1.bf16.msra.mxu0 %v6550_v61 }
 0xbeb   :  { %4275 = vmatprep.subr.bf16.mxu0 %v6602_v26 }
 0xbee   :  { %4276 = vmatpush1.bf16.msra.mxu0 %v6551_v4 }
 0xbef   :  { %4277 = vmatprep.subr.bf16.mxu0 %v6602_v26 }
 0xbf2   :  { %4278 = vmatpush1.bf16.msra.mxu0 %v6552_v10 }
 0xbf3   :  { %4279 = vmatprep.subr.bf16.mxu0 %v6602_v26 }
 0xbf6   :  { %4280 = vmatpush1.bf16.msra.mxu0 %v6553_v25 }
 0xbf7   :  { %4281 = vmatprep.subr.bf16.mxu0 %v6602_v26 }
 0xbfa   :  { %4282 = vmatpush1.bf16.msra.mxu0 %v6554_v16 }
 0xbfb   :  { %4448 = vmatprep.subr.bf16.mxu0 %v6602_v26 }
 0xca0   :  { %v4150_v62 = vpop.f32.mrb[48].mxu0 }
 0xca1   :  { %v4152_v5 = vpop.f32.mrb[49].mxu0  ;;  %v4157_v35 = vpack.c.bf16 %v4150_v62, %v4150_v62  ;;  %v4661_v62 = vld [vmem:[%s8489_s13] sm:$0x1] }
 0xca2   :  { %v4158_v18 = vpack.c.bf16 %v4152_v5, %v4152_v5  ;;  %v4154_v15 = vpop.f32.mrb[50].mxu0 }
 0xca3   :  { %v4155_v39 = vpop.f32.mrb[51].mxu0 }
 0xca4   :  { %5561 = vmatprep.mubr.msk.bf16.mxu0 %vm3139_vm4, %v4158_v18  ;;  %v4837_v39 = vld [vmem:[%s8492_s16 + $0x8] sm:$0xff] }
 0xca5   :  { %4292 = vmatmul.mubr.bf16.vlgmr.msra.gmra.mrb[40].mxu0 %v4157_v35  ;;  %v4836_v35 = vld [vmem:[%s8492_s16] sm:$0xff] }
 0xca6   :  { %4449 = vmatpush1.bf16.msra.mxu0 %v6555_v21  ;;  %5601 = vmatprep.mubr.msk.bf16.mxu0 %vm3139_vm4, %v4347_v29  ;;  %v4662_v21 = vld [vmem:[%s8489_s13 + $0x1] sm:$0x1] }
 0xca7   :  { %4450 = vmatprep.subr.bf16.mxu0 %v6602_v26 }
 0xcaa   :  { %4451 = vmatpush1.bf16.msra.mxu0 %v6556_v38  ;;  %v6048_v38 = vpack.c.bf16 %v4837_v39, %v4836_v35 }
 0xcab   :  { %4452 = vmatprep.subr.bf16.mxu0 %v6602_v26 }
 0xcae   :  { %4453 = vmatpush1.bf16.msra.mxu0 %v6557_v41  ;;  %v4838_v41 = vld [vmem:[%s8492_s16 + $0x10] sm:$0xff] }
 0xcaf   :  { %4454 = vmatprep.subr.bf16.mxu0 %v6602_v26 }
 0xcb2   :  { %4455 = vmatpush1.bf16.msra.mxu0 %v6558_v44 }
 0xcb3   :  { %4456 = vmatprep.subr.bf16.mxu0 %v6602_v26 }
 0xcb6   :  { %4457 = vmatpush1.bf16.msra.mxu0 %v6559_v47 }
 0xcb7   :  { %4458 = vmatprep.subr.bf16.mxu0 %v6602_v26 }
 0xcba   :  { %4459 = vmatpush1.bf16.msra.mxu0 %v6560_v59 }
 0xcbb   :  { %4460 = vmatprep.subr.bf16.mxu0 %v6602_v26 }
 0xcbe   :  { %4461 = vmatpush1.bf16.msra.mxu0 %v6561_v19 }
 0xcbf   :  { %4462 = vmatprep.subr.bf16.mxu0 %v6602_v26 }
 0xcc2   :  { %4463 = vmatpush1.bf16.msra.mxu0 %v6562_v34 }
 0xcc3   :  { %4464 = vmatprep.subr.bf16.mxu0 %v6602_v26 }
 0xcc6   :  { %4465 = vmatpush1.bf16.msra.mxu0 %v6563_v36 }
 0xcc7   :  { %4466 = vmatprep.subr.bf16.mxu0 %v6602_v26 }
 0xcca   :  { %4467 = vmatpush1.bf16.msra.mxu0 %v6564_v37 }
 0xccb   :  { %4468 = vmatprep.subr.bf16.mxu0 %v6602_v26 }
 0xcce   :  { %4469 = vmatpush1.bf16.msra.mxu0 %v6565_v40 }
 0xccf   :  { %4470 = vmatprep.subr.bf16.mxu0 %v6602_v26  ;;  %v4508_v26 = vld [vmem:[%s8490_s14 + $0x18] sm:$0xff] }
 0xcd0   :  { %v6027_v20 = vpack.c.bf16 %v4508_v26, %v4507_v28 }
 0xcd2   :  { %4471 = vmatpush1.bf16.msra.mxu0 %v6566_v31  ;;  %6028 = vmatpush3.bf16.msra.mxu1 %v6027_v20 }
 0xcd3   :  { %6029 = vmatprep.subr.bf16.mxu1 %v6604_v42 }
 0xcd5   :  { %4481 = vmatmul.mubr.bf16.vlgmr.msra.gmra.mrb[40].mxu0 %v4346_v48  ;;  %v5606_v48 = vld [vmem:[%s8493_s17] ss:$0 sm:$0xff] }
 0xda8   :  { %v8403_v14 = vpop.f32.mrb[40].mxu0 }
 0xda9   :  { %v4490_v23 = vsel %vm4489_vm9, %v8403_v14, 0.0  ;;  %v4497_v32 = vmul.f32 %v8403_v14, %v8403_v14  ;;  %v4484_v45 = vpop.f32.mrb[41].mxu0 }
 0xdaa   :  { %v4491_v46 = vrot.slane %v4490_v23, 4  ;;  %v4485_v51 = vpop.f32.mrb[42].mxu0 }
 0xdab   :  { %v4498_v57 = vsel %vm4489_vm9, %v4497_v32, 0.0  ;;  %v4486_v33 = vpop.f32.mrb[43].mxu0 }
 0xdac   :  { %v4492_v58 = vadd.f32 %v4491_v46, %v4490_v23  ;;  %v4499_v60 = vrot.slane %v4498_v57, 4 }
 0xdae   :  { %v4493_v63 = vrot.slane %v4492_v58, 2  ;;  %v4500_v0 = vadd.f32 %v4499_v60, %v4498_v57 }
 0xdb0   :  { %v4494_v2 = vadd.f32 %v4493_v63, %v4492_v58  ;;  %v4501_v3 = vrot.slane %v4500_v0, 2 }
 0xdb2   :  { %v4495_v6 = vrot.slane %v4494_v2, 1  ;;  %v4502_v50 = vadd.f32 %v4501_v3, %v4500_v0 }
 0xdb4   :  { %v4496_v7 = vadd.f32 %v4495_v6, %v4494_v2  ;;  %v4503_v8 = vrot.slane %v4502_v50, 1 }
 0xdb6   :  { %5817 = vmatmul.mubr.msk.f32.vlgmr.msra.gmra.mrb[48].mxu1 %vm1667_vm3, %v4496_v7  ;;  %v4504_v9 = vadd.f32 %v4503_v8, %v4502_v50 }
 0xdb7   :  { %6031 = vmatpush3.bf16.msra.mxu1 %v6024_v1  ;;  %5827 = vmatprep.mubr.msk.f32.mxu1 %vm6605_vm8, %v6603_v56 }
 0xdb8   :  { %6032 = vmatprep.subr.bf16.mxu1 %v6604_v42 }
 0xdbb   :  { %6034 = vmatpush3.bf16.msra.mxu1 %v6027_v20 }
 0xdbc   :  { %6035 = vmatprep.subr.bf16.mxu1 %v6604_v42 }
 0xdbe   :  { %5828 = vmatmul.mubr.msk.f32.vlgmr.msra.gmra.mrb[50].mxu1 %vm1667_vm3, %v4504_v9 }
 0xdbf   :  { %5838 = vmatprep.mubr.msk.f32.mxu1 %vm6605_vm8, %v6603_v56  ;;  %6037 = vmatpush3.bf16.msra.mxu1 %v6036_v17 }
 0xdc0   :  { %6038 = vmatprep.subr.bf16.mxu1 %v6604_v42 }
 0xdc3   :  { %6040 = vmatpush3.bf16.msra.mxu1 %v6039_v43 }
 0xdc4   :  { %6041 = vmatprep.subr.bf16.mxu1 %v6604_v42 }
 0xe89   :  { %v4578_v52 = vpop.f32.mrb[48].mxu1 }
 0xe8a   :  { %v5818_v61 = vpop.f32.mrb[49].mxu1  ;;  %v4583_v4 = vmul.f32 0.5, %v4578_v52 }
 0xe8c   :  { %v4658_v25 = vmul.f32 %v4583_v4, %v4583_v4 }
 0xe91   :  { %v4653_v10 = vpop.f32.mrb[50].mxu1 }
 0xe92   :  { %v4657_v16 = vmul.f32 0.5, %v4653_v10  ;;  %v5829_v11 = vpop.f32.mrb[51].mxu1 }
 0xe94   :  { %v4659_v22 = vsub.f32 %v4657_v16, %v4658_v25 }
 0xe96   :  { %v4660_v24 = vmax.f32 %v4659_v22, 0.0 }
 0xe98   :  { %v4663_v27 = vadd.f32 1e-05, %v4660_v24 }
 0xe9a   :  { %6571 = vrsqrt.f32 %v4663_v27 }
 0xea4   :  { %v6572_v5 = vpop.eup %6571 }
 0xea5   :  { %v4665_v18 = vmul.f32 %v6572_v5, %v4661_v62 }
 0xea7   :  { %5839 = vmatmul.mubr.msk.f32.vlgmr.msra.gmra.mrb[52].mxu1 %vm1667_vm3, %v4665_v18  ;;  %v4666_v15 = vmul.f32 %v4665_v18, %v4583_v4 }
 0xea8   :  { %6043 = vmatpush3.bf16.msra.mxu1 %v6036_v17  ;;  %5849 = vmatprep.mubr.msk.f32.mxu1 %vm6605_vm8, %v6603_v56 }
 0xea9   :  { %6044 = vmatprep.subr.bf16.mxu1 %v6604_v42  ;;  %v4667_v29 = vsub.f32 %v4662_v21, %v4666_v15 }
 0xeac   :  { %6046 = vmatpush3.bf16.msra.mxu1 %v6039_v43 }
 0xead   :  { %6047 = vmatprep.subr.bf16.mxu1 %v6604_v42 }
 0xeaf   :  { %5850 = vmatmul.mubr.msk.f32.vlgmr.msra.gmra.mrb[54].mxu1 %vm1667_vm3, %v4667_v29 }
 0xeb0   :  { %5860 = vmatprep.mubr.msk.f32.mxu1 %vm6605_vm8, %v6603_v56  ;;  %6049 = vmatpush3.bf16.msra.mxu1 %v6048_v38  ;;  %v4839_v56 = vld [vmem:[%s8492_s16 + $0x18] sm:$0xff]  ;;  %s6606_s16 = smov [#allocation2]  }
 0xeb1   :  { %6050 = vmatprep.subr.bf16.mxu1 %v6604_v42  ;;  %v6051_v44 = vpack.c.bf16 %v4839_v56, %v4838_v41  ;;  %s4922_s27 = sshll.u32 %s6606_s16, 4  ;;  %s4923_s27 = int_to_ptr.vmem [resolvable:$true] %s4922_s27 }
 0xeb2   :  { %s6578_s29 = scalar_lea.vmem %s4923_s27, 32  ;;  %p6583_p1 = scmp.lt.s32.totalorder %s4923_s27, %s4923_s27 }
 0xeb3   :  { %p6579_p0 = scmp.ne.s32.totalorder %s4923_s27, %s6578_s29  ;;  %p6584_p2 = scmp.lt.s32.totalorder %s6578_s29, %s6578_s29 }
 0xeb4   :  { %6052 = vmatpush3.bf16.msra.mxu1 %v6051_v44 }
 0xeb5   :  { %p6585_p3 = por %p6584_p2, %p6583_p1 }
 0xeb7   :  { %p6586_p4 = pnand %p6585_p3, %p6579_p0 }
 0xf7a   :  { %v4741_v47 = vpop.f32.mrb[52].mxu1 }
 0xf7b   :  { %v4821_v59 = vrot.slane %v4741_v47, %v7302_v49  ;;  %v5840_v19 = vpop.f32.mrb[53].mxu1 }
 0xf7d   :  { %v4822_v34 = vmul.f32 %v4821_v59, %v8403_v14 }
 0xf82   :  { %v4814_v36 = vpop.f32.mrb[54].mxu1 }
 0xf83   :  { %v4826_v37 = vrot.slane %v4814_v36, %v7302_v49  ;;  %v5851_v42 = vpop.f32.mrb[55].mxu1 }
 0xf85   :  { %v4827_v40 = vadd.f32 %v4826_v37, %v4822_v34 }
 0xf87   :  { %v4828_v31 = vmax.f32 %v4827_v40, 0.0 }
 0xf89   :  { %5861 = vmatmul.mubr.msk.f32.vlgmr.msra.gmra.mrb[56].mxu1 %vm1667_vm3, %v4828_v31 }
0x105c   :  { %v4909_v54 = vpop.f32.mrb[56].mxu1 }
0x105d   :  { %v4913_v55 = vadd.f32 %v5606_v48, %v4909_v54  ;;  %v5862_v1 = vpop.f32.mrb[57].mxu1 }
0x105f   :  { %4915 = vst.msk [vmem:[#allocation2] sm:$0x3] %vm4914_vm10, %v4913_v55 }
0x1060   :  { %6589 = shalt.err (!%p6586_p4)
}
0x1061   :  { %s6590_s12 = scalar_lea.hbm %s8494_s18, 32 }
0x1062   :  { %p6591_p5 = scmp.ne.s32.totalorder %s8494_s18, %s6590_s12  ;;  %p6594_p6 = scmp.lt.u32.totalorder %s6590_s12, %s8494_s18 }
0x1064   :  { %p6596_p7 = pnand %p6594_p6, %p6591_p5 }
0x1066   :  { %6599 = shalt.err (!%p6596_p7)
}
0x1067   :  { %4925 = dma.vmem_to_hbm [thread:$0]  %s4923_s27, 32, %s8494_s18, [#allocation3]  }
0x1068   :  { %6600 = dma.done.wait [#allocation3], 32  }
0x1069   :  { %6601 = vsyncadd [#allocation3], 4294967264 }
0x106a   :  { %4929 = vsyncpa [#allocation3], 1 }

</bundles_post_ra>
